<compile_context>
chip_gen: v7x
topology: tpu7x:2x2x1
jax: 0.10.0
libtpu: 0.0.40
codegen_flags: <defaults>
</compile_context>

<pallas_src>
import jax
import jax.numpy as jnp
import numpy as np
from jax.experimental import pallas as pl
from jax.experimental.pallas import tpu as pltpu

# ---- model hyper-params (small, consistent with the module's __init__) ----
N_FEAT = 16          # n_feat
REDUCTION = 4        # reduction  -> squeeze channels = 4
N_RESBLOCKS = 2      # n_resblocks
KSIZE = 3            # kernel_size (default_conv: padding = kernel_size // 2)
H = W = 16
HW = H * W
BATCH = 2
CR = N_FEAT // REDUCTION


def _residual_group_kernel(x_ref, mask_ref, rcab_w_ref, rcab_b_ref, ca_wd_ref,
                           ca_bd_ref, ca_wu_ref, ca_bu_ref, tail_w_ref,
                           tail_b_ref, out_ref, col_ref):
    C = N_FEAT
    G = x_ref.shape[0]                 # images fused into this grid step
    LANES = G * HW

    # Fuse the G images of this block along the lane axis: (C, G*HW).
    if G == 1:
        x = x_ref[0].astype(jnp.float32)
    else:
        x = jnp.concatenate([x_ref[g] for g in range(G)],
                            axis=1).astype(jnp.float32)

    def conv3x3(cur, wmat, b):
        # cur: (C, LANES) f32; wmat: (Cout, 9*Cin) with tap k = (dh+1)*3+(dw+1)
        # fastest over Cin; b: (Cout, 1).  Build the (9*Cin, LANES) im2col slab
        # with XLU lane rolls + one precomputed-mask multiply per tap, then
        # contract K = 9*Cin in a single MXU matmul.
        for k in range(9):
            dh, dw = k // 3 - 1, k % 3 - 1                 # tap offsets in {-1,0,1}
            if dh == 0 and dw == 0:                        # center tap: no roll/mask
                col_ref[k * C:(k + 1) * C, :] = cur
            else:
                off = dh * W + dw                          # flat source offset
                shifted = pltpu.roll(cur, shift=(-off) % LANES, axis=1)
                col_ref[k * C:(k + 1) * C, :] = (
                    shifted * mask_ref[k * C:(k + 1) * C, :])
        return jnp.dot(wmat, col_ref[...], preferred_element_type=jnp.float32) + b

    cur = x
    for rb in range(N_RESBLOCKS):                          # RCAB blocks
        r = conv3x3(cur, rcab_w_ref[rb, 0], rcab_b_ref[rb, 0])
        r = jnp.maximum(r, 0.0)                            # act after conv #0 only
        r = conv3x3(r, rcab_w_ref[rb, 1], rcab_b_ref[rb, 1])
        # ---- CALayer (per image): GAP -> 1x1 conv -> ReLU -> 1x1 conv -> sigmoid ----
        pieces = []
        for g in range(G):
            rg = r[:, g * HW:(g + 1) * HW]                                       # (C, HW)
            y = jnp.mean(rg, axis=1, keepdims=True)                              # (C, 1)
            z = jnp.sum(ca_wd_ref[rb] * y, axis=0, keepdims=True) + ca_bd_ref[rb]  # (1, Cr)
            z = jnp.maximum(z, 0.0)
            s = jnp.sum(ca_wu_ref[rb] * z, axis=1, keepdims=True) + ca_bu_ref[rb]  # (C, 1)
            s = jax.nn.sigmoid(s)
            pieces.append(rg * s)
        scaled = pieces[0] if G == 1 else jnp.concatenate(pieces, axis=1)
        cur = scaled + cur                                 # CA scale + RCAB residual

    # tail conv of the residual group + group skip
    r = conv3x3(cur, tail_w_ref[...], tail_b_ref[...])
    res = (r + x).astype(out_ref.dtype)
    for g in range(G):
        out_ref[g] = res[:, g * HW:(g + 1) * HW]


def _build_border_mask(images_per_step):
    # Per-image SAME-padding validity masks for the 9 taps, tiled along the
    # fused lane axis.  mask[k*C:(k+1)*C, p] == 1 iff source pixel
    # (h+dh, w+dw) of destination p is inside the image.
    pos = np.arange(HW)
    hh = pos // W
    ww = pos % W
    mask = np.zeros((9 * N_FEAT, HW), np.float32)
    for k in range(9):
        dh, dw = k // 3 - 1, k % 3 - 1
        valid = ((hh + dh >= 0) & (hh + dh < H) &
                 (ww + dw >= 0) & (ww + dw < W))
        mask[k * N_FEAT:(k + 1) * N_FEAT, :] = valid[None, :].astype(np.float32)
    return jnp.asarray(np.tile(mask, (1, images_per_step)))


def _default_images_per_step(batch):
    # v7x has 2 TensorCores per chip: keep >=2 grid steps so the "parallel"
    # axis shards images across cores.  Single-TC v5e/v6e (or unknown):
    # fuse the whole batch into one grid step.
    try:
        kind = jax.devices()[0].device_kind.lower()
    except Exception:
        kind = ""
    if "v7" in kind and batch >= 2 and batch % 2 == 0:
        return batch // 2
    return batch


def residual_group(x_nchw, params, images_per_step=None):
    rcab_w, rcab_b, ca_wd, ca_bd, ca_wu, ca_bu, tail_w, tail_b = params
    n = x_nchw.shape[0]
    if images_per_step is None:
        images_per_step = _default_images_per_step(n)
    G = images_per_step
    assert n % G == 0
    x = x_nchw.reshape(n, N_FEAT, HW)          # NCHW -> (N, C, H*W): free reshape
    mask = _build_border_mask(G)               # (9*C, G*HW) constant 0/1 floats

    def full(a):
        nd = a.ndim
        return pl.BlockSpec(a.shape, lambda i, _nd=nd: (0,) * _nd)

    out = pl.pallas_call(
        _residual_group_kernel,
        out_shape=jax.ShapeDtypeStruct((n, N_FEAT, HW), x.dtype),
        grid=(n // G,),
        in_specs=[
            pl.BlockSpec((G, N_FEAT, HW), lambda i: (i, 0, 0)),
            full(mask),
            full(rcab_w), full(rcab_b),
            full(ca_wd), full(ca_bd), full(ca_wu), full(ca_bu),
            full(tail_w), full(tail_b),
        ],
        out_specs=pl.BlockSpec((G, N_FEAT, HW), lambda i: (i, 0, 0)),
        scratch_shapes=[pltpu.VMEM((9 * N_FEAT, G * HW), jnp.float32)],  # im2col slab
        compiler_params=pltpu.CompilerParams(
            dimension_semantics=("parallel",)),
    )(x, mask, rcab_w, rcab_b, ca_wd, ca_bd, ca_wu, ca_bu, tail_w, tail_b)
    return out.reshape(n, N_FEAT, H, W)


def init_params(key):
    ks = jax.random.split(key, 8)
    C, Cr = N_FEAT, CR
    # conv weights stored as (Cout, 9*Cin), tap k = (dh+1)*3 + (dw+1) fastest over Cin
    rcab_w = 0.08 * jax.random.normal(ks[0], (N_RESBLOCKS, 2, C, 9 * C), jnp.float32)
    rcab_b = 0.01 * jax.random.normal(ks[1], (N_RESBLOCKS, 2, C, 1), jnp.float32)
    ca_wd = 0.20 * jax.random.normal(ks[2], (N_RESBLOCKS, C, Cr), jnp.float32)   # Wd^T
    ca_bd = 0.01 * jax.random.normal(ks[3], (N_RESBLOCKS, 1, Cr), jnp.float32)
    ca_wu = 0.20 * jax.random.normal(ks[4], (N_RESBLOCKS, C, Cr), jnp.float32)   # Wu
    ca_bu = 0.01 * jax.random.normal(ks[5], (N_RESBLOCKS, C, 1), jnp.float32)
    tail_w = 0.08 * jax.random.normal(ks[6], (C, 9 * C), jnp.float32)
    tail_b = 0.01 * jax.random.normal(ks[7], (C, 1), jnp.float32)
    return rcab_w, rcab_b, ca_wd, ca_bd, ca_wu, ca_bu, tail_w, tail_b


# ---- pure-JAX reference (same math as the PyTorch forward) ----
def _conv3x3_ref(x_nhwc, wmat, b):
    # wmat: (Cout, 9*Cin) -> HWIO
    w = wmat.reshape(N_FEAT, 3, 3, N_FEAT).transpose(1, 2, 3, 0)
    y = jax.lax.conv_general_dilated(
        x_nhwc, w, (1, 1), 'SAME', dimension_numbers=('NHWC', 'HWIO', 'NHWC'))
    return y + b.reshape(1, 1, 1, N_FEAT)


def reference(x_nchw, params):
    rcab_w, rcab_b, ca_wd, ca_bd, ca_wu, ca_bu, tail_w, tail_b = params
    x = jnp.transpose(x_nchw, (0, 2, 3, 1))
    cur = x
    for rb in range(N_RESBLOCKS):
        r = _conv3x3_ref(cur, rcab_w[rb, 0], rcab_b[rb, 0])
        r = jax.nn.relu(r)
        r = _conv3x3_ref(r, rcab_w[rb, 1], rcab_b[rb, 1])
        y = jnp.mean(r, axis=(1, 2))                                   # (N, C)
        z = jax.nn.relu(y @ ca_wd[rb] + ca_bd[rb])                     # (N, Cr)
        s = jax.nn.sigmoid(z @ ca_wu[rb].T + ca_bu[rb].reshape(1, -1)) # (N, C)
        r = r * s[:, None, None, :]
        cur = r + cur
    out = _conv3x3_ref(cur, tail_w, tail_b) + x
    return jnp.transpose(out, (0, 3, 1, 2))


if __name__ == "__main__":
    key = jax.random.PRNGKey(0)
    kx, kp = jax.random.split(key)
    x = jax.random.normal(kx, (BATCH, N_FEAT, H, W), jnp.float32)  # NCHW like PyTorch
    params = init_params(kp)

    out = jax.block_until_ready(residual_group(x, params))

    ref = reference(x, params)
    assert out.shape == x.shape and out.dtype == x.dtype
    np.testing.assert_allclose(np.asarray(out), np.asarray(ref), rtol=2e-4, atol=2e-4)
    print("KERNEL_OK")
</pallas_src>

<mosaic_0001>
module attributes {stable_mosaic.version = 11 : i64} {
  func.func @_residual_group_kernel(%arg0: i32, %arg1: memref<2x16x256xf32, #tpu.memory_space<vmem>>, %arg2: memref<144x512xf32, #tpu.memory_space<vmem>>, %arg3: memref<2x2x16x144xf32, #tpu.memory_space<vmem>>, %arg4: memref<2x2x16x1xf32, #tpu.memory_space<vmem>>, %arg5: memref<2x16x4xf32, #tpu.memory_space<vmem>>, %arg6: memref<2x1x4xf32, #tpu.memory_space<vmem>>, %arg7: memref<2x16x4xf32, #tpu.memory_space<vmem>>, %arg8: memref<2x16x1xf32, #tpu.memory_space<vmem>>, %arg9: memref<16x144xf32, #tpu.memory_space<vmem>>, %arg10: memref<16x1xf32, #tpu.memory_space<vmem>>, %arg11: memref<2x16x256xf32, #tpu.memory_space<vmem>>, %arg12: memref<144x512xf32, #tpu.memory_space<vmem>>) attributes {dimension_semantics = [#tpu.dimension_semantics<parallel>], iteration_bounds = array<i64: 1>, scalar_prefetch = 0 : i64, scratch_operands = 1 : i64, tpu.core_type = #tpu.core_type<tc>, window_params = [{transform_indices = @transform_0, window_bounds = array<i64: 2, 16, 256>}, {pipeline_mode = #tpu.pipeline_mode<synchronous>, transform_indices = @transform_1, window_bounds = array<i64: 144, 512>}, {pipeline_mode = #tpu.pipeline_mode<synchronous>, transform_indices = @transform_2, window_bounds = array<i64: 2, 2, 16, 144>}, {pipeline_mode = #tpu.pipeline_mode<synchronous>, transform_indices = @transform_3, window_bounds = array<i64: 2, 2, 16, 1>}, {pipeline_mode = #tpu.pipeline_mode<synchronous>, transform_indices = @transform_4, window_bounds = array<i64: 2, 16, 4>}, {pipeline_mode = #tpu.pipeline_mode<synchronous>, transform_indices = @transform_5, window_bounds = array<i64: 2, 1, 4>}, {pipeline_mode = #tpu.pipeline_mode<synchronous>, transform_indices = @transform_6, window_bounds = array<i64: 2, 16, 4>}, {pipeline_mode = #tpu.pipeline_mode<synchronous>, transform_indices = @transform_7, window_bounds = array<i64: 2, 16, 1>}, {pipeline_mode = #tpu.pipeline_mode<synchronous>, transform_indices = @transform_8, window_bounds = array<i64: 16, 144>}, {pipeline_mode = #tpu.pipeline_mode<synchronous>, transform_indices = @transform_9, window_bounds = array<i64: 16, 1>}, {transform_indices = @transform_10, window_bounds = array<i64: 2, 16, 256>}]} {
    %c0 = arith.constant 0 : index
    %c0_0 = arith.constant 0 : index
    %c0_1 = arith.constant 0 : index
    %0 = vector.load %arg1[%c0, %c0_0, %c0_1] : memref<2x16x256xf32, #tpu.memory_space<vmem>>, vector<1x16x256xf32>
    %1 = vector.shape_cast %0 : vector<1x16x256xf32> to vector<16x256xf32>
    %c1 = arith.constant 1 : index
    %c0_2 = arith.constant 0 : index
    %c0_3 = arith.constant 0 : index
    %2 = vector.load %arg1[%c1, %c0_2, %c0_3] : memref<2x16x256xf32, #tpu.memory_space<vmem>>, vector<1x16x256xf32>
    %3 = vector.shape_cast %2 : vector<1x16x256xf32> to vector<16x256xf32>
    %4 = tpu.concatenate %1, %3 in 1 : vector<16x256xf32>, vector<16x256xf32> -> vector<16x512xf32>
    %c0_4 = arith.constant 0 : index
    %c0_5 = arith.constant 0 : index
    %c0_6 = arith.constant 0 : index
    %c0_7 = arith.constant 0 : index
    %5 = vector.load %arg3[%c0_4, %c0_5, %c0_6, %c0_7] : memref<2x2x16x144xf32, #tpu.memory_space<vmem>>, vector<1x1x16x144xf32>
    %6 = vector.shape_cast %5 : vector<1x1x16x144xf32> to vector<16x144xf32>
    %c0_8 = arith.constant 0 : index
    %c0_9 = arith.constant 0 : index
    %c0_10 = arith.constant 0 : index
    %c0_11 = arith.constant 0 : index
    %7 = vector.load %arg4[%c0_8, %c0_9, %c0_10, %c0_11] : memref<2x2x16x1xf32, #tpu.memory_space<vmem>>, vector<1x1x16x1xf32>
    %8 = vector.shape_cast %7 : vector<1x1x16x1xf32> to vector<16x1xf32>
    %c17_i32 = arith.constant 17 : i32
    %9 = tpu.dynamic_rotate %4 by %c17_i32 dim 1 : vector<16x512xf32>, i32 -> vector<16x512xf32>
    %c0_12 = arith.constant 0 : index
    %c0_13 = arith.constant 0 : index
    %10 = vector.load %arg2[%c0_12, %c0_13] : memref<144x512xf32, #tpu.memory_space<vmem>>, vector<16x512xf32>
    %11 = arith.mulf %9, %10 : vector<16x512xf32>
    %c0_14 = arith.constant 0 : index
    %c0_15 = arith.constant 0 : index
    %12 = vector.load %arg12[%c0_14, %c0_15] : memref<144x512xf32, #tpu.memory_space<vmem>>, vector<16x512xf32>
    tpu.vector_store %arg12[%c0_14, %c0_15], %11 {strides = array<i32>} : memref<144x512xf32, #tpu.memory_space<vmem>>, vector<16x512xf32>,
    %c16_i32 = arith.constant 16 : i32
    %13 = tpu.dynamic_rotate %4 by %c16_i32 dim 1 : vector<16x512xf32>, i32 -> vector<16x512xf32>
    %c16 = arith.constant 16 : index
    %c0_16 = arith.constant 0 : index
    %14 = vector.load %arg2[%c16, %c0_16] : memref<144x512xf32, #tpu.memory_space<vmem>>, vector<16x512xf32>
    %15 = arith.mulf %13, %14 : vector<16x512xf32>
    %c16_17 = arith.constant 16 : index
    %c0_18 = arith.constant 0 : index
    %16 = vector.load %arg12[%c16_17, %c0_18] : memref<144x512xf32, #tpu.memory_space<vmem>>, vector<16x512xf32>
    tpu.vector_store %arg12[%c16_17, %c0_18], %15 {strides = array<i32>} : memref<144x512xf32, #tpu.memory_space<vmem>>, vector<16x512xf32>,
    %c15_i32 = arith.constant 15 : i32
    %17 = tpu.dynamic_rotate %4 by %c15_i32 dim 1 : vector<16x512xf32>, i32 -> vector<16x512xf32>
    %c32 = arith.constant 32 : index
    %c0_19 = arith.constant 0 : index
    %18 = vector.load %arg2[%c32, %c0_19] : memref<144x512xf32, #tpu.memory_space<vmem>>, vector<16x512xf32>
    %19 = arith.mulf %17, %18 : vector<16x512xf32>
    %c32_20 = arith.constant 32 : index
    %c0_21 = arith.constant 0 : index
    %20 = vector.load %arg12[%c32_20, %c0_21] : memref<144x512xf32, #tpu.memory_space<vmem>>, vector<16x512xf32>
    tpu.vector_store %arg12[%c32_20, %c0_21], %19 {strides = array<i32>} : memref<144x512xf32, #tpu.memory_space<vmem>>, vector<16x512xf32>,
    %c1_i32 = arith.constant 1 : i32
    %21 = tpu.dynamic_rotate %4 by %c1_i32 dim 1 : vector<16x512xf32>, i32 -> vector<16x512xf32>
    %c48 = arith.constant 48 : index
    %c0_22 = arith.constant 0 : index
    %22 = vector.load %arg2[%c48, %c0_22] : memref<144x512xf32, #tpu.memory_space<vmem>>, vector<16x512xf32>
    %23 = arith.mulf %21, %22 : vector<16x512xf32>
    %c48_23 = arith.constant 48 : index
    %c0_24 = arith.constant 0 : index
    %24 = vector.load %arg12[%c48_23, %c0_24] : memref<144x512xf32, #tpu.memory_space<vmem>>, vector<16x512xf32>
    tpu.vector_store %arg12[%c48_23, %c0_24], %23 {strides = array<i32>} : memref<144x512xf32, #tpu.memory_space<vmem>>, vector<16x512xf32>,
    %c64 = arith.constant 64 : index
    %c0_25 = arith.constant 0 : index
    %25 = vector.load %arg12[%c64, %c0_25] : memref<144x512xf32, #tpu.memory_space<vmem>>, vector<16x512xf32>
    tpu.vector_store %arg12[%c64, %c0_25], %4 {strides = array<i32>} : memref<144x512xf32, #tpu.memory_space<vmem>>, vector<16x512xf32>,
    %c511_i32 = arith.constant 511 : i32
    %26 = tpu.dynamic_rotate %4 by %c511_i32 dim 1 : vector<16x512xf32>, i32 -> vector<16x512xf32>
    %c80 = arith.constant 80 : index
    %c0_26 = arith.constant 0 : index
    %27 = vector.load %arg2[%c80, %c0_26] : memref<144x512xf32, #tpu.memory_space<vmem>>, vector<16x512xf32>
    %28 = arith.mulf %26, %27 : vector<16x512xf32>
    %c80_27 = arith.constant 80 : index
    %c0_28 = arith.constant 0 : index
    %29 = vector.load %arg12[%c80_27, %c0_28] : memref<144x512xf32, #tpu.memory_space<vmem>>, vector<16x512xf32>
    tpu.vector_store %arg12[%c80_27, %c0_28], %28 {strides = array<i32>} : memref<144x512xf32, #tpu.memory_space<vmem>>, vector<16x512xf32>,
    %c497_i32 = arith.constant 497 : i32
    %30 = tpu.dynamic_rotate %4 by %c497_i32 dim 1 : vector<16x512xf32>, i32 -> vector<16x512xf32>
    %c96 = arith.constant 96 : index
    %c0_29 = arith.constant 0 : index
    %31 = vector.load %arg2[%c96, %c0_29] : memref<144x512xf32, #tpu.memory_space<vmem>>, vector<16x512xf32>
    %32 = arith.mulf %30, %31 : vector<16x512xf32>
    %c96_30 = arith.constant 96 : index
    %c0_31 = arith.constant 0 : index
    %33 = vector.load %arg12[%c96_30, %c0_31] : memref<144x512xf32, #tpu.memory_space<vmem>>, vector<16x512xf32>
    tpu.vector_store %arg12[%c96_30, %c0_31], %32 {strides = array<i32>} : memref<144x512xf32, #tpu.memory_space<vmem>>, vector<16x512xf32>,
    %c496_i32 = arith.constant 496 : i32
    %34 = tpu.dynamic_rotate %4 by %c496_i32 dim 1 : vector<16x512xf32>, i32 -> vector<16x512xf32>
    %c112 = arith.constant 112 : index
    %c0_32 = arith.constant 0 : index
    %35 = vector.load %arg2[%c112, %c0_32] : memref<144x512xf32, #tpu.memory_space<vmem>>, vector<16x512xf32>
    %36 = arith.mulf %34, %35 : vector<16x512xf32>
    %c112_33 = arith.constant 112 : index
    %c0_34 = arith.constant 0 : index
    %37 = vector.load %arg12[%c112_33, %c0_34] : memref<144x512xf32, #tpu.memory_space<vmem>>, vector<16x512xf32>
    tpu.vector_store %arg12[%c112_33, %c0_34], %36 {strides = array<i32>} : memref<144x512xf32, #tpu.memory_space<vmem>>, vector<16x512xf32>,
    %c495_i32 = arith.constant 495 : i32
    %38 = tpu.dynamic_rotate %4 by %c495_i32 dim 1 : vector<16x512xf32>, i32 -> vector<16x512xf32>
    %c128 = arith.constant 128 : index
    %c0_35 = arith.constant 0 : index
    %39 = vector.load %arg2[%c128, %c0_35] : memref<144x512xf32, #tpu.memory_space<vmem>>, vector<16x512xf32>
    %40 = arith.mulf %38, %39 : vector<16x512xf32>
    %c128_36 = arith.constant 128 : index
    %c0_37 = arith.constant 0 : index
    %41 = vector.load %arg12[%c128_36, %c0_37] : memref<144x512xf32, #tpu.memory_space<vmem>>, vector<16x512xf32>
    tpu.vector_store %arg12[%c128_36, %c0_37], %40 {strides = array<i32>} : memref<144x512xf32, #tpu.memory_space<vmem>>, vector<16x512xf32>,
    %c0_38 = arith.constant 0 : index
    %c0_39 = arith.constant 0 : index
    %42 = vector.load %arg12[%c0_38, %c0_39] : memref<144x512xf32, #tpu.memory_space<vmem>>, vector<144x512xf32>
    %cst = arith.constant dense<0.000000e+00> : vector<16x512xf32>
    %43 = tpu.matmul %6, %42, %cst {dimension_numbers = #tpu.dot_dimension_numbers<[1], [0], [0], [1], [0, 0, 1, 1], [], []>} : vector<16x144xf32>, vector<144x512xf32>, vector<16x512xf32> -> vector<16x512xf32>
    %44 = vector.broadcast %8 : vector<16x1xf32> to vector<16x512xf32>
    %45 = arith.addf %43, %44 : vector<16x512xf32>
    %cst_40 = arith.constant 0.000000e+00 : f32
    %46 = vector.broadcast %cst_40 : f32 to vector<16x512xf32>
    %47 = arith.maximumf %45, %46 : vector<16x512xf32>
    %c0_41 = arith.constant 0 : index
    %c1_42 = arith.constant 1 : index
    %c0_43 = arith.constant 0 : index
    %c0_44 = arith.constant 0 : index
    %48 = vector.load %arg3[%c0_41, %c1_42, %c0_43, %c0_44] : memref<2x2x16x144xf32, #tpu.memory_space<vmem>>, vector<1x1x16x144xf32>
    %49 = vector.shape_cast %48 : vector<1x1x16x144xf32> to vector<16x144xf32>
    %c0_45 = arith.constant 0 : index
    %c1_46 = arith.constant 1 : index
    %c0_47 = arith.constant 0 : index
    %c0_48 = arith.constant 0 : index
    %50 = vector.load %arg4[%c0_45, %c1_46, %c0_47, %c0_48] : memref<2x2x16x1xf32, #tpu.memory_space<vmem>>, vector<1x1x16x1xf32>
    %51 = vector.shape_cast %50 : vector<1x1x16x1xf32> to vector<16x1xf32>
    %c17_i32_49 = arith.constant 17 : i32
    %52 = tpu.dynamic_rotate %47 by %c17_i32_49 dim 1 : vector<16x512xf32>, i32 -> vector<16x512xf32>
    %c0_50 = arith.constant 0 : index
    %c0_51 = arith.constant 0 : index
    %53 = vector.load %arg2[%c0_50, %c0_51] : memref<144x512xf32, #tpu.memory_space<vmem>>, vector<16x512xf32>
    %54 = arith.mulf %52, %53 : vector<16x512xf32>
    %c0_52 = arith.constant 0 : index
    %c0_53 = arith.constant 0 : index
    %55 = vector.load %arg12[%c0_52, %c0_53] : memref<144x512xf32, #tpu.memory_space<vmem>>, vector<16x512xf32>
    tpu.vector_store %arg12[%c0_52, %c0_53], %54 {strides = array<i32>} : memref<144x512xf32, #tpu.memory_space<vmem>>, vector<16x512xf32>,
    %c16_i32_54 = arith.constant 16 : i32
    %56 = tpu.dynamic_rotate %47 by %c16_i32_54 dim 1 : vector<16x512xf32>, i32 -> vector<16x512xf32>
    %c16_55 = arith.constant 16 : index
    %c0_56 = arith.constant 0 : index
    %57 = vector.load %arg2[%c16_55, %c0_56] : memref<144x512xf32, #tpu.memory_space<vmem>>, vector<16x512xf32>
    %58 = arith.mulf %56, %57 : vector<16x512xf32>
    %c16_57 = arith.constant 16 : index
    %c0_58 = arith.constant 0 : index
    %59 = vector.load %arg12[%c16_57, %c0_58] : memref<144x512xf32, #tpu.memory_space<vmem>>, vector<16x512xf32>
    tpu.vector_store %arg12[%c16_57, %c0_58], %58 {strides = array<i32>} : memref<144x512xf32, #tpu.memory_space<vmem>>, vector<16x512xf32>,
    %c15_i32_59 = arith.constant 15 : i32
    %60 = tpu.dynamic_rotate %47 by %c15_i32_59 dim 1 : vector<16x512xf32>, i32 -> vector<16x512xf32>
    %c32_60 = arith.constant 32 : index
    %c0_61 = arith.constant 0 : index
    %61 = vector.load %arg2[%c32_60, %c0_61] : memref<144x512xf32, #tpu.memory_space<vmem>>, vector<16x512xf32>
    %62 = arith.mulf %60, %61 : vector<16x512xf32>
    %c32_62 = arith.constant 32 : index
    %c0_63 = arith.constant 0 : index
    %63 = vector.load %arg12[%c32_62, %c0_63] : memref<144x512xf32, #tpu.memory_space<vmem>>, vector<16x512xf32>
    tpu.vector_store %arg12[%c32_62, %c0_63], %62 {strides = array<i32>} : memref<144x512xf32, #tpu.memory_space<vmem>>, vector<16x512xf32>,
    %c1_i32_64 = arith.constant 1 : i32
    %64 = tpu.dynamic_rotate %47 by %c1_i32_64 dim 1 : vector<16x512xf32>, i32 -> vector<16x512xf32>
    %c48_65 = arith.constant 48 : index
    %c0_66 = arith.constant 0 : index
    %65 = vector.load %arg2[%c48_65, %c0_66] : memref<144x512xf32, #tpu.memory_space<vmem>>, vector<16x512xf32>
    %66 = arith.mulf %64, %65 : vector<16x512xf32>
    %c48_67 = arith.constant 48 : index
    %c0_68 = arith.constant 0 : index
    %67 = vector.load %arg12[%c48_67, %c0_68] : memref<144x512xf32, #tpu.memory_space<vmem>>, vector<16x512xf32>
    tpu.vector_store %arg12[%c48_67, %c0_68], %66 {strides = array<i32>} : memref<144x512xf32, #tpu.memory_space<vmem>>, vector<16x512xf32>,
    %c64_69 = arith.constant 64 : index
    %c0_70 = arith.constant 0 : index
    %68 = vector.load %arg12[%c64_69, %c0_70] : memref<144x512xf32, #tpu.memory_space<vmem>>, vector<16x512xf32>
    tpu.vector_store %arg12[%c64_69, %c0_70], %47 {strides = array<i32>} : memref<144x512xf32, #tpu.memory_space<vmem>>, vector<16x512xf32>,
    %c511_i32_71 = arith.constant 511 : i32
    %69 = tpu.dynamic_rotate %47 by %c511_i32_71 dim 1 : vector<16x512xf32>, i32 -> vector<16x512xf32>
    %c80_72 = arith.constant 80 : index
    %c0_73 = arith.constant 0 : index
    %70 = vector.load %arg2[%c80_72, %c0_73] : memref<144x512xf32, #tpu.memory_space<vmem>>, vector<16x512xf32>
    %71 = arith.mulf %69, %70 : vector<16x512xf32>
    %c80_74 = arith.constant 80 : index
    %c0_75 = arith.constant 0 : index
    %72 = vector.load %arg12[%c80_74, %c0_75] : memref<144x512xf32, #tpu.memory_space<vmem>>, vector<16x512xf32>
    tpu.vector_store %arg12[%c80_74, %c0_75], %71 {strides = array<i32>} : memref<144x512xf32, #tpu.memory_space<vmem>>, vector<16x512xf32>,
    %c497_i32_76 = arith.constant 497 : i32
    %73 = tpu.dynamic_rotate %47 by %c497_i32_76 dim 1 : vector<16x512xf32>, i32 -> vector<16x512xf32>
    %c96_77 = arith.constant 96 : index
    %c0_78 = arith.constant 0 : index
    %74 = vector.load %arg2[%c96_77, %c0_78] : memref<144x512xf32, #tpu.memory_space<vmem>>, vector<16x512xf32>
    %75 = arith.mulf %73, %74 : vector<16x512xf32>
    %c96_79 = arith.constant 96 : index
    %c0_80 = arith.constant 0 : index
    %76 = vector.load %arg12[%c96_79, %c0_80] : memref<144x512xf32, #tpu.memory_space<vmem>>, vector<16x512xf32>
    tpu.vector_store %arg12[%c96_79, %c0_80], %75 {strides = array<i32>} : memref<144x512xf32, #tpu.memory_space<vmem>>, vector<16x512xf32>,
    %c496_i32_81 = arith.constant 496 : i32
    %77 = tpu.dynamic_rotate %47 by %c496_i32_81 dim 1 : vector<16x512xf32>, i32 -> vector<16x512xf32>
    %c112_82 = arith.constant 112 : index
    %c0_83 = arith.constant 0 : index
    %78 = vector.load %arg2[%c112_82, %c0_83] : memref<144x512xf32, #tpu.memory_space<vmem>>, vector<16x512xf32>
    %79 = arith.mulf %77, %78 : vector<16x512xf32>
    %c112_84 = arith.constant 112 : index
    %c0_85 = arith.constant 0 : index
    %80 = vector.load %arg12[%c112_84, %c0_85] : memref<144x512xf32, #tpu.memory_space<vmem>>, vector<16x512xf32>
    tpu.vector_store %arg12[%c112_84, %c0_85], %79 {strides = array<i32>} : memref<144x512xf32, #tpu.memory_space<vmem>>, vector<16x512xf32>,
    %c495_i32_86 = arith.constant 495 : i32
    %81 = tpu.dynamic_rotate %47 by %c495_i32_86 dim 1 : vector<16x512xf32>, i32 -> vector<16x512xf32>
    %c128_87 = arith.constant 128 : index
    %c0_88 = arith.constant 0 : index
    %82 = vector.load %arg2[%c128_87, %c0_88] : memref<144x512xf32, #tpu.memory_space<vmem>>, vector<16x512xf32>
    %83 = arith.mulf %81, %82 : vector<16x512xf32>
    %c128_89 = arith.constant 128 : index
    %c0_90 = arith.constant 0 : index
    %84 = vector.load %arg12[%c128_89, %c0_90] : memref<144x512xf32, #tpu.memory_space<vmem>>, vector<16x512xf32>
    tpu.vector_store %arg12[%c128_89, %c0_90], %83 {strides = array<i32>} : memref<144x512xf32, #tpu.memory_space<vmem>>, vector<16x512xf32>,
    %c0_91 = arith.constant 0 : index
    %c0_92 = arith.constant 0 : index
    %85 = vector.load %arg12[%c0_91, %c0_92] : memref<144x512xf32, #tpu.memory_space<vmem>>, vector<144x512xf32>
    %cst_93 = arith.constant dense<0.000000e+00> : vector<16x512xf32>
    %86 = tpu.matmul %49, %85, %cst_93 {dimension_numbers = #tpu.dot_dimension_numbers<[1], [0], [0], [1], [0, 0, 1, 1], [], []>} : vector<16x144xf32>, vector<144x512xf32>, vector<16x512xf32> -> vector<16x512xf32>
    %87 = vector.broadcast %51 : vector<16x1xf32> to vector<16x512xf32>
    %88 = arith.addf %86, %87 : vector<16x512xf32>
    %89 = vector.extract_strided_slice %88 {offsets = [0, 0], sizes = [16, 256], strides = [1, 1]} : vector<16x512xf32> to vector<16x256xf32>
    %cst_94 = arith.constant dense<0.000000e+00> : vector<16xf32>
    %90 = vector.multi_reduction <add>, %89, %cst_94 [1] : vector<16x256xf32> to vector<16xf32>
    %91 = vector.shape_cast %90 : vector<16xf32> to vector<16x1xf32>
    %cst_95 = arith.constant 2.560000e+02 : f32
    %92 = vector.broadcast %cst_95 : f32 to vector<16x1xf32>
    %93 = arith.divf %91, %92 : vector<16x1xf32>
    %c0_96 = arith.constant 0 : index
    %c0_97 = arith.constant 0 : index
    %c0_98 = arith.constant 0 : index
    %94 = vector.load %arg5[%c0_96, %c0_97, %c0_98] : memref<2x16x4xf32, #tpu.memory_space<vmem>>, vector<1x16x4xf32>
    %95 = vector.shape_cast %94 : vector<1x16x4xf32> to vector<16x4xf32>
    %96 = vector.broadcast %93 : vector<16x1xf32> to vector<16x4xf32>
    %97 = arith.mulf %95, %96 : vector<16x4xf32>
    %cst_99 = arith.constant dense<0.000000e+00> : vector<4xf32>
    %98 = vector.multi_reduction <add>, %97, %cst_99 [0] : vector<16x4xf32> to vector<4xf32>
    %99 = vector.shape_cast %98 : vector<4xf32> to vector<1x4xf32>
    %c0_100 = arith.constant 0 : index
    %c0_101 = arith.constant 0 : index
    %c0_102 = arith.constant 0 : index
    %100 = vector.load %arg6[%c0_100, %c0_101, %c0_102] : memref<2x1x4xf32, #tpu.memory_space<vmem>>, vector<1x1x4xf32>
    %101 = vector.shape_cast %100 : vector<1x1x4xf32> to vector<1x4xf32>
    %102 = arith.addf %99, %101 : vector<1x4xf32>
    %cst_103 = arith.constant 0.000000e+00 : f32
    %103 = vector.broadcast %cst_103 : f32 to vector<1x4xf32>
    %104 = arith.maximumf %102, %103 : vector<1x4xf32>
    %c0_104 = arith.constant 0 : index
    %c0_105 = arith.constant 0 : index
    %c0_106 = arith.constant 0 : index
    %105 = vector.load %arg7[%c0_104, %c0_105, %c0_106] : memref<2x16x4xf32, #tpu.memory_space<vmem>>, vector<1x16x4xf32>
    %106 = vector.shape_cast %105 : vector<1x16x4xf32> to vector<16x4xf32>
    %107 = vector.broadcast %104 : vector<1x4xf32> to vector<16x4xf32>
    %108 = arith.mulf %106, %107 : vector<16x4xf32>
    %cst_107 = arith.constant dense<0.000000e+00> : vector<16xf32>
    %109 = vector.multi_reduction <add>, %108, %cst_107 [1] : vector<16x4xf32> to vector<16xf32>
    %110 = vector.shape_cast %109 : vector<16xf32> to vector<16x1xf32>
    %c0_108 = arith.constant 0 : index
    %c0_109 = arith.constant 0 : index
    %c0_110 = arith.constant 0 : index
    %111 = vector.load %arg8[%c0_108, %c0_109, %c0_110] : memref<2x16x1xf32, #tpu.memory_space<vmem>>, vector<1x16x1xf32>
    %112 = vector.shape_cast %111 : vector<1x16x1xf32> to vector<16x1xf32>
    %113 = arith.addf %110, %112 : vector<16x1xf32>
    %114 = arith.negf %113 : vector<16x1xf32>
    %115 = math.exp %114 : vector<16x1xf32>
    %cst_111 = arith.constant 1.000000e+00 : f32
    %116 = vector.broadcast %cst_111 : f32 to vector<16x1xf32>
    %117 = arith.addf %116, %115 : vector<16x1xf32>
    %118 = arith.divf %116, %117 : vector<16x1xf32>
    %119 = vector.broadcast %118 : vector<16x1xf32> to vector<16x256xf32>
    %120 = arith.mulf %89, %119 : vector<16x256xf32>
    %121 = vector.extract_strided_slice %88 {offsets = [0, 256], sizes = [16, 256], strides = [1, 1]} : vector<16x512xf32> to vector<16x256xf32>
    %cst_112 = arith.constant dense<0.000000e+00> : vector<16xf32>
    %122 = vector.multi_reduction <add>, %121, %cst_112 [1] : vector<16x256xf32> to vector<16xf32>
    %123 = vector.shape_cast %122 : vector<16xf32> to vector<16x1xf32>
    %cst_113 = arith.constant 2.560000e+02 : f32
    %124 = vector.broadcast %cst_113 : f32 to vector<16x1xf32>
    %125 = arith.divf %123, %124 : vector<16x1xf32>
    %c0_114 = arith.constant 0 : index
    %c0_115 = arith.constant 0 : index
    %c0_116 = arith.constant 0 : index
    %126 = vector.load %arg5[%c0_114, %c0_115, %c0_116] : memref<2x16x4xf32, #tpu.memory_space<vmem>>, vector<1x16x4xf32>
    %127 = vector.shape_cast %126 : vector<1x16x4xf32> to vector<16x4xf32>
    %128 = vector.broadcast %125 : vector<16x1xf32> to vector<16x4xf32>
    %129 = arith.mulf %127, %128 : vector<16x4xf32>
    %cst_117 = arith.constant dense<0.000000e+00> : vector<4xf32>
    %130 = vector.multi_reduction <add>, %129, %cst_117 [0] : vector<16x4xf32> to vector<4xf32>
    %131 = vector.shape_cast %130 : vector<4xf32> to vector<1x4xf32>
    %c0_118 = arith.constant 0 : index
    %c0_119 = arith.constant 0 : index
    %c0_120 = arith.constant 0 : index
    %132 = vector.load %arg6[%c0_118, %c0_119, %c0_120] : memref<2x1x4xf32, #tpu.memory_space<vmem>>, vector<1x1x4xf32>
    %133 = vector.shape_cast %132 : vector<1x1x4xf32> to vector<1x4xf32>
    %134 = arith.addf %131, %133 : vector<1x4xf32>
    %cst_121 = arith.constant 0.000000e+00 : f32
    %135 = vector.broadcast %cst_121 : f32 to vector<1x4xf32>
    %136 = arith.maximumf %134, %135 : vector<1x4xf32>
    %c0_122 = arith.constant 0 : index
    %c0_123 = arith.constant 0 : index
    %c0_124 = arith.constant 0 : index
    %137 = vector.load %arg7[%c0_122, %c0_123, %c0_124] : memref<2x16x4xf32, #tpu.memory_space<vmem>>, vector<1x16x4xf32>
    %138 = vector.shape_cast %137 : vector<1x16x4xf32> to vector<16x4xf32>
    %139 = vector.broadcast %136 : vector<1x4xf32> to vector<16x4xf32>
    %140 = arith.mulf %138, %139 : vector<16x4xf32>
    %cst_125 = arith.constant dense<0.000000e+00> : vector<16xf32>
    %141 = vector.multi_reduction <add>, %140, %cst_125 [1] : vector<16x4xf32> to vector<16xf32>
    %142 = vector.shape_cast %141 : vector<16xf32> to vector<16x1xf32>
    %c0_126 = arith.constant 0 : index
    %c0_127 = arith.constant 0 : index
    %c0_128 = arith.constant 0 : index
    %143 = vector.load %arg8[%c0_126, %c0_127, %c0_128] : memref<2x16x1xf32, #tpu.memory_space<vmem>>, vector<1x16x1xf32>
    %144 = vector.shape_cast %143 : vector<1x16x1xf32> to vector<16x1xf32>
    %145 = arith.addf %142, %144 : vector<16x1xf32>
    %146 = arith.negf %145 : vector<16x1xf32>
    %147 = math.exp %146 : vector<16x1xf32>
    %cst_129 = arith.constant 1.000000e+00 : f32
    %148 = vector.broadcast %cst_129 : f32 to vector<16x1xf32>
    %149 = arith.addf %148, %147 : vector<16x1xf32>
    %150 = arith.divf %148, %149 : vector<16x1xf32>
    %151 = vector.broadcast %150 : vector<16x1xf32> to vector<16x256xf32>
    %152 = arith.mulf %121, %151 : vector<16x256xf32>
    %153 = tpu.concatenate %120, %152 in 1 : vector<16x256xf32>, vector<16x256xf32> -> vector<16x512xf32>
    %154 = arith.addf %153, %4 : vector<16x512xf32>
    %c1_130 = arith.constant 1 : index
    %c0_131 = arith.constant 0 : index
    %c0_132 = arith.constant 0 : index
    %c0_133 = arith.constant 0 : index
    %155 = vector.load %arg3[%c1_130, %c0_131, %c0_132, %c0_133] : memref<2x2x16x144xf32, #tpu.memory_space<vmem>>, vector<1x1x16x144xf32>
    %156 = vector.shape_cast %155 : vector<1x1x16x144xf32> to vector<16x144xf32>
    %c1_134 = arith.constant 1 : index
    %c0_135 = arith.constant 0 : index
    %c0_136 = arith.constant 0 : index
    %c0_137 = arith.constant 0 : index
    %157 = vector.load %arg4[%c1_134, %c0_135, %c0_136, %c0_137] : memref<2x2x16x1xf32, #tpu.memory_space<vmem>>, vector<1x1x16x1xf32>
    %158 = vector.shape_cast %157 : vector<1x1x16x1xf32> to vector<16x1xf32>
    %c17_i32_138 = arith.constant 17 : i32
    %159 = tpu.dynamic_rotate %154 by %c17_i32_138 dim 1 : vector<16x512xf32>, i32 -> vector<16x512xf32>
    %c0_139 = arith.constant 0 : index
    %c0_140 = arith.constant 0 : index
    %160 = vector.load %arg2[%c0_139, %c0_140] : memref<144x512xf32, #tpu.memory_space<vmem>>, vector<16x512xf32>
    %161 = arith.mulf %159, %160 : vector<16x512xf32>
    %c0_141 = arith.constant 0 : index
    %c0_142 = arith.constant 0 : index
    %162 = vector.load %arg12[%c0_141, %c0_142] : memref<144x512xf32, #tpu.memory_space<vmem>>, vector<16x512xf32>
    tpu.vector_store %arg12[%c0_141, %c0_142], %161 {strides = array<i32>} : memref<144x512xf32, #tpu.memory_space<vmem>>, vector<16x512xf32>,
    %c16_i32_143 = arith.constant 16 : i32
    %163 = tpu.dynamic_rotate %154 by %c16_i32_143 dim 1 : vector<16x512xf32>, i32 -> vector<16x512xf32>
    %c16_144 = arith.constant 16 : index
    %c0_145 = arith.constant 0 : index
    %164 = vector.load %arg2[%c16_144, %c0_145] : memref<144x512xf32, #tpu.memory_space<vmem>>, vector<16x512xf32>
    %165 = arith.mulf %163, %164 : vector<16x512xf32>
    %c16_146 = arith.constant 16 : index
    %c0_147 = arith.constant 0 : index
    %166 = vector.load %arg12[%c16_146, %c0_147] : memref<144x512xf32, #tpu.memory_space<vmem>>, vector<16x512xf32>
    tpu.vector_store %arg12[%c16_146, %c0_147], %165 {strides = array<i32>} : memref<144x512xf32, #tpu.memory_space<vmem>>, vector<16x512xf32>,
    %c15_i32_148 = arith.constant 15 : i32
    %167 = tpu.dynamic_rotate %154 by %c15_i32_148 dim 1 : vector<16x512xf32>, i32 -> vector<16x512xf32>
    %c32_149 = arith.constant 32 : index
    %c0_150 = arith.constant 0 : index
    %168 = vector.load %arg2[%c32_149, %c0_150] : memref<144x512xf32, #tpu.memory_space<vmem>>, vector<16x512xf32>
    %169 = arith.mulf %167, %168 : vector<16x512xf32>
    %c32_151 = arith.constant 32 : index
    %c0_152 = arith.constant 0 : index
    %170 = vector.load %arg12[%c32_151, %c0_152] : memref<144x512xf32, #tpu.memory_space<vmem>>, vector<16x512xf32>
    tpu.vector_store %arg12[%c32_151, %c0_152], %169 {strides = array<i32>} : memref<144x512xf32, #tpu.memory_space<vmem>>, vector<16x512xf32>,
    %c1_i32_153 = arith.constant 1 : i32
    %171 = tpu.dynamic_rotate %154 by %c1_i32_153 dim 1 : vector<16x512xf32>, i32 -> vector<16x512xf32>
    %c48_154 = arith.constant 48 : index
    %c0_155 = arith.constant 0 : index
    %172 = vector.load %arg2[%c48_154, %c0_155] : memref<144x512xf32, #tpu.memory_space<vmem>>, vector<16x512xf32>
    %173 = arith.mulf %171, %172 : vector<16x512xf32>
    %c48_156 = arith.constant 48 : index
    %c0_157 = arith.constant 0 : index
    %174 = vector.load %arg12[%c48_156, %c0_157] : memref<144x512xf32, #tpu.memory_space<vmem>>, vector<16x512xf32>
    tpu.vector_store %arg12[%c48_156, %c0_157], %173 {strides = array<i32>} : memref<144x512xf32, #tpu.memory_space<vmem>>, vector<16x512xf32>,
    %c64_158 = arith.constant 64 : index
    %c0_159 = arith.constant 0 : index
    %175 = vector.load %arg12[%c64_158, %c0_159] : memref<144x512xf32, #tpu.memory_space<vmem>>, vector<16x512xf32>
    tpu.vector_store %arg12[%c64_158, %c0_159], %154 {strides = array<i32>} : memref<144x512xf32, #tpu.memory_space<vmem>>, vector<16x512xf32>,
    %c511_i32_160 = arith.constant 511 : i32
    %176 = tpu.dynamic_rotate %154 by %c511_i32_160 dim 1 : vector<16x512xf32>, i32 -> vector<16x512xf32>
    %c80_161 = arith.constant 80 : index
    %c0_162 = arith.constant 0 : index
    %177 = vector.load %arg2[%c80_161, %c0_162] : memref<144x512xf32, #tpu.memory_space<vmem>>, vector<16x512xf32>
    %178 = arith.mulf %176, %177 : vector<16x512xf32>
    %c80_163 = arith.constant 80 : index
    %c0_164 = arith.constant 0 : index
    %179 = vector.load %arg12[%c80_163, %c0_164] : memref<144x512xf32, #tpu.memory_space<vmem>>, vector<16x512xf32>
    tpu.vector_store %arg12[%c80_163, %c0_164], %178 {strides = array<i32>} : memref<144x512xf32, #tpu.memory_space<vmem>>, vector<16x512xf32>,
    %c497_i32_165 = arith.constant 497 : i32
    %180 = tpu.dynamic_rotate %154 by %c497_i32_165 dim 1 : vector<16x512xf32>, i32 -> vector<16x512xf32>
    %c96_166 = arith.constant 96 : index
    %c0_167 = arith.constant 0 : index
    %181 = vector.load %arg2[%c96_166, %c0_167] : memref<144x512xf32, #tpu.memory_space<vmem>>, vector<16x512xf32>
    %182 = arith.mulf %180, %181 : vector<16x512xf32>
    %c96_168 = arith.constant 96 : index
    %c0_169 = arith.constant 0 : index
    %183 = vector.load %arg12[%c96_168, %c0_169] : memref<144x512xf32, #tpu.memory_space<vmem>>, vector<16x512xf32>
    tpu.vector_store %arg12[%c96_168, %c0_169], %182 {strides = array<i32>} : memref<144x512xf32, #tpu.memory_space<vmem>>, vector<16x512xf32>,
    %c496_i32_170 = arith.constant 496 : i32
    %184 = tpu.dynamic_rotate %154 by %c496_i32_170 dim 1 : vector<16x512xf32>, i32 -> vector<16x512xf32>
    %c112_171 = arith.constant 112 : index
    %c0_172 = arith.constant 0 : index
    %185 = vector.load %arg2[%c112_171, %c0_172] : memref<144x512xf32, #tpu.memory_space<vmem>>, vector<16x512xf32>
    %186 = arith.mulf %184, %185 : vector<16x512xf32>
    %c112_173 = arith.constant 112 : index
    %c0_174 = arith.constant 0 : index
    %187 = vector.load %arg12[%c112_173, %c0_174] : memref<144x512xf32, #tpu.memory_space<vmem>>, vector<16x512xf32>
    tpu.vector_store %arg12[%c112_173, %c0_174], %186 {strides = array<i32>} : memref<144x512xf32, #tpu.memory_space<vmem>>, vector<16x512xf32>,
    %c495_i32_175 = arith.constant 495 : i32
    %188 = tpu.dynamic_rotate %154 by %c495_i32_175 dim 1 : vector<16x512xf32>, i32 -> vector<16x512xf32>
    %c128_176 = arith.constant 128 : index
    %c0_177 = arith.constant 0 : index
    %189 = vector.load %arg2[%c128_176, %c0_177] : memref<144x512xf32, #tpu.memory_space<vmem>>, vector<16x512xf32>
    %190 = arith.mulf %188, %189 : vector<16x512xf32>
    %c128_178 = arith.constant 128 : index
    %c0_179 = arith.constant 0 : index
    %191 = vector.load %arg12[%c128_178, %c0_179] : memref<144x512xf32, #tpu.memory_space<vmem>>, vector<16x512xf32>
    tpu.vector_store %arg12[%c128_178, %c0_179], %190 {strides = array<i32>} : memref<144x512xf32, #tpu.memory_space<vmem>>, vector<16x512xf32>,
    %c0_180 = arith.constant 0 : index
    %c0_181 = arith.constant 0 : index
    %192 = vector.load %arg12[%c0_180, %c0_181] : memref<144x512xf32, #tpu.memory_space<vmem>>, vector<144x512xf32>
    %cst_182 = arith.constant dense<0.000000e+00> : vector<16x512xf32>
    %193 = tpu.matmul %156, %192, %cst_182 {dimension_numbers = #tpu.dot_dimension_numbers<[1], [0], [0], [1], [0, 0, 1, 1], [], []>} : vector<16x144xf32>, vector<144x512xf32>, vector<16x512xf32> -> vector<16x512xf32>
    %194 = vector.broadcast %158 : vector<16x1xf32> to vector<16x512xf32>
    %195 = arith.addf %193, %194 : vector<16x512xf32>
    %cst_183 = arith.constant 0.000000e+00 : f32
    %196 = vector.broadcast %cst_183 : f32 to vector<16x512xf32>
    %197 = arith.maximumf %195, %196 : vector<16x512xf32>
    %c1_184 = arith.constant 1 : index
    %c1_185 = arith.constant 1 : index
    %c0_186 = arith.constant 0 : index
    %c0_187 = arith.constant 0 : index
    %198 = vector.load %arg3[%c1_184, %c1_185, %c0_186, %c0_187] : memref<2x2x16x144xf32, #tpu.memory_space<vmem>>, vector<1x1x16x144xf32>
    %199 = vector.shape_cast %198 : vector<1x1x16x144xf32> to vector<16x144xf32>
    %c1_188 = arith.constant 1 : index
    %c1_189 = arith.constant 1 : index
    %c0_190 = arith.constant 0 : index
    %c0_191 = arith.constant 0 : index
    %200 = vector.load %arg4[%c1_188, %c1_189, %c0_190, %c0_191] : memref<2x2x16x1xf32, #tpu.memory_space<vmem>>, vector<1x1x16x1xf32>
    %201 = vector.shape_cast %200 : vector<1x1x16x1xf32> to vector<16x1xf32>
    %c17_i32_192 = arith.constant 17 : i32
    %202 = tpu.dynamic_rotate %197 by %c17_i32_192 dim 1 : vector<16x512xf32>, i32 -> vector<16x512xf32>
    %c0_193 = arith.constant 0 : index
    %c0_194 = arith.constant 0 : index
    %203 = vector.load %arg2[%c0_193, %c0_194] : memref<144x512xf32, #tpu.memory_space<vmem>>, vector<16x512xf32>
    %204 = arith.mulf %202, %203 : vector<16x512xf32>
    %c0_195 = arith.constant 0 : index
    %c0_196 = arith.constant 0 : index
    %205 = vector.load %arg12[%c0_195, %c0_196] : memref<144x512xf32, #tpu.memory_space<vmem>>, vector<16x512xf32>
    tpu.vector_store %arg12[%c0_195, %c0_196], %204 {strides = array<i32>} : memref<144x512xf32, #tpu.memory_space<vmem>>, vector<16x512xf32>,
    %c16_i32_197 = arith.constant 16 : i32
    %206 = tpu.dynamic_rotate %197 by %c16_i32_197 dim 1 : vector<16x512xf32>, i32 -> vector<16x512xf32>
    %c16_198 = arith.constant 16 : index
    %c0_199 = arith.constant 0 : index
    %207 = vector.load %arg2[%c16_198, %c0_199] : memref<144x512xf32, #tpu.memory_space<vmem>>, vector<16x512xf32>
    %208 = arith.mulf %206, %207 : vector<16x512xf32>
    %c16_200 = arith.constant 16 : index
    %c0_201 = arith.constant 0 : index
    %209 = vector.load %arg12[%c16_200, %c0_201] : memref<144x512xf32, #tpu.memory_space<vmem>>, vector<16x512xf32>
    tpu.vector_store %arg12[%c16_200, %c0_201], %208 {strides = array<i32>} : memref<144x512xf32, #tpu.memory_space<vmem>>, vector<16x512xf32>,
    %c15_i32_202 = arith.constant 15 : i32
    %210 = tpu.dynamic_rotate %197 by %c15_i32_202 dim 1 : vector<16x512xf32>, i32 -> vector<16x512xf32>
    %c32_203 = arith.constant 32 : index
    %c0_204 = arith.constant 0 : index
    %211 = vector.load %arg2[%c32_203, %c0_204] : memref<144x512xf32, #tpu.memory_space<vmem>>, vector<16x512xf32>
    %212 = arith.mulf %210, %211 : vector<16x512xf32>
    %c32_205 = arith.constant 32 : index
    %c0_206 = arith.constant 0 : index
    %213 = vector.load %arg12[%c32_205, %c0_206] : memref<144x512xf32, #tpu.memory_space<vmem>>, vector<16x512xf32>
    tpu.vector_store %arg12[%c32_205, %c0_206], %212 {strides = array<i32>} : memref<144x512xf32, #tpu.memory_space<vmem>>, vector<16x512xf32>,
    %c1_i32_207 = arith.constant 1 : i32
    %214 = tpu.dynamic_rotate %197 by %c1_i32_207 dim 1 : vector<16x512xf32>, i32 -> vector<16x512xf32>
    %c48_208 = arith.constant 48 : index
    %c0_209 = arith.constant 0 : index
    %215 = vector.load %arg2[%c48_208, %c0_209] : memref<144x512xf32, #tpu.memory_space<vmem>>, vector<16x512xf32>
    %216 = arith.mulf %214, %215 : vector<16x512xf32>
    %c48_210 = arith.constant 48 : index
    %c0_211 = arith.constant 0 : index
    %217 = vector.load %arg12[%c48_210, %c0_211] : memref<144x512xf32, #tpu.memory_space<vmem>>, vector<16x512xf32>
    tpu.vector_store %arg12[%c48_210, %c0_211], %216 {strides = array<i32>} : memref<144x512xf32, #tpu.memory_space<vmem>>, vector<16x512xf32>,
    %c64_212 = arith.constant 64 : index
    %c0_213 = arith.constant 0 : index
    %218 = vector.load %arg12[%c64_212, %c0_213] : memref<144x512xf32, #tpu.memory_space<vmem>>, vector<16x512xf32>
    tpu.vector_store %arg12[%c64_212, %c0_213], %197 {strides = array<i32>} : memref<144x512xf32, #tpu.memory_space<vmem>>, vector<16x512xf32>,
    %c511_i32_214 = arith.constant 511 : i32
    %219 = tpu.dynamic_rotate %197 by %c511_i32_214 dim 1 : vector<16x512xf32>, i32 -> vector<16x512xf32>
    %c80_215 = arith.constant 80 : index
    %c0_216 = arith.constant 0 : index
    %220 = vector.load %arg2[%c80_215, %c0_216] : memref<144x512xf32, #tpu.memory_space<vmem>>, vector<16x512xf32>
    %221 = arith.mulf %219, %220 : vector<16x512xf32>
    %c80_217 = arith.constant 80 : index
    %c0_218 = arith.constant 0 : index
    %222 = vector.load %arg12[%c80_217, %c0_218] : memref<144x512xf32, #tpu.memory_space<vmem>>, vector<16x512xf32>
    tpu.vector_store %arg12[%c80_217, %c0_218], %221 {strides = array<i32>} : memref<144x512xf32, #tpu.memory_space<vmem>>, vector<16x512xf32>,
    %c497_i32_219 = arith.constant 497 : i32
    %223 = tpu.dynamic_rotate %197 by %c497_i32_219 dim 1 : vector<16x512xf32>, i32 -> vector<16x512xf32>
    %c96_220 = arith.constant 96 : index
    %c0_221 = arith.constant 0 : index
    %224 = vector.load %arg2[%c96_220, %c0_221] : memref<144x512xf32, #tpu.memory_space<vmem>>, vector<16x512xf32>
    %225 = arith.mulf %223, %224 : vector<16x512xf32>
    %c96_222 = arith.constant 96 : index
    %c0_223 = arith.constant 0 : index
    %226 = vector.load %arg12[%c96_222, %c0_223] : memref<144x512xf32, #tpu.memory_space<vmem>>, vector<16x512xf32>
    tpu.vector_store %arg12[%c96_222, %c0_223], %225 {strides = array<i32>} : memref<144x512xf32, #tpu.memory_space<vmem>>, vector<16x512xf32>,
    %c496_i32_224 = arith.constant 496 : i32
    %227 = tpu.dynamic_rotate %197 by %c496_i32_224 dim 1 : vector<16x512xf32>, i32 -> vector<16x512xf32>
    %c112_225 = arith.constant 112 : index
    %c0_226 = arith.constant 0 : index
    %228 = vector.load %arg2[%c112_225, %c0_226] : memref<144x512xf32, #tpu.memory_space<vmem>>, vector<16x512xf32>
    %229 = arith.mulf %227, %228 : vector<16x512xf32>
    %c112_227 = arith.constant 112 : index
    %c0_228 = arith.constant 0 : index
    %230 = vector.load %arg12[%c112_227, %c0_228] : memref<144x512xf32, #tpu.memory_space<vmem>>, vector<16x512xf32>
    tpu.vector_store %arg12[%c112_227, %c0_228], %229 {strides = array<i32>} : memref<144x512xf32, #tpu.memory_space<vmem>>, vector<16x512xf32>,
    %c495_i32_229 = arith.constant 495 : i32
    %231 = tpu.dynamic_rotate %197 by %c495_i32_229 dim 1 : vector<16x512xf32>, i32 -> vector<16x512xf32>
    %c128_230 = arith.constant 128 : index
    %c0_231 = arith.constant 0 : index
    %232 = vector.load %arg2[%c128_230, %c0_231] : memref<144x512xf32, #tpu.memory_space<vmem>>, vector<16x512xf32>
    %233 = arith.mulf %231, %232 : vector<16x512xf32>
    %c128_232 = arith.constant 128 : index
    %c0_233 = arith.constant 0 : index
    %234 = vector.load %arg12[%c128_232, %c0_233] : memref<144x512xf32, #tpu.memory_space<vmem>>, vector<16x512xf32>
    tpu.vector_store %arg12[%c128_232, %c0_233], %233 {strides = array<i32>} : memref<144x512xf32, #tpu.memory_space<vmem>>, vector<16x512xf32>,
    %c0_234 = arith.constant 0 : index
    %c0_235 = arith.constant 0 : index
    %235 = vector.load %arg12[%c0_234, %c0_235] : memref<144x512xf32, #tpu.memory_space<vmem>>, vector<144x512xf32>
    %cst_236 = arith.constant dense<0.000000e+00> : vector<16x512xf32>
    %236 = tpu.matmul %199, %235, %cst_236 {dimension_numbers = #tpu.dot_dimension_numbers<[1], [0], [0], [1], [0, 0, 1, 1], [], []>} : vector<16x144xf32>, vector<144x512xf32>, vector<16x512xf32> -> vector<16x512xf32>
    %237 = vector.broadcast %201 : vector<16x1xf32> to vector<16x512xf32>
    %238 = arith.addf %236, %237 : vector<16x512xf32>
    %239 = vector.extract_strided_slice %238 {offsets = [0, 0], sizes = [16, 256], strides = [1, 1]} : vector<16x512xf32> to vector<16x256xf32>
    %cst_237 = arith.constant dense<0.000000e+00> : vector<16xf32>
    %240 = vector.multi_reduction <add>, %239, %cst_237 [1] : vector<16x256xf32> to vector<16xf32>
    %241 = vector.shape_cast %240 : vector<16xf32> to vector<16x1xf32>
    %cst_238 = arith.constant 2.560000e+02 : f32
    %242 = vector.broadcast %cst_238 : f32 to vector<16x1xf32>
    %243 = arith.divf %241, %242 : vector<16x1xf32>
    %c1_239 = arith.constant 1 : index
    %c0_240 = arith.constant 0 : index
    %c0_241 = arith.constant 0 : index
    %244 = vector.load %arg5[%c1_239, %c0_240, %c0_241] : memref<2x16x4xf32, #tpu.memory_space<vmem>>, vector<1x16x4xf32>
    %245 = vector.shape_cast %244 : vector<1x16x4xf32> to vector<16x4xf32>
    %246 = vector.broadcast %243 : vector<16x1xf32> to vector<16x4xf32>
    %247 = arith.mulf %245, %246 : vector<16x4xf32>
    %cst_242 = arith.constant dense<0.000000e+00> : vector<4xf32>
    %248 = vector.multi_reduction <add>, %247, %cst_242 [0] : vector<16x4xf32> to vector<4xf32>
    %249 = vector.shape_cast %248 : vector<4xf32> to vector<1x4xf32>
    %c1_243 = arith.constant 1 : index
    %c0_244 = arith.constant 0 : index
    %c0_245 = arith.constant 0 : index
    %250 = vector.load %arg6[%c1_243, %c0_244, %c0_245] : memref<2x1x4xf32, #tpu.memory_space<vmem>>, vector<1x1x4xf32>
    %251 = vector.shape_cast %250 : vector<1x1x4xf32> to vector<1x4xf32>
    %252 = arith.addf %249, %251 : vector<1x4xf32>
    %cst_246 = arith.constant 0.000000e+00 : f32
    %253 = vector.broadcast %cst_246 : f32 to vector<1x4xf32>
    %254 = arith.maximumf %252, %253 : vector<1x4xf32>
    %c1_247 = arith.constant 1 : index
    %c0_248 = arith.constant 0 : index
    %c0_249 = arith.constant 0 : index
    %255 = vector.load %arg7[%c1_247, %c0_248, %c0_249] : memref<2x16x4xf32, #tpu.memory_space<vmem>>, vector<1x16x4xf32>
    %256 = vector.shape_cast %255 : vector<1x16x4xf32> to vector<16x4xf32>
    %257 = vector.broadcast %254 : vector<1x4xf32> to vector<16x4xf32>
    %258 = arith.mulf %256, %257 : vector<16x4xf32>
    %cst_250 = arith.constant dense<0.000000e+00> : vector<16xf32>
    %259 = vector.multi_reduction <add>, %258, %cst_250 [1] : vector<16x4xf32> to vector<16xf32>
    %260 = vector.shape_cast %259 : vector<16xf32> to vector<16x1xf32>
    %c1_251 = arith.constant 1 : index
    %c0_252 = arith.constant 0 : index
    %c0_253 = arith.constant 0 : index
    %261 = vector.load %arg8[%c1_251, %c0_252, %c0_253] : memref<2x16x1xf32, #tpu.memory_space<vmem>>, vector<1x16x1xf32>
    %262 = vector.shape_cast %261 : vector<1x16x1xf32> to vector<16x1xf32>
    %263 = arith.addf %260, %262 : vector<16x1xf32>
    %264 = arith.negf %263 : vector<16x1xf32>
    %265 = math.exp %264 : vector<16x1xf32>
    %cst_254 = arith.constant 1.000000e+00 : f32
    %266 = vector.broadcast %cst_254 : f32 to vector<16x1xf32>
    %267 = arith.addf %266, %265 : vector<16x1xf32>
    %268 = arith.divf %266, %267 : vector<16x1xf32>
    %269 = vector.broadcast %268 : vector<16x1xf32> to vector<16x256xf32>
    %270 = arith.mulf %239, %269 : vector<16x256xf32>
    %271 = vector.extract_strided_slice %238 {offsets = [0, 256], sizes = [16, 256], strides = [1, 1]} : vector<16x512xf32> to vector<16x256xf32>
    %cst_255 = arith.constant dense<0.000000e+00> : vector<16xf32>
    %272 = vector.multi_reduction <add>, %271, %cst_255 [1] : vector<16x256xf32> to vector<16xf32>
    %273 = vector.shape_cast %272 : vector<16xf32> to vector<16x1xf32>
    %cst_256 = arith.constant 2.560000e+02 : f32
    %274 = vector.broadcast %cst_256 : f32 to vector<16x1xf32>
    %275 = arith.divf %273, %274 : vector<16x1xf32>
    %c1_257 = arith.constant 1 : index
    %c0_258 = arith.constant 0 : index
    %c0_259 = arith.constant 0 : index
    %276 = vector.load %arg5[%c1_257, %c0_258, %c0_259] : memref<2x16x4xf32, #tpu.memory_space<vmem>>, vector<1x16x4xf32>
    %277 = vector.shape_cast %276 : vector<1x16x4xf32> to vector<16x4xf32>
    %278 = vector.broadcast %275 : vector<16x1xf32> to vector<16x4xf32>
    %279 = arith.mulf %277, %278 : vector<16x4xf32>
    %cst_260 = arith.constant dense<0.000000e+00> : vector<4xf32>
    %280 = vector.multi_reduction <add>, %279, %cst_260 [0] : vector<16x4xf32> to vector<4xf32>
    %281 = vector.shape_cast %280 : vector<4xf32> to vector<1x4xf32>
    %c1_261 = arith.constant 1 : index
    %c0_262 = arith.constant 0 : index
    %c0_263 = arith.constant 0 : index
    %282 = vector.load %arg6[%c1_261, %c0_262, %c0_263] : memref<2x1x4xf32, #tpu.memory_space<vmem>>, vector<1x1x4xf32>
    %283 = vector.shape_cast %282 : vector<1x1x4xf32> to vector<1x4xf32>
    %284 = arith.addf %281, %283 : vector<1x4xf32>
    %cst_264 = arith.constant 0.000000e+00 : f32
    %285 = vector.broadcast %cst_264 : f32 to vector<1x4xf32>
    %286 = arith.maximumf %284, %285 : vector<1x4xf32>
    %c1_265 = arith.constant 1 : index
    %c0_266 = arith.constant 0 : index
    %c0_267 = arith.constant 0 : index
    %287 = vector.load %arg7[%c1_265, %c0_266, %c0_267] : memref<2x16x4xf32, #tpu.memory_space<vmem>>, vector<1x16x4xf32>
    %288 = vector.shape_cast %287 : vector<1x16x4xf32> to vector<16x4xf32>
    %289 = vector.broadcast %286 : vector<1x4xf32> to vector<16x4xf32>
    %290 = arith.mulf %288, %289 : vector<16x4xf32>
    %cst_268 = arith.constant dense<0.000000e+00> : vector<16xf32>
    %291 = vector.multi_reduction <add>, %290, %cst_268 [1] : vector<16x4xf32> to vector<16xf32>
    %292 = vector.shape_cast %291 : vector<16xf32> to vector<16x1xf32>
    %c1_269 = arith.constant 1 : index
    %c0_270 = arith.constant 0 : index
    %c0_271 = arith.constant 0 : index
    %293 = vector.load %arg8[%c1_269, %c0_270, %c0_271] : memref<2x16x1xf32, #tpu.memory_space<vmem>>, vector<1x16x1xf32>
    %294 = vector.shape_cast %293 : vector<1x16x1xf32> to vector<16x1xf32>
    %295 = arith.addf %292, %294 : vector<16x1xf32>
    %296 = arith.negf %295 : vector<16x1xf32>
    %297 = math.exp %296 : vector<16x1xf32>
    %cst_272 = arith.constant 1.000000e+00 : f32
    %298 = vector.broadcast %cst_272 : f32 to vector<16x1xf32>
    %299 = arith.addf %298, %297 : vector<16x1xf32>
    %300 = arith.divf %298, %299 : vector<16x1xf32>
    %301 = vector.broadcast %300 : vector<16x1xf32> to vector<16x256xf32>
    %302 = arith.mulf %271, %301 : vector<16x256xf32>
    %303 = tpu.concatenate %270, %302 in 1 : vector<16x256xf32>, vector<16x256xf32> -> vector<16x512xf32>
    %304 = arith.addf %303, %154 : vector<16x512xf32>
    %c0_273 = arith.constant 0 : index
    %c0_274 = arith.constant 0 : index
    %305 = vector.load %arg9[%c0_273, %c0_274] : memref<16x144xf32, #tpu.memory_space<vmem>>, vector<16x144xf32>
    %c0_275 = arith.constant 0 : index
    %c0_276 = arith.constant 0 : index
    %306 = vector.load %arg10[%c0_275, %c0_276] : memref<16x1xf32, #tpu.memory_space<vmem>>, vector<16x1xf32>
    %c17_i32_277 = arith.constant 17 : i32
    %307 = tpu.dynamic_rotate %304 by %c17_i32_277 dim 1 : vector<16x512xf32>, i32 -> vector<16x512xf32>
    %c0_278 = arith.constant 0 : index
    %c0_279 = arith.constant 0 : index
    %308 = vector.load %arg2[%c0_278, %c0_279] : memref<144x512xf32, #tpu.memory_space<vmem>>, vector<16x512xf32>
    %309 = arith.mulf %307, %308 : vector<16x512xf32>
    %c0_280 = arith.constant 0 : index
    %c0_281 = arith.constant 0 : index
    %310 = vector.load %arg12[%c0_280, %c0_281] : memref<144x512xf32, #tpu.memory_space<vmem>>, vector<16x512xf32>
    tpu.vector_store %arg12[%c0_280, %c0_281], %309 {strides = array<i32>} : memref<144x512xf32, #tpu.memory_space<vmem>>, vector<16x512xf32>,
    %c16_i32_282 = arith.constant 16 : i32
    %311 = tpu.dynamic_rotate %304 by %c16_i32_282 dim 1 : vector<16x512xf32>, i32 -> vector<16x512xf32>
    %c16_283 = arith.constant 16 : index
    %c0_284 = arith.constant 0 : index
    %312 = vector.load %arg2[%c16_283, %c0_284] : memref<144x512xf32, #tpu.memory_space<vmem>>, vector<16x512xf32>
    %313 = arith.mulf %311, %312 : vector<16x512xf32>
    %c16_285 = arith.constant 16 : index
    %c0_286 = arith.constant 0 : index
    %314 = vector.load %arg12[%c16_285, %c0_286] : memref<144x512xf32, #tpu.memory_space<vmem>>, vector<16x512xf32>
    tpu.vector_store %arg12[%c16_285, %c0_286], %313 {strides = array<i32>} : memref<144x512xf32, #tpu.memory_space<vmem>>, vector<16x512xf32>,
    %c15_i32_287 = arith.constant 15 : i32
    %315 = tpu.dynamic_rotate %304 by %c15_i32_287 dim 1 : vector<16x512xf32>, i32 -> vector<16x512xf32>
    %c32_288 = arith.constant 32 : index
    %c0_289 = arith.constant 0 : index
    %316 = vector.load %arg2[%c32_288, %c0_289] : memref<144x512xf32, #tpu.memory_space<vmem>>, vector<16x512xf32>
    %317 = arith.mulf %315, %316 : vector<16x512xf32>
    %c32_290 = arith.constant 32 : index
    %c0_291 = arith.constant 0 : index
    %318 = vector.load %arg12[%c32_290, %c0_291] : memref<144x512xf32, #tpu.memory_space<vmem>>, vector<16x512xf32>
    tpu.vector_store %arg12[%c32_290, %c0_291], %317 {strides = array<i32>} : memref<144x512xf32, #tpu.memory_space<vmem>>, vector<16x512xf32>,
    %c1_i32_292 = arith.constant 1 : i32
    %319 = tpu.dynamic_rotate %304 by %c1_i32_292 dim 1 : vector<16x512xf32>, i32 -> vector<16x512xf32>
    %c48_293 = arith.constant 48 : index
    %c0_294 = arith.constant 0 : index
    %320 = vector.load %arg2[%c48_293, %c0_294] : memref<144x512xf32, #tpu.memory_space<vmem>>, vector<16x512xf32>
    %321 = arith.mulf %319, %320 : vector<16x512xf32>
    %c48_295 = arith.constant 48 : index
    %c0_296 = arith.constant 0 : index
    %322 = vector.load %arg12[%c48_295, %c0_296] : memref<144x512xf32, #tpu.memory_space<vmem>>, vector<16x512xf32>
    tpu.vector_store %arg12[%c48_295, %c0_296], %321 {strides = array<i32>} : memref<144x512xf32, #tpu.memory_space<vmem>>, vector<16x512xf32>,
    %c64_297 = arith.constant 64 : index
    %c0_298 = arith.constant 0 : index
    %323 = vector.load %arg12[%c64_297, %c0_298] : memref<144x512xf32, #tpu.memory_space<vmem>>, vector<16x512xf32>
    tpu.vector_store %arg12[%c64_297, %c0_298], %304 {strides = array<i32>} : memref<144x512xf32, #tpu.memory_space<vmem>>, vector<16x512xf32>,
    %c511_i32_299 = arith.constant 511 : i32
    %324 = tpu.dynamic_rotate %304 by %c511_i32_299 dim 1 : vector<16x512xf32>, i32 -> vector<16x512xf32>
    %c80_300 = arith.constant 80 : index
    %c0_301 = arith.constant 0 : index
    %325 = vector.load %arg2[%c80_300, %c0_301] : memref<144x512xf32, #tpu.memory_space<vmem>>, vector<16x512xf32>
    %326 = arith.mulf %324, %325 : vector<16x512xf32>
    %c80_302 = arith.constant 80 : index
    %c0_303 = arith.constant 0 : index
    %327 = vector.load %arg12[%c80_302, %c0_303] : memref<144x512xf32, #tpu.memory_space<vmem>>, vector<16x512xf32>
    tpu.vector_store %arg12[%c80_302, %c0_303], %326 {strides = array<i32>} : memref<144x512xf32, #tpu.memory_space<vmem>>, vector<16x512xf32>,
    %c497_i32_304 = arith.constant 497 : i32
    %328 = tpu.dynamic_rotate %304 by %c497_i32_304 dim 1 : vector<16x512xf32>, i32 -> vector<16x512xf32>
    %c96_305 = arith.constant 96 : index
    %c0_306 = arith.constant 0 : index
    %329 = vector.load %arg2[%c96_305, %c0_306] : memref<144x512xf32, #tpu.memory_space<vmem>>, vector<16x512xf32>
    %330 = arith.mulf %328, %329 : vector<16x512xf32>
    %c96_307 = arith.constant 96 : index
    %c0_308 = arith.constant 0 : index
    %331 = vector.load %arg12[%c96_307, %c0_308] : memref<144x512xf32, #tpu.memory_space<vmem>>, vector<16x512xf32>
    tpu.vector_store %arg12[%c96_307, %c0_308], %330 {strides = array<i32>} : memref<144x512xf32, #tpu.memory_space<vmem>>, vector<16x512xf32>,
    %c496_i32_309 = arith.constant 496 : i32
    %332 = tpu.dynamic_rotate %304 by %c496_i32_309 dim 1 : vector<16x512xf32>, i32 -> vector<16x512xf32>
    %c112_310 = arith.constant 112 : index
    %c0_311 = arith.constant 0 : index
    %333 = vector.load %arg2[%c112_310, %c0_311] : memref<144x512xf32, #tpu.memory_space<vmem>>, vector<16x512xf32>
    %334 = arith.mulf %332, %333 : vector<16x512xf32>
    %c112_312 = arith.constant 112 : index
    %c0_313 = arith.constant 0 : index
    %335 = vector.load %arg12[%c112_312, %c0_313] : memref<144x512xf32, #tpu.memory_space<vmem>>, vector<16x512xf32>
    tpu.vector_store %arg12[%c112_312, %c0_313], %334 {strides = array<i32>} : memref<144x512xf32, #tpu.memory_space<vmem>>, vector<16x512xf32>,
    %c495_i32_314 = arith.constant 495 : i32
    %336 = tpu.dynamic_rotate %304 by %c495_i32_314 dim 1 : vector<16x512xf32>, i32 -> vector<16x512xf32>
    %c128_315 = arith.constant 128 : index
    %c0_316 = arith.constant 0 : index
    %337 = vector.load %arg2[%c128_315, %c0_316] : memref<144x512xf32, #tpu.memory_space<vmem>>, vector<16x512xf32>
    %338 = arith.mulf %336, %337 : vector<16x512xf32>
    %c128_317 = arith.constant 128 : index
    %c0_318 = arith.constant 0 : index
    %339 = vector.load %arg12[%c128_317, %c0_318] : memref<144x512xf32, #tpu.memory_space<vmem>>, vector<16x512xf32>
    tpu.vector_store %arg12[%c128_317, %c0_318], %338 {strides = array<i32>} : memref<144x512xf32, #tpu.memory_space<vmem>>, vector<16x512xf32>,
    %c0_319 = arith.constant 0 : index
    %c0_320 = arith.constant 0 : index
    %340 = vector.load %arg12[%c0_319, %c0_320] : memref<144x512xf32, #tpu.memory_space<vmem>>, vector<144x512xf32>
    %cst_321 = arith.constant dense<0.000000e+00> : vector<16x512xf32>
    %341 = tpu.matmul %305, %340, %cst_321 {dimension_numbers = #tpu.dot_dimension_numbers<[1], [0], [0], [1], [0, 0, 1, 1], [], []>} : vector<16x144xf32>, vector<144x512xf32>, vector<16x512xf32> -> vector<16x512xf32>
    %342 = vector.broadcast %306 : vector<16x1xf32> to vector<16x512xf32>
    %343 = arith.addf %341, %342 : vector<16x512xf32>
    %344 = arith.addf %343, %4 : vector<16x512xf32>
    %345 = vector.extract_strided_slice %344 {offsets = [0, 0], sizes = [16, 256], strides = [1, 1]} : vector<16x512xf32> to vector<16x256xf32>
    %c0_322 = arith.constant 0 : index
    %c0_323 = arith.constant 0 : index
    %c0_324 = arith.constant 0 : index
    %346 = vector.load %arg11[%c0_322, %c0_323, %c0_324] : memref<2x16x256xf32, #tpu.memory_space<vmem>>, vector<1x16x256xf32>
    %347 = vector.shape_cast %346 : vector<1x16x256xf32> to vector<16x256xf32>
    %348 = vector.shape_cast %345 : vector<16x256xf32> to vector<1x16x256xf32>
    tpu.vector_store %arg11[%c0_322, %c0_323, %c0_324], %348 {strides = array<i32>} : memref<2x16x256xf32, #tpu.memory_space<vmem>>, vector<1x16x256xf32>,
    %349 = vector.extract_strided_slice %344 {offsets = [0, 256], sizes = [16, 256], strides = [1, 1]} : vector<16x512xf32> to vector<16x256xf32>
    %c1_325 = arith.constant 1 : index
    %c0_326 = arith.constant 0 : index
    %c0_327 = arith.constant 0 : index
    %350 = vector.load %arg11[%c1_325, %c0_326, %c0_327] : memref<2x16x256xf32, #tpu.memory_space<vmem>>, vector<1x16x256xf32>
    %351 = vector.shape_cast %350 : vector<1x16x256xf32> to vector<16x256xf32>
    %352 = vector.shape_cast %349 : vector<16x256xf32> to vector<1x16x256xf32>
    tpu.vector_store %arg11[%c1_325, %c0_326, %c0_327], %352 {strides = array<i32>} : memref<2x16x256xf32, #tpu.memory_space<vmem>>, vector<1x16x256xf32>,
    return
  }
  func.func @transform_0(%arg0: i32) -> (i32, i32, i32) {
    %c0_i32 = arith.constant 0 : i32
    %c0_i32_0 = arith.constant 0 : i32
    %c0_i32_1 = arith.constant 0 : i32
    return %arg0, %c0_i32, %c0_i32_0 : i32, i32, i32
  }
  func.func @transform_1(%arg0: i32) -> (i32, i32) {
    %c0_i32 = arith.constant 0 : i32
    %c0_i32_0 = arith.constant 0 : i32
    %c0_i32_1 = arith.constant 0 : i32
    return %c0_i32, %c0_i32_0 : i32, i32
  }
  func.func @transform_2(%arg0: i32) -> (i32, i32, i32, i32) {
    %c0_i32 = arith.constant 0 : i32
    %c0_i32_0 = arith.constant 0 : i32
    %c0_i32_1 = arith.constant 0 : i32
    %c0_i32_2 = arith.constant 0 : i32
    %c0_i32_3 = arith.constant 0 : i32
    return %c0_i32, %c0_i32_0, %c0_i32_1, %c0_i32_2 : i32, i32, i32, i32
  }
  func.func @transform_3(%arg0: i32) -> (i32, i32, i32, i32) {
    %c0_i32 = arith.constant 0 : i32
    %c0_i32_0 = arith.constant 0 : i32
    %c0_i32_1 = arith.constant 0 : i32
    %c0_i32_2 = arith.constant 0 : i32
    %c0_i32_3 = arith.constant 0 : i32
    return %c0_i32, %c0_i32_0, %c0_i32_1, %c0_i32_2 : i32, i32, i32, i32
  }
  func.func @transform_4(%arg0: i32) -> (i32, i32, i32) {
    %c0_i32 = arith.constant 0 : i32
    %c0_i32_0 = arith.constant 0 : i32
    %c0_i32_1 = arith.constant 0 : i32
    %c0_i32_2 = arith.constant 0 : i32
    return %c0_i32, %c0_i32_0, %c0_i32_1 : i32, i32, i32
  }
  func.func @transform_5(%arg0: i32) -> (i32, i32, i32) {
    %c0_i32 = arith.constant 0 : i32
    %c0_i32_0 = arith.constant 0 : i32
    %c0_i32_1 = arith.constant 0 : i32
    %c0_i32_2 = arith.constant 0 : i32
    return %c0_i32, %c0_i32_0, %c0_i32_1 : i32, i32, i32
  }
  func.func @transform_6(%arg0: i32) -> (i32, i32, i32) {
    %c0_i32 = arith.constant 0 : i32
    %c0_i32_0 = arith.constant 0 : i32
    %c0_i32_1 = arith.constant 0 : i32
    %c0_i32_2 = arith.constant 0 : i32
    return %c0_i32, %c0_i32_0, %c0_i32_1 : i32, i32, i32
  }
  func.func @transform_7(%arg0: i32) -> (i32, i32, i32) {
    %c0_i32 = arith.constant 0 : i32
    %c0_i32_0 = arith.constant 0 : i32
    %c0_i32_1 = arith.constant 0 : i32
    %c0_i32_2 = arith.constant 0 : i32
    return %c0_i32, %c0_i32_0, %c0_i32_1 : i32, i32, i32
  }
  func.func @transform_8(%arg0: i32) -> (i32, i32) {
    %c0_i32 = arith.constant 0 : i32
    %c0_i32_0 = arith.constant 0 : i32
    %c0_i32_1 = arith.constant 0 : i32
    return %c0_i32, %c0_i32_0 : i32, i32
  }
  func.func @transform_9(%arg0: i32) -> (i32, i32) {
    %c0_i32 = arith.constant 0 : i32
    %c0_i32_0 = arith.constant 0 : i32
    %c0_i32_1 = arith.constant 0 : i32
    return %c0_i32, %c0_i32_0 : i32, i32
  }
  func.func @transform_10(%arg0: i32) -> (i32, i32, i32) {
    %c0_i32 = arith.constant 0 : i32
    %c0_i32_0 = arith.constant 0 : i32
    %c0_i32_1 = arith.constant 0 : i32
    return %arg0, %c0_i32, %c0_i32_0 : i32, i32, i32
  }
}

</mosaic_0001>

<bundles_post_ra>
// kernel: tpu_custom_call.1
= control target key start
LH: loop header
LB: loop body
LE: loop exit
PB: predicated region body
PF: predicated region fallthrough
CT: control target
= control target key end

     0   :  { %15 = vsyncpa [#allocation4], 0  ;;  %s6756_s0 = inlined_call_operand.vmem [shape: f32[2,16,256], index: 0, kind: input, shape index: {}]   ;;  %s6757_s1 = inlined_call_operand.hbm [shape: f32[144,512], index: 1, kind: input, shape index: {}]   ;;  %s6758_s2 = inlined_call_operand.vmem [shape: f32[2,2,16,144], index: 2, kind: input, shape index: {}]   ;;  %s6759_s3 = inlined_call_operand.vmem [shape: f32[2,2,16,1], index: 3, kind: input, shape index: {}]   ;;  %s6760_s4 = inlined_call_operand.vmem [shape: f32[2,16,4], index: 4, kind: input, shape index: {}]   ;;  %s6761_s5 = inlined_call_operand.hbm [shape: f32[2,1,4], index: 5, kind: input, shape index: {}]   ;;  %s6762_s6 = inlined_call_operand.vmem [shape: f32[2,16,4], index: 6, kind: input, shape index: {}]   ;;  %s6763_s7 = inlined_call_operand.vmem [shape: f32[2,16,1], index: 7, kind: input, shape index: {}]   ;;  %s6764_s8 = inlined_call_operand.vmem [shape: f32[16,144], index: 8, kind: input, shape index: {}]   ;;  %s6765_s9 = inlined_call_operand.vmem [shape: f32[16,1], index: 9, kind: input, shape index: {}]   ;;  %s6766_s10 = inlined_call_operand.hbm [shape: f32[2,16,256], index: 10, kind: output, shape index: {}]  }
   0x1   :  { %16 = vsyncpa [#allocation7], 0 }
   0x2   :  { %17 = vsyncpa [#allocation5], 0  ;;  %s4174_s13 = smov [#allocation3]   ;;  %s4102_s17 = scalar_lea.hbm %s6757_s1, 9216 }
   0x3   :  { %s25_s14 = sshll.u32 %s4174_s13, 4  ;;  %p4103_p0 = scmp.ne.s32.totalorder %s6757_s1, %s4102_s17  ;;  %s26_s14 = int_to_ptr.vmem [resolvable:$true] %s25_s14 }
   0x4   :  { %p4106_p1 = scmp.lt.u32.totalorder %s4102_s17, %s6757_s1 }
   0x6   :  { %p4108_p2 = pnand %p4106_p1, %p4103_p0 }
   0x8   :  { %4111 = shalt.err (!%p4108_p2)
}
   0x9   :  { %s4112_s22 = scalar_lea.vmem %s26_s14, 9216  ;;  %p4117_p4 = scmp.lt.s32.totalorder %s26_s14, %s26_s14 }
   0xa   :  { %p4113_p3 = scmp.ne.s32.totalorder %s26_s14, %s4112_s22  ;;  %p4118_p5 = scmp.lt.s32.totalorder %s4112_s22, %s4112_s22 }
   0xc   :  { %p4119_p6 = por %p4118_p5, %p4117_p4 }
   0xe   :  { %p4120_p7 = pnand %p4119_p6, %p4113_p3 }
  0x10   :  { %4123 = shalt.err (!%p4120_p7)
}
  0x11   :  { %s4175_s23 = smov 512   ;;  %s4176_s24 = smov 32  }
  0x12   :  { %31 = dma.hbm_to_vmem [thread:$0]  %s6757_s1, 9216, %s26_s14, [#allocation4], %s4175_s23, %s4175_s23, %s4176_s24  }
  0x13   :  { %s4177_s27 = smov [#allocation6]   ;;  %s4124_s11 = scalar_lea.hbm %s6761_s5, 32 }
  0x14   :  { %s43_s28 = sshll.u32 %s4177_s27, 4  ;;  %p4125_p8 = scmp.ne.s32.totalorder %s6761_s5, %s4124_s11  ;;  %s44_s28 = int_to_ptr.vmem [resolvable:$true] %s43_s28 }
  0x15   :  { %p4128_p9 = scmp.lt.u32.totalorder %s4124_s11, %s6761_s5 }
  0x17   :  { %p4130_p10 = pnand %p4128_p9, %p4125_p8 }
  0x19   :  { %4133 = shalt.err (!%p4130_p10)
}
  0x1a   :  { %s4134_s17 = scalar_lea.vmem %s44_s28, 32  ;;  %p4139_p12 = scmp.lt.s32.totalorder %s44_s28, %s44_s28 }
  0x1b   :  { %p4135_p11 = scmp.ne.s32.totalorder %s44_s28, %s4134_s17  ;;  %p4140_p13 = scmp.lt.s32.totalorder %s4134_s17, %s4134_s17 }
  0x1d   :  { %p4141_p0 = por %p4140_p13, %p4139_p12 }
  0x1f   :  { %p4142_p1 = pnand %p4141_p0, %p4135_p11 }
  0x21   :  { %4145 = shalt.err (!%p4142_p1)
}
  0x22   :  { %s4178_s1 = smov 16   ;;  %s4179_s14 = smov 1  }
  0x23   :  { %49 = dma.hbm_to_vmem [thread:$0]  %s6761_s5, 32, %s44_s28, [#allocation7], %s4178_s1, %s4178_s1, %s4179_s14  }
  0x24   :  { %4168 = dma.done.wait [#allocation4], 9216  }
  0x25   :  { %4169 = vsyncadd [#allocation4], 4294958080 }
  0x26   :  { %4170 = dma.done.wait [#allocation7], 32  }
  0x27   :  { %4171 = vsyncadd [#allocation7], 4294967264  ;;  %v4274_v0 = vld [vmem:[%s6756_s0 + $0x8] sm:$0xff]  ;;  %v4279_v1 = vld [vmem:[%s6756_s0] sm:$0xff]  ;;  %s4180_s24 = smov 17   ;;  %s4181_s17 = smov 15   ;;  %v6767_v8 = vlaneseq }
  0x28   :  { %83 = vrot.lane.b32.xlu1 %v4274_v0, %s4180_s24  ;;  %79 = vrot.lane.b32.xlu0 %v4279_v1, %s4180_s24  ;;  %v4288_v2 = vld [vmem:[%s6756_s0 + $0x18] sm:$0xff]  ;;  %v4293_v3 = vld [vmem:[%s6756_s0 + $0x10] sm:$0xff]  ;;  %s4182_s18 = smov 127   ;;  %s4183_s19 = smov 113   ;;  %vm563_vm0 = vcmask 130048   ;;  %v4442_v14 = vld [vmem:[#allocation3 + $0x8] sm:$0xff] }
  0x29   :  { %v4302_v4 = vld [vmem:[%s6756_s0 + $0x30] sm:$0xff]  ;;  %v4307_v5 = vld [vmem:[%s6756_s0 + $0x20] sm:$0xff]  ;;  %v4316_v6 = vld [vmem:[%s6756_s0 + $0x38] sm:$0xff]  ;;  %s4184_s20 = smov 112   ;;  %v4424_v9 = vand.u32 127, %v6767_v8  ;;  %s4185_s21 = smov 111  }
  0x2a   :  { %v4321_v7 = vld [vmem:[%s6756_s0 + $0x28] sm:$0xff]  ;;  %v4458_v26 = vld [vmem:[#allocation3 + $0x10] sm:$0xff]  ;;  %v4466_v28 = vld [vmem:[#allocation3] sm:$0xff]  ;;  %v4186_v32 = vmov 0   ;;  %vm1387_vm9 = vcmask 31744  }
  0x2b   :  { %v74_v10 = vld [vmem:[%s6758_s2 + $0x8] sm:$0xff]  ;;  %vm97_vm1 = vcmp.lt.s32.totalorder %v4424_v9, 17  ;;  %v4460_v27 = vld [vmem:[#allocation3 + $0x30] sm:$0xff]  ;;  %v4468_v29 = vld [vmem:[#allocation3 + $0x20] sm:$0xff]  ;;  %4052 = vset.pattern.permute.xlu0 %v4186_v32  ;;  %4053 = vset.pattern.permute.xlu1 %v4186_v32  ;;  %vm146_vm2 = vcmp.lt.s32.totalorder %v4424_v9, 16  ;;  %vm195_vm3 = vcmp.lt.s32.totalorder %v4424_v9, 15 }
  0x2c   :  { %85 = vrot.lane.b32.xlu1 %v4288_v2, %s4180_s24  ;;  %81 = vrot.lane.b32.xlu0 %v4293_v3, %s4180_s24  ;;  %v4444_v15 = vld [vmem:[#allocation3 + $0x28] sm:$0xff]  ;;  %v4470_v30 = vld [vmem:[#allocation3 + $0x18] sm:$0xff]  ;;  %v77_v33 = vld [vmem:[%s6759_s3] sm:$0xff]  ;;  %vm244_vm4 = vcmp.lt.s32.totalorder %v4424_v9, 1  ;;  %vm301_vm5 = vcmp.lt.s32.totalorder %v4424_v9, 127  ;;  %vm350_vm6 = vcmp.lt.s32.totalorder %v4424_v9, 113 }
  0x2d   :  { %3625 = vmatprep.mubr.msk.f32.mxu0 %vm563_vm0, %v74_v10  ;;  %3627 = vmatprep.mubr.msk.f32.mxu1 %vm563_vm0, %v74_v10  ;;  %v4472_v31 = vld [vmem:[#allocation3 + $0x38] sm:$0xff]  ;;  %v78_v38 = vld [vmem:[%s6759_s3 + $0x8] sm:$0xff]  ;;  %v4505_v63 = vld [vmem:[#allocation3 + $0x70] sm:$0xff]  ;;  %vm399_vm7 = vcmp.lt.s32.totalorder %v4424_v9, 112  ;;  %vm448_vm8 = vcmp.lt.s32.totalorder %v4424_v9, 111 }
  0x2e   :  { %v4495_v52 = vld [vmem:[#allocation3 + $0x68] sm:$0xff]  ;;  %v2948_v9 = vld [vmem:[%s6764_s8 + $0x10] sm:$0xff] }
  0x2f   :  { %v4497_v53 = vld [vmem:[#allocation3 + $0x48] sm:$0xff] }
  0x30   :  { %89 = vrot.lane.b32.xlu1 %v4302_v4, %s4180_s24  ;;  %87 = vrot.lane.b32.xlu0 %v4307_v5, %s4180_s24 }
  0x34   :  { %93 = vrot.lane.b32.xlu1 %v4316_v6, %s4180_s24  ;;  %91 = vrot.lane.b32.xlu0 %v4321_v7, %s4180_s24 }
  0x38   :  { %132 = vrot.lane.b32.xlu1 %v4293_v3, %s4178_s1  ;;  %130 = vrot.lane.b32.xlu0 %v4279_v1, %s4178_s1 }
  0x3c   :  { %136 = vrot.lane.b32.xlu1 %v4288_v2, %s4178_s1  ;;  %134 = vrot.lane.b32.xlu0 %v4274_v0, %s4178_s1 }
  0x40   :  { %140 = vrot.lane.b32.xlu1 %v4302_v4, %s4178_s1  ;;  %138 = vrot.lane.b32.xlu0 %v4307_v5, %s4178_s1 }
  0x44   :  { %144 = vrot.lane.b32.xlu1 %v4316_v6, %s4178_s1  ;;  %142 = vrot.lane.b32.xlu0 %v4321_v7, %s4178_s1 }
  0x48   :  { %181 = vrot.lane.b32.xlu1 %v4293_v3, %s4181_s17  ;;  %179 = vrot.lane.b32.xlu0 %v4279_v1, %s4181_s17 }
  0x4c   :  { %185 = vrot.lane.b32.xlu1 %v4288_v2, %s4181_s17  ;;  %183 = vrot.lane.b32.xlu0 %v4274_v0, %s4181_s17 }
  0x50   :  { %189 = vrot.lane.b32.xlu1 %v4302_v4, %s4181_s17  ;;  %187 = vrot.lane.b32.xlu0 %v4307_v5, %s4181_s17 }
  0x54   :  { %193 = vrot.lane.b32.xlu1 %v4316_v6, %s4181_s17  ;;  %191 = vrot.lane.b32.xlu0 %v4321_v7, %s4181_s17 }
  0x58   :  { %230 = vrot.lane.b32.xlu1 %v4293_v3, %s4179_s14  ;;  %228 = vrot.lane.b32.xlu0 %v4279_v1, %s4179_s14 }
  0x5c   :  { %234 = vrot.lane.b32.xlu1 %v4288_v2, %s4179_s14  ;;  %232 = vrot.lane.b32.xlu0 %v4274_v0, %s4179_s14 }
  0x60   :  { %238 = vrot.lane.b32.xlu1 %v4302_v4, %s4179_s14  ;;  %236 = vrot.lane.b32.xlu0 %v4307_v5, %s4179_s14 }
  0x64   :  { %242 = vrot.lane.b32.xlu1 %v4316_v6, %s4179_s14  ;;  %240 = vrot.lane.b32.xlu0 %v4321_v7, %s4179_s14 }
  0x68   :  { %287 = vrot.lane.b32.xlu1 %v4293_v3, %s4182_s18  ;;  %285 = vrot.lane.b32.xlu0 %v4279_v1, %s4182_s18 }
  0x6c   :  { %291 = vrot.lane.b32.xlu1 %v4288_v2, %s4182_s18  ;;  %289 = vrot.lane.b32.xlu0 %v4274_v0, %s4182_s18 }
  0x70   :  { %295 = vrot.lane.b32.xlu1 %v4302_v4, %s4182_s18  ;;  %293 = vrot.lane.b32.xlu0 %v4307_v5, %s4182_s18 }
  0x74   :  { %299 = vrot.lane.b32.xlu1 %v4316_v6, %s4182_s18  ;;  %297 = vrot.lane.b32.xlu0 %v4321_v7, %s4182_s18 }
  0x78   :  { %336 = vrot.lane.b32.xlu1 %v4293_v3, %s4183_s19  ;;  %334 = vrot.lane.b32.xlu0 %v4279_v1, %s4183_s19 }
  0x7c   :  { %340 = vrot.lane.b32.xlu1 %v4288_v2, %s4183_s19  ;;  %338 = vrot.lane.b32.xlu0 %v4274_v0, %s4183_s19 }
  0x80   :  { %344 = vrot.lane.b32.xlu1 %v4302_v4, %s4183_s19  ;;  %342 = vrot.lane.b32.xlu0 %v4307_v5, %s4183_s19 }
  0x84   :  { %348 = vrot.lane.b32.xlu1 %v4316_v6, %s4183_s19  ;;  %346 = vrot.lane.b32.xlu0 %v4321_v7, %s4183_s19 }
  0x88   :  { %385 = vrot.lane.b32.xlu1 %v4293_v3, %s4184_s20  ;;  %383 = vrot.lane.b32.xlu0 %v4279_v1, %s4184_s20 }
  0x8c   :  { %389 = vrot.lane.b32.xlu1 %v4288_v2, %s4184_s20  ;;  %387 = vrot.lane.b32.xlu0 %v4274_v0, %s4184_s20 }
  0x90   :  { %393 = vrot.lane.b32.xlu1 %v4302_v4, %s4184_s20  ;;  %391 = vrot.lane.b32.xlu0 %v4307_v5, %s4184_s20 }
  0x94   :  { %397 = vrot.lane.b32.xlu1 %v4316_v6, %s4184_s20  ;;  %395 = vrot.lane.b32.xlu0 %v4321_v7, %s4184_s20 }
  0x98   :  { %434 = vrot.lane.b32.xlu1 %v4293_v3, %s4185_s21  ;;  %432 = vrot.lane.b32.xlu0 %v4279_v1, %s4185_s21 }
  0x9a   :  { %v84_v11 = vpop.permute.xlu1 %83  ;;  %v80_v12 = vpop.permute.xlu0 %79 }
  0x9b   :  { %v102_v13 = vsel %vm97_vm1, %v80_v12, %v84_v11 }
  0x9c   :  { %438 = vrot.lane.b32.xlu1 %v4288_v2, %s4185_s21  ;;  %436 = vrot.lane.b32.xlu0 %v4274_v0, %s4185_s21  ;;  %v115_v19 = vmul.f32 %v4442_v14, %v102_v13  ;;  %v4513_v13 = vld [vmem:[#allocation3 + $0x60] sm:$0xff] }
  0x9e   :  { %v86_v16 = vpop.permute.xlu1 %85  ;;  %v82_v17 = vpop.permute.xlu0 %81 }
  0x9f   :  { %v103_v18 = vsel %vm97_vm1, %v82_v17, %v86_v16 }
  0xa0   :  { %442 = vrot.lane.b32.xlu1 %v4302_v4, %s4185_s21  ;;  %440 = vrot.lane.b32.xlu0 %v4307_v5, %s4185_s21  ;;  %v119_v20 = vmul.f32 %v4444_v15, %v103_v18  ;;  %v4519_v18 = vld [vmem:[#allocation3 + $0x58] sm:$0xff] }
  0xa2   :  { %v90_v21 = vpop.permute.xlu1 %89  ;;  %v88_v22 = vpop.permute.xlu0 %87  ;;  %v3677_v23 = vpack.c.bf16 %v119_v20, %v115_v19 }
  0xa3   :  { %v101_v24 = vsel %vm97_vm1, %v86_v16, %v90_v21  ;;  %v100_v25 = vsel %vm97_vm1, %v84_v11, %v88_v22  ;;  %v4509_v11 = vld [vmem:[#allocation3 + $0x50] sm:$0xff]  ;;  %v4515_v16 = vld [vmem:[#allocation3 + $0x78] sm:$0xff] }
  0xa4   :  { %446 = vrot.lane.b32.xlu1 %v4316_v6, %s4185_s21  ;;  %444 = vrot.lane.b32.xlu0 %v4321_v7, %s4185_s21  ;;  %v116_v36 = vmul.f32 %v4458_v26, %v100_v25  ;;  %v120_v37 = vmul.f32 %v4460_v27, %v101_v24 }
  0xa5   :  { %3678 = vmatprep.subr.bf16.mxu0 %v3677_v23 }
  0xa6   :  { %v94_v34 = vpop.permute.xlu1 %93  ;;  %v92_v35 = vpop.permute.xlu0 %91  ;;  %v3715_v51 = vpack.c.bf16 %v120_v37, %v116_v36 }
  0xa7   :  { %v105_v39 = vsel %vm97_vm1, %v94_v34, %v82_v17  ;;  %v104_v40 = vsel %vm97_vm1, %v92_v35, %v80_v12  ;;  %v98_v41 = vsel %vm97_vm1, %v88_v22, %v92_v35  ;;  %v99_v42 = vsel %vm97_vm1, %v90_v21, %v94_v34  ;;  %v4517_v17 = vld [vmem:[#allocation3 + $0x40] sm:$0xff] }
  0xa8   :  { %v114_v43 = vmul.f32 %v4466_v28, %v104_v40  ;;  %v118_v44 = vmul.f32 %v4468_v29, %v105_v39  ;;  %v117_v45 = vmul.f32 %v4470_v30, %v98_v41  ;;  %v121_v46 = vmul.f32 %v4472_v31, %v99_v42  ;;  %555 = vperm.xlu0 %4052, %v77_v33   ;;  %v4536_v42 = vld [vmem:[#allocation3 + $0xa8] sm:$0xff] }
  0xa9   :  { %560 = vperm.xlu1 %4053, %v78_v38  }
  0xaa   :  { %v133_v47 = vpop.permute.xlu1 %132  ;;  %v131_v48 = vpop.permute.xlu0 %130  ;;  %v3679_v49 = vpack.c.bf16 %v118_v44, %v114_v43  ;;  %v3713_v50 = vpack.c.bf16 %v121_v46, %v117_v45  ;;  %v4538_v43 = vld [vmem:[#allocation3 + $0x88] sm:$0xff] }
  0xac   :  { %3680 = vmatpush1.bf16.msra.mxu0 %v3679_v49  ;;  %3714 = vmatprep.subr.bf16.mxu1 %v3713_v50 }
  0xad   :  { %3716 = vmatpush1.bf16.msra.mxu1 %v3715_v51 }
  0xae   :  { %v137_v54 = vpop.permute.xlu1 %136  ;;  %v135_v55 = vpop.permute.xlu0 %134 }
  0xaf   :  { %v152_v56 = vsel %vm146_vm2, %v133_v47, %v137_v54  ;;  %v151_v57 = vsel %vm146_vm2, %v131_v48, %v135_v55 }
  0xb0   :  { %v168_v58 = vmul.f32 %v4495_v52, %v152_v56  ;;  %v164_v59 = vmul.f32 %v4497_v53, %v151_v57  ;;  %v4550_v57 = vld [vmem:[#allocation3 + $0x90] sm:$0xff] }
  0xb2   :  { %v141_v60 = vpop.permute.xlu1 %140  ;;  %v139_v61 = vpop.permute.xlu0 %138  ;;  %v3681_v62 = vpack.c.bf16 %v168_v58, %v164_v59  ;;  %v4554_v59 = vld [vmem:[#allocation3 + $0xa0] sm:$0xff] }
  0xb3   :  { %v150_v10 = vsel %vm146_vm2, %v137_v54, %v141_v60  ;;  %v149_v12 = vsel %vm146_vm2, %v135_v55, %v139_v61  ;;  %v4546_v55 = vld [vmem:[#allocation3 + $0xb0] sm:$0xff] }
  0xb4   :  { %3682 = vmatprep.subr.bf16.mxu0 %v3681_v62  ;;  %v169_v19 = vmul.f32 %v4505_v63, %v150_v10  ;;  %v165_v20 = vmul.f32 %v4509_v11, %v149_v12  ;;  %v4560_v62 = vld [vmem:[#allocation3 + $0x98] sm:$0xff] }
  0xb6   :  { %v145_v21 = vpop.permute.xlu1 %144  ;;  %v143_v22 = vpop.permute.xlu0 %142  ;;  %v3719_v41 = vpack.c.bf16 %v169_v19, %v165_v20 }
  0xb7   :  { %v148_v23 = vsel %vm146_vm2, %v141_v60, %v145_v21  ;;  %v154_v24 = vsel %vm146_vm2, %v145_v21, %v133_v47  ;;  %v147_v25 = vsel %vm146_vm2, %v139_v61, %v143_v22  ;;  %v153_v32 = vsel %vm146_vm2, %v143_v22, %v131_v48  ;;  %v4556_v60 = vld [vmem:[#allocation3 + $0xb8] sm:$0xff]  ;;  %v4558_v61 = vld [vmem:[#allocation3 + $0x80] sm:$0xff] }
  0xb8   :  { %v167_v33 = vmul.f32 %v4513_v13, %v154_v24  ;;  %v170_v34 = vmul.f32 %v4515_v16, %v148_v23  ;;  %v163_v35 = vmul.f32 %v4517_v17, %v153_v32  ;;  %v166_v36 = vmul.f32 %v4519_v18, %v147_v25 }
  0xba   :  { %v182_v37 = vpop.permute.xlu1 %181  ;;  %v180_v38 = vpop.permute.xlu0 %179  ;;  %v3683_v39 = vpack.c.bf16 %v167_v33, %v163_v35  ;;  %v3717_v40 = vpack.c.bf16 %v170_v34, %v166_v36 }
  0xbc   :  { %3684 = vmatpush1.bf16.msra.mxu0 %v3683_v39  ;;  %3718 = vmatprep.subr.bf16.mxu1 %v3717_v40 }
  0xbd   :  { %3720 = vmatpush1.bf16.msra.mxu1 %v3719_v41 }
  0xbe   :  { %v186_v44 = vpop.permute.xlu1 %185  ;;  %v184_v45 = vpop.permute.xlu0 %183 }
  0xbf   :  { %v201_v46 = vsel %vm195_vm3, %v182_v37, %v186_v44  ;;  %v200_v47 = vsel %vm195_vm3, %v180_v38, %v184_v45 }
  0xc0   :  { %v217_v48 = vmul.f32 %v4536_v42, %v201_v46  ;;  %v213_v49 = vmul.f32 %v4538_v43, %v200_v47 }
  0xc2   :  { %v190_v50 = vpop.permute.xlu1 %189  ;;  %v188_v51 = vpop.permute.xlu0 %187  ;;  %v3685_v54 = vpack.c.bf16 %v217_v48, %v213_v49 }
  0xc3   :  { %v199_v56 = vsel %vm195_vm3, %v186_v44, %v190_v50  ;;  %v198_v58 = vsel %vm195_vm3, %v184_v45, %v188_v51 }
  0xc4   :  { %3686 = vmatprep.subr.bf16.mxu0 %v3685_v54  ;;  %v218_v10 = vmul.f32 %v4546_v55, %v199_v56  ;;  %v214_v12 = vmul.f32 %v4550_v57, %v198_v58  ;;  %v4587_v56 = vld [vmem:[#allocation3 + $0xf0] sm:$0xff] }
  0xc6   :  { %v194_v19 = vpop.permute.xlu1 %193  ;;  %v192_v20 = vpop.permute.xlu0 %191  ;;  %v3723_v41 = vpack.c.bf16 %v218_v10, %v214_v12  ;;  %v4591_v10 = vld [vmem:[#allocation3 + $0xd0] sm:$0xff] }
  0xc7   :  { %v197_v21 = vsel %vm195_vm3, %v190_v50, %v194_v19  ;;  %v203_v22 = vsel %vm195_vm3, %v194_v19, %v182_v37  ;;  %v196_v23 = vsel %vm195_vm3, %v188_v51, %v192_v20  ;;  %v202_v24 = vsel %vm195_vm3, %v192_v20, %v180_v38  ;;  %v4577_v37 = vld [vmem:[#allocation3 + $0xe8] sm:$0xff]  ;;  %6890 = vst [vmem:[#allocation12_spill] sm:$0xff] %v4591_v10  ;;  %v4595_v19 = vld [vmem:[#allocation3 + $0xe0] sm:$0xff]  ;;  %v4597_v20 = vld [vmem:[#allocation3 + $0xf8] sm:$0xff] }
  0xc8   :  { %v216_v25 = vmul.f32 %v4554_v59, %v203_v22  ;;  %v219_v32 = vmul.f32 %v4556_v60, %v197_v21  ;;  %v212_v33 = vmul.f32 %v4558_v61, %v202_v24  ;;  %v215_v34 = vmul.f32 %v4560_v62, %v196_v23  ;;  %v4579_v38 = vld [vmem:[#allocation3 + $0xc8] sm:$0xff]  ;;  %v4599_v21 = vld [vmem:[#allocation3 + $0xc0] sm:$0xff]  ;;  %v4601_v22 = vld [vmem:[#allocation3 + $0xd8] sm:$0xff] }
  0xca   :  { %v231_v35 = vpop.permute.xlu1 %230  ;;  %v229_v36 = vpop.permute.xlu0 %228  ;;  %v3687_v39 = vpack.c.bf16 %v216_v25, %v212_v33  ;;  %v3721_v40 = vpack.c.bf16 %v219_v32, %v215_v34 }
  0xcc   :  { %3688 = vmatpush1.bf16.msra.mxu0 %v3687_v39  ;;  %3722 = vmatprep.subr.bf16.mxu1 %v3721_v40 }
  0xcd   :  { %3724 = vmatpush1.bf16.msra.mxu1 %v3723_v41 }
  0xce   :  { %v235_v44 = vpop.permute.xlu1 %234  ;;  %v233_v45 = vpop.permute.xlu0 %232 }
  0xcf   :  { %v250_v46 = vsel %vm244_vm4, %v231_v35, %v235_v44  ;;  %v249_v47 = vsel %vm244_vm4, %v229_v36, %v233_v45 }
  0xd0   :  { %v266_v48 = vmul.f32 %v4577_v37, %v250_v46  ;;  %v262_v49 = vmul.f32 %v4579_v38, %v249_v47  ;;  %v3693_v47 = vpack.c.bf16 %v4288_v2, %v4274_v0  ;;  %v3731_v0 = vpack.c.bf16 %v4302_v4, %v4307_v5 }
  0xd2   :  { %v239_v50 = vpop.permute.xlu1 %238  ;;  %v237_v51 = vpop.permute.xlu0 %236  ;;  %v3689_v54 = vpack.c.bf16 %v266_v48, %v262_v49 }
  0xd3   :  { %v248_v58 = vsel %vm244_vm4, %v235_v44, %v239_v50  ;;  %v247_v12 = vsel %vm244_vm4, %v233_v45, %v237_v51 }
  0xd4   :  { %3690 = vmatprep.subr.bf16.mxu0 %v3689_v54  ;;  %v267_v23 = vmul.f32 %v4587_v56, %v248_v58  ;;  %v263_v24 = vmul.f32 %v4591_v10, %v247_v12  ;;  %v4626_v12 = vld [vmem:[#allocation3 + $0x160] sm:$0xff] }
  0xd5   :  { %6891 = vst [vmem:[#allocation13_spill] sm:$0xff] %v4626_v12 }
  0xd6   :  { %v243_v25 = vpop.permute.xlu1 %242  ;;  %v241_v32 = vpop.permute.xlu0 %240  ;;  %v3727_v54 = vpack.c.bf16 %v267_v23, %v263_v24 }
  0xd7   :  { %v246_v33 = vsel %vm244_vm4, %v239_v50, %v243_v25  ;;  %v252_v34 = vsel %vm244_vm4, %v243_v25, %v231_v35  ;;  %v245_v39 = vsel %vm244_vm4, %v237_v51, %v241_v32  ;;  %v251_v40 = vsel %vm244_vm4, %v241_v32, %v229_v36 }
  0xd8   :  { %v265_v41 = vmul.f32 %v4595_v19, %v252_v34  ;;  %v268_v44 = vmul.f32 %v4597_v20, %v246_v33  ;;  %v261_v45 = vmul.f32 %v4599_v21, %v251_v40  ;;  %v264_v46 = vmul.f32 %v4601_v22, %v245_v39  ;;  %v4646_v40 = vld [vmem:[#allocation3 + $0x170] sm:$0xff] }
  0xd9   :  { %v3729_v51 = vpack.c.bf16 %v4316_v6, %v4321_v7  ;;  %v3695_v36 = vpack.c.bf16 %v4293_v3, %v4279_v1  ;;  %v4630_v7 = vld [vmem:[#allocation3 + $0x140] sm:$0xff]  ;;  %v4634_v1 = vld [vmem:[#allocation3 + $0x168] sm:$0xff]  ;;  %6895 = vst [vmem:[#allocation17_spill] sm:$0xff] %v4646_v40 }
  0xda   :  { %v288_v48 = vpop.permute.xlu1 %287  ;;  %v286_v49 = vpop.permute.xlu0 %285  ;;  %v3691_v35 = vpack.c.bf16 %v265_v41, %v261_v45  ;;  %v3725_v50 = vpack.c.bf16 %v268_v44, %v264_v46  ;;  %6892 = vst [vmem:[#allocation14_spill] sm:$0xff] %v4630_v7  ;;  %6893 = vst [vmem:[#allocation15_spill] sm:$0xff] %v4634_v1  ;;  %v4636_v3 = vld [vmem:[#allocation3 + $0x148] sm:$0xff]  ;;  %v4648_v41 = vld [vmem:[#allocation3 + $0x178] sm:$0xff] }
  0xdb   :  { %6894 = vst [vmem:[#allocation16_spill] sm:$0xff] %v4636_v3  ;;  %6896 = vst [vmem:[#allocation18_spill] sm:$0xff] %v4648_v41  ;;  %v4650_v44 = vld [vmem:[#allocation3 + $0x150] sm:$0xff]  ;;  %v4652_v45 = vld [vmem:[#allocation3 + $0x158] sm:$0xff] }
  0xdc   :  { %3692 = vmatpush1.bf16.msra.mxu0 %v3691_v35  ;;  %3726 = vmatprep.subr.bf16.mxu1 %v3725_v50  ;;  %6897 = vst [vmem:[#allocation19_spill] sm:$0xff] %v4650_v44  ;;  %6898 = vst [vmem:[#allocation20_spill] sm:$0xff] %v4652_v45 }
  0xdd   :  { %3728 = vmatpush1.bf16.msra.mxu1 %v3727_v54  ;;  %3694 = vmatprep.subr.bf16.mxu0 %v3693_v47 }
  0xde   :  { %v292_v2 = vpop.permute.xlu1 %291  ;;  %v290_v58 = vpop.permute.xlu0 %289  ;;  %3730 = vmatprep.subr.bf16.mxu1 %v3729_v51 }
  0xdf   :  { %v307_v6 = vsel %vm301_vm5, %v288_v48, %v292_v2  ;;  %v306_v23 = vsel %vm301_vm5, %v286_v49, %v290_v58 }
  0xe0   :  { %3696 = vmatpush1.bf16.msra.mxu0 %v3695_v36  ;;  %v322_v4 = vmul.f32 %v4626_v12, %v307_v6  ;;  %v318_v5 = vmul.f32 %v4630_v7, %v306_v23 }
  0xe1   :  { %3732 = vmatpush1.bf16.msra.mxu1 %v3731_v0 }
  0xe2   :  { %v296_v24 = vpop.permute.xlu1 %295  ;;  %v294_v25 = vpop.permute.xlu0 %293  ;;  %v3699_v50 = vpack.c.bf16 %v322_v4, %v318_v5 }
  0xe3   :  { %v305_v32 = vsel %vm301_vm5, %v292_v2, %v296_v24  ;;  %v304_v33 = vsel %vm301_vm5, %v290_v58, %v294_v25 }
  0xe4   :  { %v323_v34 = vmul.f32 %v4634_v1, %v305_v32  ;;  %v319_v39 = vmul.f32 %v4636_v3, %v304_v33  ;;  %v4667_v32 = vld [vmem:[#allocation3 + $0x1a0] sm:$0xff] }
  0xe5   :  { %6899 = vst [vmem:[#allocation21_spill] sm:$0xff] %v4667_v32 }
  0xe6   :  { %v300_v46 = vpop.permute.xlu1 %299  ;;  %v298_v47 = vpop.permute.xlu0 %297  ;;  %v3697_v35 = vpack.c.bf16 %v323_v34, %v319_v39  ;;  %v4671_v34 = vld [vmem:[#allocation3 + $0x180] sm:$0xff] }
  0xe7   :  { %v303_v51 = vsel %vm301_vm5, %v296_v24, %v300_v46  ;;  %v309_v54 = vsel %vm301_vm5, %v300_v46, %v288_v48  ;;  %v302_v36 = vsel %vm301_vm5, %v294_v25, %v298_v47  ;;  %v308_v0 = vsel %vm301_vm5, %v298_v47, %v286_v49  ;;  %6900 = vst [vmem:[#allocation22_spill] sm:$0xff] %v4671_v34  ;;  %v4675_v46 = vld [vmem:[#allocation3 + $0x1a8] sm:$0xff] }
  0xe8   :  { %v324_v2 = vmul.f32 %v4646_v40, %v303_v51  ;;  %v325_v58 = vmul.f32 %v4648_v41, %v309_v54  ;;  %v320_v6 = vmul.f32 %v4650_v44, %v302_v36  ;;  %v321_v23 = vmul.f32 %v4652_v45, %v308_v0  ;;  %3698 = vmatprep.subr.bf16.mxu0 %v3697_v35  ;;  %v4677_v47 = vld [vmem:[#allocation3 + $0x188] sm:$0xff] }
  0xe9   :  { %3700 = vmatpush1.bf16.msra.mxu0 %v3699_v50  ;;  %6901 = vst [vmem:[#allocation23_spill] sm:$0xff] %v4675_v46  ;;  %6902 = vst [vmem:[#allocation24_spill] sm:$0xff] %v4677_v47 }
  0xea   :  { %v337_v4 = vpop.permute.xlu1 %336  ;;  %v335_v5 = vpop.permute.xlu0 %334  ;;  %v3733_v24 = vpack.c.bf16 %v325_v58, %v321_v23  ;;  %v3735_v48 = vpack.c.bf16 %v324_v2, %v320_v6  ;;  %v4687_v6 = vld [vmem:[#allocation3 + $0x1b0] sm:$0xff]  ;;  %v4689_v23 = vld [vmem:[#allocation3 + $0x1b8] sm:$0xff] }
  0xeb   :  { %6903 = vst [vmem:[#allocation25_spill] sm:$0xff] %v4687_v6  ;;  %6904 = vst [vmem:[#allocation26_spill] sm:$0xff] %v4689_v23 }
  0xec   :  { %3734 = vmatprep.subr.bf16.mxu1 %v3733_v24  ;;  %v4691_v24 = vld [vmem:[#allocation3 + $0x190] sm:$0xff] }
  0xed   :  { %3736 = vmatpush1.bf16.msra.mxu1 %v3735_v48  ;;  %6905 = vst [vmem:[#allocation27_spill] sm:$0xff] %v4691_v24  ;;  %v4693_v48 = vld [vmem:[#allocation3 + $0x198] sm:$0xff] }
  0xee   :  { %v341_v25 = vpop.permute.xlu1 %340  ;;  %v339_v49 = vpop.permute.xlu0 %338  ;;  %6906 = vst [vmem:[#allocation28_spill] sm:$0xff] %v4693_v48 }
  0xef   :  { %v356_v33 = vsel %vm350_vm6, %v337_v4, %v341_v25  ;;  %v355_v39 = vsel %vm350_vm6, %v335_v5, %v339_v49 }
  0xf0   :  { %v371_v35 = vmul.f32 %v4667_v32, %v356_v33  ;;  %v367_v50 = vmul.f32 %v4671_v34, %v355_v39 }
  0xf2   :  { %v345_v51 = vpop.permute.xlu1 %344  ;;  %v343_v54 = vpop.permute.xlu0 %342  ;;  %v3703_v32 = vpack.c.bf16 %v371_v35, %v367_v50 }
  0xf3   :  { %v354_v36 = vsel %vm350_vm6, %v341_v25, %v345_v51  ;;  %v353_v0 = vsel %vm350_vm6, %v339_v49, %v343_v54 }
  0xf4   :  { %v372_v2 = vmul.f32 %v4675_v46, %v354_v36  ;;  %v368_v58 = vmul.f32 %v4677_v47, %v353_v0 }
  0xf6   :  { %v349_v33 = vpop.permute.xlu1 %348  ;;  %v347_v39 = vpop.permute.xlu0 %346  ;;  %v3701_v8 = vpack.c.bf16 %v372_v2, %v368_v58  ;;  %v4708_v58 = vld [vmem:[#allocation3 + $0x1e0] sm:$0xff] }
  0xf7   :  { %v352_v25 = vsel %vm350_vm6, %v345_v51, %v349_v33  ;;  %v358_v49 = vsel %vm350_vm6, %v349_v33, %v337_v4  ;;  %v351_v36 = vsel %vm350_vm6, %v343_v54, %v347_v39  ;;  %v357_v0 = vsel %vm350_vm6, %v347_v39, %v335_v5  ;;  %6907 = vst [vmem:[#allocation29_spill] sm:$0xff] %v4708_v58  ;;  %v4712_v39 = vld [vmem:[#allocation3 + $0x1c0] sm:$0xff] }
  0xf8   :  { %v373_v46 = vmul.f32 %v4687_v6, %v352_v25  ;;  %v374_v47 = vmul.f32 %v4689_v23, %v358_v49  ;;  %v369_v34 = vmul.f32 %v4691_v24, %v351_v36  ;;  %v370_v35 = vmul.f32 %v4693_v48, %v357_v0  ;;  %3702 = vmatprep.subr.bf16.mxu0 %v3701_v8  ;;  %v4730_v23 = vld [vmem:[#allocation3 + $0x1f8] sm:$0xff]  ;;  %v4732_v6 = vld [vmem:[#allocation3 + $0x1d0] sm:$0xff] }
  0xf9   :  { %3704 = vmatpush1.bf16.msra.mxu0 %v3703_v32  ;;  %6908 = vst [vmem:[#allocation30_spill] sm:$0xff] %v4712_v39  ;;  %v4716_v32 = vld [vmem:[#allocation3 + $0x1e8] sm:$0xff]  ;;  %6912 = vst [vmem:[#allocation34_spill] sm:$0xff] %v4730_v23 }
  0xfa   :  { %v386_v50 = vpop.permute.xlu1 %385  ;;  %v384_v51 = vpop.permute.xlu0 %383  ;;  %v3737_v2 = vpack.c.bf16 %v374_v47, %v370_v35  ;;  %v3739_v4 = vpack.c.bf16 %v373_v46, %v369_v34  ;;  %6909 = vst [vmem:[#allocation31_spill] sm:$0xff] %v4716_v32  ;;  %v4718_v47 = vld [vmem:[#allocation3 + $0x1c8] sm:$0xff]  ;;  %6913 = vst [vmem:[#allocation35_spill] sm:$0xff] %v4732_v6 }
  0xfb   :  { %6910 = vst [vmem:[#allocation32_spill] sm:$0xff] %v4718_v47 }
  0xfc   :  { %3738 = vmatprep.subr.bf16.mxu1 %v3737_v2 }
  0xfd   :  { %3740 = vmatpush1.bf16.msra.mxu1 %v3739_v4  ;;  %v4728_v4 = vld [vmem:[#allocation3 + $0x1f0] sm:$0xff] }
  0xfe   :  { %v390_v54 = vpop.permute.xlu1 %389  ;;  %v388_v5 = vpop.permute.xlu0 %387  ;;  %6911 = vst [vmem:[#allocation33_spill] sm:$0xff] %v4728_v4 }
  0xff   :  { %v405_v33 = vsel %vm399_vm7, %v386_v50, %v390_v54  ;;  %v404_v8 = vsel %vm399_vm7, %v384_v51, %v388_v5 }
 0x100   :  { %v420_v34 = vmul.f32 %v4708_v58, %v405_v33  ;;  %v416_v46 = vmul.f32 %v4712_v39, %v404_v8  ;;  %v4734_v33 = vld [vmem:[#allocation3 + $0x1d8] sm:$0xff] }
 0x101   :  { %6914 = vst [vmem:[#allocation36_spill] sm:$0xff] %v4734_v33 }
 0x102   :  { %v394_v25 = vpop.permute.xlu1 %393  ;;  %v392_v49 = vpop.permute.xlu0 %391  ;;  %v3707_v48 = vpack.c.bf16 %v420_v34, %v416_v46 }
 0x103   :  { %v403_v36 = vsel %vm399_vm7, %v390_v54, %v394_v25  ;;  %v402_v0 = vsel %vm399_vm7, %v388_v5, %v392_v49 }
 0x104   :  { %v421_v35 = vmul.f32 %v4716_v32, %v403_v36  ;;  %v417_v2 = vmul.f32 %v4718_v47, %v402_v0 }
 0x106   :  { %v398_v8 = vpop.permute.xlu1 %397  ;;  %v396_v58 = vpop.permute.xlu0 %395  ;;  %v3705_v39 = vpack.c.bf16 %v421_v35, %v417_v2 }
 0x107   :  { %v401_v54 = vsel %vm399_vm7, %v394_v25, %v398_v8  ;;  %v407_v5 = vsel %vm399_vm7, %v398_v8, %v386_v50  ;;  %v400_v36 = vsel %vm399_vm7, %v392_v49, %v396_v58  ;;  %v406_v0 = vsel %vm399_vm7, %v396_v58, %v384_v51  ;;  %v4749_v58 = vld [vmem:[#allocation3 + $0x220] sm:$0xff] }
 0x108   :  { %v422_v32 = vmul.f32 %v4728_v4, %v401_v54  ;;  %v423_v47 = vmul.f32 %v4730_v23, %v407_v5  ;;  %v418_v24 = vmul.f32 %v4732_v6, %v400_v36  ;;  %v419_v34 = vmul.f32 %v4734_v33, %v406_v0  ;;  %3706 = vmatprep.subr.bf16.mxu0 %v3705_v39  ;;  %v4753_v8 = vld [vmem:[#allocation3 + $0x200] sm:$0xff]  ;;  %v4757_v39 = vld [vmem:[#allocation3 + $0x228] sm:$0xff]  ;;  %v4771_v23 = vld [vmem:[#allocation3 + $0x238] sm:$0xff] }
 0x109   :  { %3708 = vmatpush1.bf16.msra.mxu0 %v3707_v48  ;;  %6915 = vst [vmem:[#allocation37_spill] sm:$0xff] %v4749_v58  ;;  %6916 = vst [vmem:[#allocation38_spill] sm:$0xff] %v4753_v8  ;;  %v4773_v4 = vld [vmem:[#allocation3 + $0x210] sm:$0xff] }
 0x10a   :  { %v435_v46 = vpop.permute.xlu1 %434  ;;  %v433_v25 = vpop.permute.xlu0 %432  ;;  %v3741_v35 = vpack.c.bf16 %v423_v47, %v419_v34  ;;  %v3743_v50 = vpack.c.bf16 %v422_v32, %v418_v24  ;;  %6917 = vst [vmem:[#allocation39_spill] sm:$0xff] %v4757_v39  ;;  %v4759_v47 = vld [vmem:[#allocation3 + $0x208] sm:$0xff]  ;;  %6920 = vst [vmem:[#allocation42_spill] sm:$0xff] %v4771_v23 }
 0x10b   :  { %6918 = vst [vmem:[#allocation40_spill] sm:$0xff] %v4759_v47  ;;  %6921 = vst [vmem:[#allocation43_spill] sm:$0xff] %v4773_v4 }
 0x10c   :  { %3742 = vmatprep.subr.bf16.mxu1 %v3741_v35 }
 0x10d   :  { %3744 = vmatpush1.bf16.msra.mxu1 %v3743_v50  ;;  %v4769_v50 = vld [vmem:[#allocation3 + $0x230] sm:$0xff] }
 0x10e   :  { %v439_v49 = vpop.permute.xlu1 %438  ;;  %v437_v51 = vpop.permute.xlu0 %436  ;;  %6919 = vst [vmem:[#allocation41_spill] sm:$0xff] %v4769_v50 }
 0x10f   :  { %v454_v2 = vsel %vm448_vm8, %v435_v46, %v439_v49  ;;  %v453_v48 = vsel %vm448_vm8, %v433_v25, %v437_v51 }
 0x110   :  { %v469_v24 = vmul.f32 %v4749_v58, %v454_v2  ;;  %v465_v32 = vmul.f32 %v4753_v8, %v453_v48  ;;  %v4775_v2 = vld [vmem:[#allocation3 + $0x218] sm:$0xff] }
 0x111   :  { %6922 = vst [vmem:[#allocation44_spill] sm:$0xff] %v4775_v2 }
 0x112   :  { %v443_v54 = vpop.permute.xlu1 %442  ;;  %v441_v5 = vpop.permute.xlu0 %440  ;;  %v3711_v33 = vpack.c.bf16 %v469_v24, %v465_v32 }
 0x113   :  { %v452_v36 = vsel %vm448_vm8, %v439_v49, %v443_v54  ;;  %v451_v0 = vsel %vm448_vm8, %v437_v51, %v441_v5 }
 0x114   :  { %v470_v34 = vmul.f32 %v4757_v39, %v452_v36  ;;  %v466_v35 = vmul.f32 %v4759_v47, %v451_v0 }
 0x116   :  { %v447_v48 = vpop.permute.xlu1 %446  ;;  %v445_v58 = vpop.permute.xlu0 %444  ;;  %v3709_v8 = vpack.c.bf16 %v470_v34, %v466_v35 }
 0x117   :  { %v450_v49 = vsel %vm448_vm8, %v443_v54, %v447_v48  ;;  %v456_v51 = vsel %vm448_vm8, %v447_v48, %v435_v46  ;;  %v449_v36 = vsel %vm448_vm8, %v441_v5, %v445_v58  ;;  %v455_v0 = vsel %vm448_vm8, %v445_v58, %v433_v25  ;;  %v73_v46 = vld [vmem:[%s6758_s2] sm:$0xff]  ;;  %v76_v25 = vld [vmem:[%s6758_s2 + $0x18] sm:$0xff]  ;;  %v75_v58 = vld [vmem:[%s6758_s2 + $0x10] sm:$0xff] }
 0x118   :  { %v471_v39 = vmul.f32 %v4769_v50, %v450_v49  ;;  %v472_v47 = vmul.f32 %v4771_v23, %v456_v51  ;;  %v467_v6 = vmul.f32 %v4773_v4, %v449_v36  ;;  %v468_v24 = vmul.f32 %v4775_v2, %v455_v0  ;;  %3710 = vmatprep.subr.bf16.mxu0 %v3709_v8 }
 0x119   :  { %3712 = vmatpush1.bf16.msra.mxu0 %v3711_v33 }
 0x11a   :  { %v3745_v32 = vpack.c.bf16 %v472_v47, %v468_v24  ;;  %v3747_v54 = vpack.c.bf16 %v471_v39, %v467_v6 }
 0x11c   :  { %635 = vmatmul.mubr.f32.vlgmr.msra.gmra.mrb[0].mxu0 %v73_v46  ;;  %3746 = vmatprep.subr.bf16.mxu1 %v3745_v32 }
 0x11d   :  { %3748 = vmatpush1.bf16.msra.mxu1 %v3747_v54  ;;  %3626 = vmatprep.mubr.msk.f32.mxu0 %vm563_vm0, %v76_v25 }
 0x120   :  { %641 = vmatmul.mubr.f32.gmra.mrb[2].mxu0 %v75_v58  ;;  %712 = vmatmul.mubr.f32.vlgmr.msra.gmra.mrb[0].mxu1 %v73_v46 }
 0x121   :  { %3628 = vmatprep.mubr.msk.f32.mxu1 %vm563_vm0, %v76_v25 }
 0x124   :  { %718 = vmatmul.mubr.f32.gmra.mrb[2].mxu1 %v75_v58 }
 0x127   :  { %v556_v33 = vpop.permute.xlu0 %555 }
 0x128   :  { %v561_v47 = vpop.permute.xlu1 %560 }
 0x1ef   :  { %v636_v6 = vpop.f32.mrb[0].mxu0 }
 0x1f0   :  { %v637_v8 = vadd.f32 %v636_v6, %v556_v33  ;;  %v638_v39 = vpop.f32.mrb[1].mxu0 }
 0x1f2   :  { %v4800_v5 = vmax.f32 %v637_v8, 0.0  ;;  %v639_v8 = vadd.f32 %v638_v39, %v556_v33 }
 0x1f3   :  { %v642_v34 = vpop.f32.mrb[2].mxu0  ;;  %v713_v35 = vpop.f32.mrb[0].mxu1 }
 0x1f4   :  { %6923 = vst [vmem:[#allocation45_spill] sm:$0xff] %v4800_v5  ;;  %v643_v48 = vadd.f32 %v642_v34, %v561_v47  ;;  %v714_v49 = vadd.f32 %v713_v35, %v556_v33  ;;  %v644_v51 = vpop.f32.mrb[3].mxu0  ;;  %v715_v36 = vpop.f32.mrb[1].mxu1  ;;  %740 = vrot.lane.b32.xlu1 %v4800_v5, %s4180_s24  ;;  %v4874_v34 = vmax.f32 %v639_v8, 0.0 }
 0x1f5   :  { %v645_v35 = vadd.f32 %v644_v51, %v561_v47 }
 0x1f6   :  { %v4804_v0 = vmax.f32 %v643_v48, 0.0  ;;  %v4806_v24 = vmax.f32 %v714_v49, 0.0  ;;  %6927 = vst [vmem:[#allocation49_spill] sm:$0xff] %v4874_v34  ;;  %v716_v48 = vadd.f32 %v715_v36, %v556_v33  ;;  %v3630_v36 = vld [vmem:[%s6758_s2 + $0x28] sm:$0xff] }
 0x1f7   :  { %v719_v46 = vpop.f32.mrb[2].mxu1  ;;  %v4880_v49 = vmax.f32 %v645_v35, 0.0  ;;  %3635 = vmatprep.mubr.msk.f32.mxu0 %vm563_vm0, %v3630_v36  ;;  %3637 = vmatprep.mubr.msk.f32.mxu1 %vm563_vm0, %v3630_v36  ;;  %v3633_v35 = vld [vmem:[%s6759_s3 + $0x10] sm:$0xff]  ;;  %v3634_v36 = vld [vmem:[%s6759_s3 + $0x18] sm:$0xff] }
 0x1f8   :  { %6924 = vst [vmem:[#allocation46_spill] sm:$0xff] %v4804_v0  ;;  %6925 = vst [vmem:[#allocation47_spill] sm:$0xff] %v4806_v24  ;;  %v720_v32 = vadd.f32 %v719_v46, %v561_v47  ;;  %v721_v54 = vpop.f32.mrb[3].mxu1  ;;  %742 = vrot.lane.b32.xlu0 %v4804_v0, %s4180_s24  ;;  %748 = vrot.lane.b32.xlu1 %v4806_v24, %s4180_s24  ;;  %v4882_v46 = vmax.f32 %v716_v48, 0.0 }
 0x1f9   :  { %6928 = vst [vmem:[#allocation50_spill] sm:$0xff] %v4880_v49  ;;  %v722_v39 = vadd.f32 %v721_v54, %v561_v47 }
 0x1fa   :  { %v4814_v58 = vmax.f32 %v720_v32, 0.0  ;;  %6929 = vst [vmem:[#allocation51_spill] sm:$0xff] %v4882_v46 }
 0x1fb   :  { %v4888_v32 = vmax.f32 %v722_v39, 0.0 }
 0x1fc   :  { %6926 = vst [vmem:[#allocation48_spill] sm:$0xff] %v4814_v58  ;;  %750 = vrot.lane.b32.xlu0 %v4814_v58, %s4180_s24  ;;  %788 = vrot.lane.b32.xlu1 %v4800_v5, %s4178_s1 }
 0x1fd   :  { %6930 = vst [vmem:[#allocation52_spill] sm:$0xff] %v4888_v32 }
 0x200   :  { %790 = vrot.lane.b32.xlu0 %v4804_v0, %s4178_s1  ;;  %796 = vrot.lane.b32.xlu1 %v4806_v24, %s4178_s1 }
 0x204   :  { %798 = vrot.lane.b32.xlu0 %v4814_v58, %s4178_s1  ;;  %836 = vrot.lane.b32.xlu1 %v4800_v5, %s4181_s17 }
 0x208   :  { %838 = vrot.lane.b32.xlu0 %v4804_v0, %s4181_s17  ;;  %844 = vrot.lane.b32.xlu1 %v4806_v24, %s4181_s17 }
 0x20c   :  { %846 = vrot.lane.b32.xlu0 %v4814_v58, %s4181_s17  ;;  %884 = vrot.lane.b32.xlu1 %v4800_v5, %s4179_s14 }
 0x210   :  { %886 = vrot.lane.b32.xlu0 %v4804_v0, %s4179_s14  ;;  %892 = vrot.lane.b32.xlu1 %v4806_v24, %s4179_s14 }
 0x214   :  { %894 = vrot.lane.b32.xlu0 %v4814_v58, %s4179_s14  ;;  %940 = vrot.lane.b32.xlu1 %v4800_v5, %s4182_s18 }
 0x218   :  { %942 = vrot.lane.b32.xlu0 %v4804_v0, %s4182_s18  ;;  %948 = vrot.lane.b32.xlu1 %v4806_v24, %s4182_s18 }
 0x21c   :  { %950 = vrot.lane.b32.xlu0 %v4814_v58, %s4182_s18  ;;  %988 = vrot.lane.b32.xlu1 %v4800_v5, %s4183_s19 }
 0x220   :  { %990 = vrot.lane.b32.xlu0 %v4804_v0, %s4183_s19  ;;  %996 = vrot.lane.b32.xlu1 %v4806_v24, %s4183_s19 }
 0x224   :  { %998 = vrot.lane.b32.xlu0 %v4814_v58, %s4183_s19  ;;  %1036 = vrot.lane.b32.xlu1 %v4800_v5, %s4184_s20 }
 0x228   :  { %1038 = vrot.lane.b32.xlu0 %v4804_v0, %s4184_s20  ;;  %1044 = vrot.lane.b32.xlu1 %v4806_v24, %s4184_s20 }
 0x22c   :  { %1046 = vrot.lane.b32.xlu0 %v4814_v58, %s4184_s20  ;;  %1084 = vrot.lane.b32.xlu1 %v4800_v5, %s4185_s21 }
 0x230   :  { %1086 = vrot.lane.b32.xlu0 %v4804_v0, %s4185_s21  ;;  %1092 = vrot.lane.b32.xlu1 %v4806_v24, %s4185_s21 }
 0x234   :  { %1094 = vrot.lane.b32.xlu0 %v4814_v58, %s4185_s21  ;;  %744 = vrot.lane.b32.xlu1 %v4874_v34, %s4180_s24 }
 0x238   :  { %746 = vrot.lane.b32.xlu0 %v4880_v49, %s4180_s24  ;;  %752 = vrot.lane.b32.xlu1 %v4882_v46, %s4180_s24 }
 0x23c   :  { %754 = vrot.lane.b32.xlu0 %v4888_v32, %s4180_s24  ;;  %792 = vrot.lane.b32.xlu1 %v4874_v34, %s4178_s1 }
 0x240   :  { %794 = vrot.lane.b32.xlu0 %v4880_v49, %s4178_s1  ;;  %800 = vrot.lane.b32.xlu1 %v4882_v46, %s4178_s1 }
 0x244   :  { %802 = vrot.lane.b32.xlu0 %v4888_v32, %s4178_s1  ;;  %840 = vrot.lane.b32.xlu1 %v4874_v34, %s4181_s17 }
 0x248   :  { %842 = vrot.lane.b32.xlu0 %v4880_v49, %s4181_s17  ;;  %848 = vrot.lane.b32.xlu1 %v4882_v46, %s4181_s17 }
 0x24c   :  { %850 = vrot.lane.b32.xlu0 %v4888_v32, %s4181_s17  ;;  %888 = vrot.lane.b32.xlu1 %v4874_v34, %s4179_s14 }
 0x250   :  { %890 = vrot.lane.b32.xlu0 %v4880_v49, %s4179_s14  ;;  %896 = vrot.lane.b32.xlu1 %v4882_v46, %s4179_s14 }
 0x254   :  { %898 = vrot.lane.b32.xlu0 %v4888_v32, %s4179_s14  ;;  %944 = vrot.lane.b32.xlu1 %v4874_v34, %s4182_s18 }
 0x258   :  { %946 = vrot.lane.b32.xlu0 %v4880_v49, %s4182_s18  ;;  %952 = vrot.lane.b32.xlu1 %v4882_v46, %s4182_s18 }
 0x25c   :  { %954 = vrot.lane.b32.xlu0 %v4888_v32, %s4182_s18  ;;  %992 = vrot.lane.b32.xlu1 %v4874_v34, %s4183_s19 }
 0x260   :  { %994 = vrot.lane.b32.xlu0 %v4880_v49, %s4183_s19  ;;  %1000 = vrot.lane.b32.xlu1 %v4882_v46, %s4183_s19 }
 0x264   :  { %1002 = vrot.lane.b32.xlu0 %v4888_v32, %s4183_s19  ;;  %1040 = vrot.lane.b32.xlu1 %v4874_v34, %s4184_s20 }
 0x266   :  { %v741_v33 = vpop.permute.xlu1 %740 }
 0x268   :  { %1042 = vrot.lane.b32.xlu0 %v4880_v49, %s4184_s20  ;;  %1048 = vrot.lane.b32.xlu1 %v4882_v46, %s4184_s20 }
 0x26a   :  { %v743_v47 = vpop.permute.xlu0 %742  ;;  %v749_v51 = vpop.permute.xlu1 %748 }
 0x26c   :  { %1050 = vrot.lane.b32.xlu0 %v4888_v32, %s4184_s20  ;;  %1088 = vrot.lane.b32.xlu1 %v4874_v34, %s4185_s21 }
 0x26e   :  { %v751_v54 = vpop.permute.xlu0 %750  ;;  %v4947_v8 = vpop.permute.xlu1 %788 }
 0x270   :  { %1090 = vrot.lane.b32.xlu0 %v4880_v49, %s4185_s21  ;;  %1096 = vrot.lane.b32.xlu1 %v4882_v46, %s4185_s21 }
 0x272   :  { %v4956_v48 = vpop.permute.xlu0 %790  ;;  %v4958_v39 = vpop.permute.xlu1 %796 }
 0x274   :  { %1098 = vrot.lane.b32.xlu0 %v4888_v32, %s4185_s21  ;;  %1206 = vperm.xlu1 %4053, %v3633_v35  }
 0x276   :  { %v4965_v6 = vpop.permute.xlu0 %798  ;;  %v4967_v25 = vpop.permute.xlu1 %836 }
 0x278   :  { %1211 = vperm.xlu0 %4052, %v3634_v36  }
 0x27a   :  { %v4969_v23 = vpop.permute.xlu0 %838  ;;  %v4971_v50 = vpop.permute.xlu1 %844 }
 0x27e   :  { %v4973_v2 = vpop.permute.xlu0 %846  ;;  %v4975_v4 = vpop.permute.xlu1 %884 }
 0x282   :  { %v4977_v24 = vpop.permute.xlu0 %886  ;;  %v4979_v35 = vpop.permute.xlu1 %892 }
 0x286   :  { %v4981_v58 = vpop.permute.xlu0 %894  ;;  %v4983_v5 = vpop.permute.xlu1 %940 }
 0x287   :  { %6931 = vst [vmem:[#allocation53_spill] sm:$0xff] %v4983_v5 }
 0x28a   :  { %v4985_v0 = vpop.permute.xlu0 %942  ;;  %v4987_v41 = vpop.permute.xlu1 %948 }
 0x28b   :  { %6932 = vst [vmem:[#allocation54_spill] sm:$0xff] %v4985_v0 }
 0x28e   :  { %v4989_v36 = vpop.permute.xlu0 %950  ;;  %v4991_v40 = vpop.permute.xlu1 %988 }
 0x28f   :  { %6933 = vst [vmem:[#allocation55_spill] sm:$0xff] %v4989_v36  ;;  %6934 = vst [vmem:[#allocation56_spill] sm:$0xff] %v4991_v40 }
 0x292   :  { %v4993_v45 = vpop.permute.xlu0 %990  ;;  %v4995_v44 = vpop.permute.xlu1 %996 }
 0x293   :  { %6935 = vst [vmem:[#allocation57_spill] sm:$0xff] %v4993_v45  ;;  %6936 = vst [vmem:[#allocation58_spill] sm:$0xff] %v4995_v44 }
 0x296   :  { %v4997_v7 = vpop.permute.xlu0 %998  ;;  %v4999_v12 = vpop.permute.xlu1 %1036 }
 0x297   :  { %6937 = vst [vmem:[#allocation59_spill] sm:$0xff] %v4997_v7  ;;  %6938 = vst [vmem:[#allocation60_spill] sm:$0xff] %v4999_v12 }
 0x29a   :  { %v5001_v32 = vpop.permute.xlu0 %1038  ;;  %v5003_v46 = vpop.permute.xlu1 %1044 }
 0x29b   :  { %6939 = vst [vmem:[#allocation61_spill] sm:$0xff] %v5001_v32  ;;  %6940 = vst [vmem:[#allocation62_spill] sm:$0xff] %v5003_v46 }
 0x29e   :  { %v5005_v1 = vpop.permute.xlu0 %1046  ;;  %v5007_v3 = vpop.permute.xlu1 %1084 }
 0x29f   :  { %6941 = vst [vmem:[#allocation63_spill] sm:$0xff] %v5005_v1  ;;  %6942 = vst [vmem:[#allocation64_spill] sm:$0xff] %v5007_v3 }
 0x2a2   :  { %v5009_v5 = vpop.permute.xlu0 %1086  ;;  %v5011_v49 = vpop.permute.xlu1 %1092 }
 0x2a3   :  { %6943 = vst [vmem:[#allocation65_spill] sm:$0xff] %v5009_v5  ;;  %6944 = vst [vmem:[#allocation66_spill] sm:$0xff] %v5011_v49 }
 0x2a6   :  { %v5013_v40 = vpop.permute.xlu0 %1094  ;;  %v745_v45 = vpop.permute.xlu1 %744 }
 0x2a7   :  { %6945 = vst [vmem:[#allocation67_spill] sm:$0xff] %v5013_v40  ;;  %v760_v7 = vsel %vm97_vm1, %v741_v33, %v745_v45  ;;  %v758_v36 = vsel %vm97_vm1, %v745_v45, %v749_v51 }
 0x2a8   :  { %v773_v46 = vmul.f32 %v760_v7, %v4442_v14 }
 0x2aa   :  { %v747_v44 = vpop.permute.xlu0 %746  ;;  %v753_v12 = vpop.permute.xlu1 %752 }
 0x2ab   :  { %v761_v32 = vsel %vm97_vm1, %v743_v47, %v747_v44  ;;  %v759_v3 = vsel %vm97_vm1, %v747_v44, %v751_v54  ;;  %v756_v49 = vsel %vm97_vm1, %v749_v51, %v753_v12  ;;  %v762_v40 = vsel %vm97_vm1, %v753_v12, %v741_v33 }
 0x2ac   :  { %v777_v5 = vmul.f32 %v761_v32, %v4444_v15  ;;  %v778_v10 = vmul.f32 %v759_v3, %v4460_v27  ;;  %v772_v7 = vmul.f32 %v762_v40, %v4466_v28  ;;  %v775_v44 = vmul.f32 %v756_v49, %v4470_v30 }
 0x2ad   :  { %v774_v27 = vmul.f32 %v758_v36, %v4458_v26 }
 0x2ae   :  { %v755_v1 = vpop.permute.xlu0 %754  ;;  %v793_v34 = vpop.permute.xlu1 %792  ;;  %v3749_v0 = vpack.c.bf16 %v777_v5, %v773_v46 }
 0x2af   :  { %v757_v14 = vsel %vm97_vm1, %v751_v54, %v755_v1  ;;  %v763_v15 = vsel %vm97_vm1, %v755_v1, %v743_v47  ;;  %v808_v45 = vsel %vm146_vm2, %v4947_v8, %v793_v34  ;;  %v3787_v30 = vpack.c.bf16 %v778_v10, %v774_v27 }
 0x2b0   :  { %v776_v12 = vmul.f32 %v763_v15, %v4468_v29  ;;  %v779_v32 = vmul.f32 %v757_v14, %v4472_v31  ;;  %3750 = vmatprep.subr.bf16.mxu0 %v3749_v0  ;;  %v821_v29 = vmul.f32 %v808_v45, %v4497_v53  ;;  %v806_v49 = vsel %vm146_vm2, %v793_v34, %v4958_v39 }
 0x2b1   :  { %v822_v34 = vmul.f32 %v806_v49, %v4509_v11 }
 0x2b2   :  { %v3751_v3 = vpack.c.bf16 %v776_v12, %v772_v7  ;;  %v795_v5 = vpop.permute.xlu0 %794  ;;  %v801_v46 = vpop.permute.xlu1 %800  ;;  %v3785_v33 = vpack.c.bf16 %v779_v32, %v775_v44 }
 0x2b3   :  { %v809_v28 = vsel %vm146_vm2, %v4956_v48, %v795_v5  ;;  %v807_v31 = vsel %vm146_vm2, %v795_v5, %v4965_v6  ;;  %v804_v26 = vsel %vm146_vm2, %v4958_v39, %v801_v46  ;;  %v810_v40 = vsel %vm146_vm2, %v801_v46, %v4947_v8 }
 0x2b4   :  { %v825_v1 = vmul.f32 %v809_v28, %v4495_v52  ;;  %3752 = vmatpush1.bf16.msra.mxu0 %v3751_v3  ;;  %3786 = vmatprep.subr.bf16.mxu1 %v3785_v33  ;;  %v826_v52 = vmul.f32 %v807_v31, %v4505_v63  ;;  %v820_v54 = vmul.f32 %v810_v40, %v4517_v17 }
 0x2b5   :  { %3788 = vmatpush1.bf16.msra.mxu1 %v3787_v30  ;;  %v823_v8 = vmul.f32 %v804_v26, %v4519_v18 }
 0x2b6   :  { %v803_v10 = vpop.permute.xlu0 %802  ;;  %v841_v0 = vpop.permute.xlu1 %840  ;;  %v3753_v53 = vpack.c.bf16 %v825_v1, %v821_v29  ;;  %v3791_v18 = vpack.c.bf16 %v826_v52, %v822_v34  ;;  %v6951_v34 = vld [vmem:[#allocation53_spill] sm:$0xff] }
 0x2b7   :  { %v805_v47 = vsel %vm146_vm2, %v4965_v6, %v803_v10  ;;  %v811_v51 = vsel %vm146_vm2, %v803_v10, %v4956_v48  ;;  %v856_v63 = vsel %vm195_vm3, %v4967_v25, %v841_v0  ;;  %v854_v45 = vsel %vm195_vm3, %v841_v0, %v4971_v50 }
 0x2b8   :  { %v824_v36 = vmul.f32 %v811_v51, %v4513_v13  ;;  %v827_v14 = vmul.f32 %v805_v47, %v4515_v16  ;;  %3754 = vmatprep.subr.bf16.mxu0 %v3753_v53  ;;  %v869_v13 = vmul.f32 %v856_v63, %v4538_v43 }
 0x2ba   :  { %v3755_v6 = vpack.c.bf16 %v824_v36, %v820_v54  ;;  %v843_v39 = vpop.permute.xlu0 %842  ;;  %v849_v15 = vpop.permute.xlu1 %848  ;;  %v3789_v7 = vpack.c.bf16 %v827_v14, %v823_v8  ;;  %v6950_v36 = vld [vmem:[#allocation50_spill] sm:$0xff] }
 0x2bb   :  { %v857_v17 = vsel %vm195_vm3, %v4969_v23, %v843_v39  ;;  %v855_v16 = vsel %vm195_vm3, %v843_v39, %v4973_v2  ;;  %v852_v11 = vsel %vm195_vm3, %v4971_v50, %v849_v15  ;;  %v858_v44 = vsel %vm195_vm3, %v849_v15, %v4967_v25  ;;  %v6952_v39 = vld [vmem:[#allocation16_spill] sm:$0xff] }
 0x2bc   :  { %v873_v48 = vmul.f32 %v857_v17, %v4536_v42  ;;  %3756 = vmatpush1.bf16.msra.mxu0 %v3755_v6  ;;  %3790 = vmatprep.subr.bf16.mxu1 %v3789_v7  ;;  %v874_v42 = vmul.f32 %v855_v16, %v4546_v55  ;;  %v868_v25 = vmul.f32 %v858_v44, %v4558_v61  ;;  %v6953_v7 = vld [vmem:[#allocation15_spill] sm:$0xff]  ;;  %v6956_v44 = vld [vmem:[#allocation13_spill] sm:$0xff] }
 0x2bd   :  { %3792 = vmatpush1.bf16.msra.mxu1 %v3791_v18  ;;  %v871_v5 = vmul.f32 %v852_v11, %v4560_v62  ;;  %v870_v50 = vmul.f32 %v854_v45, %v4550_v57  ;;  %v6954_v16 = vld [vmem:[#allocation51_spill] sm:$0xff] }
 0x2be   :  { %v851_v12 = vpop.permute.xlu0 %850  ;;  %v889_v32 = vpop.permute.xlu1 %888  ;;  %v3757_v43 = vpack.c.bf16 %v873_v48, %v869_v13  ;;  %v6955_v48 = vld [vmem:[#allocation52_spill] sm:$0xff] }
 0x2bf   :  { %v853_v27 = vsel %vm195_vm3, %v4973_v2, %v851_v12  ;;  %v859_v3 = vsel %vm195_vm3, %v851_v12, %v4969_v23  ;;  %v904_v55 = vsel %vm244_vm4, %v4975_v4, %v889_v32  ;;  %v3795_v62 = vpack.c.bf16 %v874_v42, %v870_v50  ;;  %v6957_v42 = vld [vmem:[#allocation14_spill] sm:$0xff] }
 0x2c0   :  { %v872_v46 = vmul.f32 %v859_v3, %v4554_v59  ;;  %v875_v33 = vmul.f32 %v853_v27, %v4556_v60  ;;  %3758 = vmatprep.subr.bf16.mxu0 %v3757_v43  ;;  %v917_v59 = vmul.f32 %v904_v55, %v4579_v38  ;;  %v902_v40 = vsel %vm244_vm4, %v889_v32, %v4979_v35  ;;  %v6960_v55 = vld [vmem:[#allocation17_spill] sm:$0xff] }
 0x2c1   :  { %v3801_v11 = vpack.c.bf16 %v6955_v48, %v6954_v16  ;;  %v6980_v16 = vld [vmem:[#allocation62_spill] sm:$0xff] }
 0x2c2   :  { %v3759_v2 = vpack.c.bf16 %v872_v46, %v868_v25  ;;  %v891_v28 = vpop.permute.xlu0 %890  ;;  %v897_v30 = vpop.permute.xlu1 %896  ;;  %v3793_v29 = vpack.c.bf16 %v875_v33, %v871_v5  ;;  %v6958_v25 = vld [vmem:[#allocation19_spill] sm:$0xff]  ;;  %v6959_v46 = vld [vmem:[#allocation20_spill] sm:$0xff] }
 0x2c3   :  { %v905_v61 = vsel %vm244_vm4, %v4977_v24, %v891_v28  ;;  %v903_v60 = vsel %vm244_vm4, %v891_v28, %v4981_v58  ;;  %v900_v57 = vsel %vm244_vm4, %v4979_v35, %v897_v30  ;;  %v906_v31 = vsel %vm244_vm4, %v897_v30, %v4975_v4  ;;  %v6946_v35 = vld [vmem:[#allocation12_spill] sm:$0xff]  ;;  %v6962_v30 = vld [vmem:[#allocation46_spill] sm:$0xff] }
 0x2c4   :  { %v921_v23 = vmul.f32 %v905_v61, %v4577_v37  ;;  %3760 = vmatpush1.bf16.msra.mxu0 %v3759_v2  ;;  %3794 = vmatprep.subr.bf16.mxu1 %v3793_v29  ;;  %v922_v37 = vmul.f32 %v903_v60, %v4587_v56  ;;  %v916_v4 = vmul.f32 %v906_v31, %v4599_v21  ;;  %v6961_v2 = vld [vmem:[#allocation18_spill] sm:$0xff]  ;;  %v6963_v29 = vld [vmem:[#allocation45_spill] sm:$0xff]  ;;  %v6966_v60 = vld [vmem:[#allocation56_spill] sm:$0xff] }
 0x2c5   :  { %3796 = vmatpush1.bf16.msra.mxu1 %v3795_v62  ;;  %v919_v53 = vmul.f32 %v900_v57, %v4601_v22  ;;  %v918_v47 = vmul.f32 %v902_v40, %v6946_v35  ;;  %v6948_v22 = vld [vmem:[#allocation54_spill] sm:$0xff]  ;;  %v6964_v61 = vpack.c.bf16 %v6962_v30, %v6963_v29  ;;  %v6973_v35 = vld [vmem:[#allocation24_spill] sm:$0xff] }
 0x2c6   :  { %v899_v1 = vpop.permute.xlu0 %898  ;;  %v945_v26 = vpop.permute.xlu1 %944  ;;  %v3761_v38 = vpack.c.bf16 %v921_v23, %v917_v59  ;;  %v6965_v62 = vld [vmem:[#allocation58_spill] sm:$0xff] }
 0x2c7   :  { %v901_v10 = vsel %vm244_vm4, %v4981_v58, %v899_v1  ;;  %v907_v0 = vsel %vm244_vm4, %v899_v1, %v4977_v24  ;;  %v958_v56 = vsel %vm301_vm5, %v945_v26, %v4987_v41  ;;  %v6947_v24 = vld [vmem:[#allocation55_spill] sm:$0xff]  ;;  %v3799_v63 = vpack.c.bf16 %v922_v37, %v918_v47  ;;  %v6967_v1 = vld [vmem:[#allocation48_spill] sm:$0xff] }
 0x2c8   :  { %v920_v49 = vmul.f32 %v907_v0, %v4595_v19  ;;  %v923_v52 = vmul.f32 %v901_v10, %v4597_v20  ;;  %3762 = vmatprep.subr.bf16.mxu0 %v3761_v38  ;;  %v6949_v20 = vld [vmem:[#allocation49_spill] sm:$0xff]  ;;  %v960_v6 = vsel %vm301_vm5, %v6951_v34, %v945_v26  ;;  %v973_v15 = vmul.f32 %v958_v56, %v6952_v39  ;;  %v6968_v26 = vld [vmem:[#allocation47_spill] sm:$0xff]  ;;  %v6977_v39 = vld [vmem:[#allocation28_spill] sm:$0xff] }
 0x2c9   :  { %v3765_v14 = vpack.c.bf16 %v6950_v36, %v6949_v20  ;;  %v972_v27 = vmul.f32 %v960_v6, %v6957_v42  ;;  %v6969_v38 = vpack.c.bf16 %v6967_v1, %v6968_v26  ;;  %v6970_v0 = vld [vmem:[#allocation59_spill] sm:$0xff]  ;;  %v6989_v26 = vld [vmem:[#allocation36_spill] sm:$0xff] }
 0x2ca   :  { %v3763_v58 = vpack.c.bf16 %v920_v49, %v916_v4  ;;  %v947_v51 = vpop.permute.xlu0 %946  ;;  %v953_v54 = vpop.permute.xlu1 %952  ;;  %v3797_v8 = vpack.c.bf16 %v923_v52, %v919_v53  ;;  %v6971_v53 = vld [vmem:[#allocation57_spill] sm:$0xff]  ;;  %v6972_v52 = vld [vmem:[#allocation22_spill] sm:$0xff]  ;;  %v6982_v42 = vld [vmem:[#allocation63_spill] sm:$0xff] }
 0x2cb   :  { %v959_v21 = vsel %vm301_vm5, %v947_v51, %v6947_v24  ;;  %v961_v19 = vsel %vm301_vm5, %v6948_v22, %v947_v51  ;;  %v956_v18 = vsel %vm301_vm5, %v4987_v41, %v953_v54  ;;  %v962_v13 = vsel %vm301_vm5, %v953_v54, %v6951_v34  ;;  %v6975_v54 = vld [vmem:[#allocation23_spill] sm:$0xff] }
 0x2cc   :  { %v977_v17 = vmul.f32 %v959_v21, %v6953_v7  ;;  %3764 = vmatpush1.bf16.msra.mxu0 %v3763_v58  ;;  %3798 = vmatprep.subr.bf16.mxu1 %v3797_v8  ;;  %v976_v12 = vmul.f32 %v961_v19, %v6956_v44  ;;  %v974_v5 = vmul.f32 %v956_v18, %v6958_v25  ;;  %v6974_v58 = vld [vmem:[#allocation21_spill] sm:$0xff]  ;;  %v6976_v34 = vld [vmem:[#allocation27_spill] sm:$0xff]  ;;  %v6979_v18 = vld [vmem:[#allocation26_spill] sm:$0xff] }
 0x2cd   :  { %3766 = vmatprep.subr.bf16.mxu0 %v3765_v14  ;;  %3800 = vmatpush1.bf16.msra.mxu1 %v3799_v63  ;;  %v975_v33 = vmul.f32 %v962_v13, %v6959_v46  ;;  %v6978_v7 = vld [vmem:[#allocation25_spill] sm:$0xff]  ;;  %v6984_v25 = vld [vmem:[#allocation30_spill] sm:$0xff]  ;;  %v6985_v46 = vld [vmem:[#allocation32_spill] sm:$0xff] }
 0x2ce   :  { %v955_v32 = vpop.permute.xlu0 %954  ;;  %v993_v43 = vpop.permute.xlu1 %992  ;;  %v3769_v45 = vpack.c.bf16 %v977_v17, %v973_v15  ;;  %3802 = vmatprep.subr.bf16.mxu1 %v3801_v11  ;;  %v3771_v57 = vpack.c.bf16 %v976_v12, %v972_v27  ;;  %v6981_v11 = vld [vmem:[#allocation60_spill] sm:$0xff] }
 0x2cf   :  { %v957_v41 = vsel %vm301_vm5, %v6947_v24, %v955_v32  ;;  %v963_v3 = vsel %vm301_vm5, %v955_v32, %v6948_v22  ;;  %v1006_v59 = vsel %vm350_vm6, %v993_v43, %v6965_v62  ;;  %v1008_v23 = vsel %vm350_vm6, %v6966_v60, %v993_v43 }
 0x2d0   :  { %v978_v50 = vmul.f32 %v957_v41, %v6960_v55  ;;  %v979_v28 = vmul.f32 %v963_v3, %v6961_v2  ;;  %3768 = vmatpush1.bf16.msra.mxu0 %v6964_v61  ;;  %v1020_v56 = vmul.f32 %v1008_v23, %v6972_v52  ;;  %v1021_v47 = vmul.f32 %v1006_v59, %v6973_v35  ;;  %v6983_v41 = vld [vmem:[#allocation61_spill] sm:$0xff]  ;;  %v6987_v2 = vld [vmem:[#allocation31_spill] sm:$0xff] }
 0x2d1   :  { %3770 = vmatprep.subr.bf16.mxu0 %v3769_v45  ;;  %3804 = vmatpush1.bf16.msra.mxu1 %v6969_v38  ;;  %v6986_v55 = vld [vmem:[#allocation29_spill] sm:$0xff] }
 0x2d2   :  { %v3807_v31 = vpack.c.bf16 %v978_v50, %v974_v5  ;;  %v995_v40 = vpop.permute.xlu0 %994  ;;  %v1001_v37 = vpop.permute.xlu1 %1000  ;;  %v3805_v10 = vpack.c.bf16 %v979_v28, %v975_v33 }
 0x2d3   :  { %v1007_v4 = vsel %vm350_vm6, %v995_v40, %v6970_v0  ;;  %v1009_v49 = vsel %vm350_vm6, %v6971_v53, %v995_v40  ;;  %v1004_v24 = vsel %vm350_vm6, %v6965_v62, %v1001_v37  ;;  %v1010_v21 = vsel %vm350_vm6, %v1001_v37, %v6966_v60  ;;  %v6990_v40 = vld [vmem:[#allocation33_spill] sm:$0xff] }
 0x2d4   :  { %v1024_v51 = vmul.f32 %v1009_v49, %v6974_v58  ;;  %v1025_v8 = vmul.f32 %v1007_v4, %v6975_v54  ;;  %3772 = vmatpush1.bf16.msra.mxu0 %v3771_v57  ;;  %3806 = vmatprep.subr.bf16.mxu1 %v3805_v10  ;;  %v1022_v6 = vmul.f32 %v1004_v24, %v6976_v34  ;;  %v6991_v10 = vld [vmem:[#allocation34_spill] sm:$0xff]  ;;  %v6993_v49 = vld [vmem:[#allocation64_spill] sm:$0xff] }
 0x2d5   :  { %3808 = vmatpush1.bf16.msra.mxu1 %v3807_v31  ;;  %v1023_v15 = vmul.f32 %v1010_v21, %v6977_v39  ;;  %v6988_v31 = vld [vmem:[#allocation35_spill] sm:$0xff]  ;;  %v6992_v4 = vld [vmem:[#allocation66_spill] sm:$0xff] }
 0x2d6   :  { %v3775_v22 = vpack.c.bf16 %v1024_v51, %v1020_v56  ;;  %v1003_v19 = vpop.permute.xlu0 %1002  ;;  %v1041_v20 = vpop.permute.xlu1 %1040  ;;  %v3773_v36 = vpack.c.bf16 %v1025_v8, %v1021_v47  ;;  %v6994_v51 = vld [vmem:[#allocation67_spill] sm:$0xff]  ;;  %v6995_v8 = vld [vmem:[#allocation65_spill] sm:$0xff]  ;;  %v6996_v21 = vld [vmem:[#allocation38_spill] sm:$0xff] }
 0x2d7   :  { %v1005_v14 = vsel %vm350_vm6, %v6970_v0, %v1003_v19  ;;  %v1011_v63 = vsel %vm350_vm6, %v1003_v19, %v6971_v53  ;;  %v1054_v48 = vsel %vm399_vm7, %v1041_v20, %v6980_v16  ;;  %v1056_v44 = vsel %vm399_vm7, %v6981_v11, %v1041_v20  ;;  %v6997_v19 = vld [vmem:[#allocation40_spill] sm:$0xff] }
 0x2d8   :  { %v1026_v17 = vmul.f32 %v1005_v14, %v6978_v7  ;;  %v1027_v13 = vmul.f32 %v1011_v63, %v6979_v18  ;;  %3774 = vmatprep.subr.bf16.mxu0 %v3773_v36  ;;  %v1068_v5 = vmul.f32 %v1056_v44, %v6984_v25  ;;  %v1069_v33 = vmul.f32 %v1054_v48, %v6985_v46  ;;  %v6998_v36 = vld [vmem:[#allocation37_spill] sm:$0xff]  ;;  %v6999_v63 = vld [vmem:[#allocation39_spill] sm:$0xff] }
 0x2d9   :  { %3776 = vmatpush1.bf16.msra.mxu0 %v3775_v22  ;;  %v3631_v25 = vld [vmem:[%s6758_s2 + $0x30] sm:$0xff] }
 0x2da   :  { %v3811_v12 = vpack.c.bf16 %v1026_v17, %v1022_v6  ;;  %v1043_v32 = vpop.permute.xlu0 %1042  ;;  %v1049_v43 = vpop.permute.xlu1 %1048  ;;  %v3809_v45 = vpack.c.bf16 %v1027_v13, %v1023_v15 }
 0x2db   :  { %v1055_v27 = vsel %vm399_vm7, %v1043_v32, %v6982_v42  ;;  %v1057_v3 = vsel %vm399_vm7, %v6983_v41, %v1043_v32  ;;  %v1052_v30 = vsel %vm399_vm7, %v6980_v16, %v1049_v43  ;;  %v1058_v29 = vsel %vm399_vm7, %v1049_v43, %v6981_v11  ;;  %v7000_v16 = vld [vmem:[#allocation43_spill] sm:$0xff]  ;;  %v7001_v11 = vld [vmem:[#allocation44_spill] sm:$0xff]  ;;  %v7003_v43 = vld [vmem:[#allocation42_spill] sm:$0xff] }
 0x2dc   :  { %v1072_v50 = vmul.f32 %v1057_v3, %v6986_v55  ;;  %v1073_v28 = vmul.f32 %v1055_v27, %v6987_v2  ;;  %3810 = vmatprep.subr.bf16.mxu1 %v3809_v45  ;;  %v1070_v1 = vmul.f32 %v1052_v30, %v6988_v31  ;;  %v1071_v38 = vmul.f32 %v1058_v29, %v6989_v26  ;;  %v3632_v3 = vld [vmem:[%s6758_s2 + $0x38] sm:$0xff] }
 0x2dd   :  { %3812 = vmatpush1.bf16.msra.mxu1 %v3811_v12  ;;  %v7002_v12 = vld [vmem:[#allocation41_spill] sm:$0xff] }
 0x2de   :  { %v3779_v61 = vpack.c.bf16 %v1072_v50, %v1068_v5  ;;  %v1051_v62 = vpop.permute.xlu0 %1050  ;;  %v1089_v59 = vpop.permute.xlu1 %1088  ;;  %v3777_v60 = vpack.c.bf16 %v1073_v28, %v1069_v33 }
 0x2df   :  { %v1053_v23 = vsel %vm399_vm7, %v6982_v42, %v1051_v62  ;;  %v1059_v57 = vsel %vm399_vm7, %v1051_v62, %v6983_v41  ;;  %v1102_v53 = vsel %vm448_vm8, %v1089_v59, %v6992_v4  ;;  %v1104_v52 = vsel %vm448_vm8, %v6993_v49, %v1089_v59  ;;  %v3629_v42 = vld [vmem:[%s6758_s2 + $0x20] sm:$0xff] }
 0x2e0   :  { %v1074_v37 = vmul.f32 %v1053_v23, %v6990_v40  ;;  %v1075_v0 = vmul.f32 %v1059_v57, %v6991_v10  ;;  %3778 = vmatprep.subr.bf16.mxu0 %v3777_v60  ;;  %v1116_v22 = vmul.f32 %v1104_v52, %v6996_v21  ;;  %v1117_v20 = vmul.f32 %v1102_v53, %v6997_v19  ;;  %v1383_v53 = vld [vmem:[%s6760_s4] sm:$0xff] }
 0x2e1   :  { %3780 = vmatpush1.bf16.msra.mxu0 %v3779_v61 }
 0x2e2   :  { %v3815_v56 = vpack.c.bf16 %v1074_v37, %v1070_v1  ;;  %v1091_v35 = vpop.permute.xlu0 %1090  ;;  %v1097_v47 = vpop.permute.xlu1 %1096  ;;  %v3813_v58 = vpack.c.bf16 %v1075_v0, %v1071_v38 }
 0x2e3   :  { %v1103_v54 = vsel %vm448_vm8, %v1091_v35, %v6994_v51  ;;  %v1105_v24 = vsel %vm448_vm8, %v6995_v8, %v1091_v35  ;;  %v1100_v6 = vsel %vm448_vm8, %v6992_v4, %v1097_v47  ;;  %v1106_v39 = vsel %vm448_vm8, %v1097_v47, %v6993_v49  ;;  %v1384_v49 = vld [vmem:[%s6760_s4 + $0x8] sm:$0xff] }
 0x2e4   :  { %v1120_v14 = vmul.f32 %v1105_v24, %v6998_v36  ;;  %v1121_v34 = vmul.f32 %v1103_v54, %v6999_v63  ;;  %3814 = vmatprep.subr.bf16.mxu1 %v3813_v58  ;;  %v1118_v48 = vmul.f32 %v1100_v6, %v7000_v16  ;;  %v1119_v44 = vmul.f32 %v1106_v39, %v7001_v11  ;;  %v1397_v11 = vld [vmem:[#allocation6] sm:$0x1] }
 0x2e5   :  { %3816 = vmatpush1.bf16.msra.mxu1 %v3815_v56  ;;  %v7004_v16 = vlaneseq }
 0x2e6   :  { %v3783_v15 = vpack.c.bf16 %v1120_v14, %v1116_v22  ;;  %v1099_v7 = vpop.permute.xlu0 %1098  ;;  %v3781_v17 = vpack.c.bf16 %v1121_v34, %v1117_v20 }
 0x2e7   :  { %v1101_v18 = vsel %vm448_vm8, %v6994_v51, %v1099_v7  ;;  %v1107_v13 = vsel %vm448_vm8, %v1099_v7, %v6995_v8 }
 0x2e8   :  { %v1122_v32 = vmul.f32 %v1101_v18, %v7002_v12  ;;  %v1123_v45 = vmul.f32 %v1107_v13, %v7003_v43  ;;  %3782 = vmatprep.subr.bf16.mxu0 %v3781_v17 }
 0x2e9   :  { %3784 = vmatpush1.bf16.msra.mxu0 %v3783_v15 }
 0x2ea   :  { %v3819_v27 = vpack.c.bf16 %v1122_v32, %v1118_v48  ;;  %v3817_v41 = vpack.c.bf16 %v1123_v45, %v1119_v44  ;;  %v1403_v48 = vshrl.u32 %v7004_v16, 7  ;;  %v4086_v16 = vld [vmem:[%s6756_s0] sm:$0xff] }
 0x2ec   :  { %1285 = vmatmul.mubr.f32.vlgmr.msra.gmra.mrb[4].mxu0 %v3629_v42  ;;  %3818 = vmatprep.subr.bf16.mxu1 %v3817_v41  ;;  %v5319_v43 = vsub.s32 0, %v1403_v48  ;;  %v1401_v41 = vld [vmem:[%s6762_s6 + $0x8] sm:$0xff] }
 0x2ed   :  { %3820 = vmatpush1.bf16.msra.mxu1 %v3819_v27  ;;  %3636 = vmatprep.mubr.msk.f32.mxu0 %vm563_vm0, %v3632_v3 }
 0x2ee   :  { %7005 = vst [vmem:[#allocation12_spill] sm:$0xff] %v5319_v43 }
 0x2f0   :  { %1291 = vmatmul.mubr.f32.gmra.mrb[6].mxu0 %v3631_v25  ;;  %1362 = vmatmul.mubr.f32.vlgmr.msra.gmra.mrb[4].mxu1 %v3629_v42 }
 0x2f1   :  { %3638 = vmatprep.mubr.msk.f32.mxu1 %vm563_vm0, %v3632_v3  ;;  %v1400_v3 = vld [vmem:[%s6762_s6] sm:$0xff] }
 0x2f3   :  { %v1207_v5 = vpop.permute.xlu1 %1206 }
 0x2f4   :  { %1368 = vmatmul.mubr.f32.gmra.mrb[6].mxu1 %v3631_v25 }
 0x2f7   :  { %v1212_v2 = vpop.permute.xlu0 %1211 }
 0x3bf   :  { %v1286_v46 = vpop.f32.mrb[4].mxu0 }
 0x3c0   :  { %v5284_v33 = vadd.f32 %v1286_v46, %v1207_v5  ;;  %v1288_v55 = vpop.f32.mrb[5].mxu0 }
 0x3c1   :  { %v5286_v50 = vadd.f32 %v1288_v55, %v1207_v5 }
 0x3c3   :  { %v1374_v28 = vadd.f32 %v5286_v50, %v5284_v33  ;;  %v1292_v30 = vpop.f32.mrb[6].mxu0  ;;  %v1363_v29 = vpop.f32.mrb[4].mxu1 }
 0x3c4   :  { %v5290_v61 = vadd.f32 %v1292_v30, %v1212_v2  ;;  %v1294_v62 = vpop.f32.mrb[7].mxu0  ;;  %v1365_v59 = vpop.f32.mrb[5].mxu1  ;;  %v5294_v23 = vadd.f32 %v1363_v29, %v1207_v5 }
 0x3c5   :  { %v5292_v60 = vadd.f32 %v1294_v62, %v1212_v2  ;;  %1375 = vadd.xlane.f32.xlu1 %v1374_v28  ;;  %v5298_v31 = vadd.f32 %v1365_v59, %v1207_v5 }
 0x3c7   :  { %v1377_v57 = vadd.f32 %v5292_v60, %v5290_v61  ;;  %v1369_v1 = vpop.f32.mrb[6].mxu1  ;;  %v1444_v37 = vadd.f32 %v5298_v31, %v5294_v23 }
 0x3c8   :  { %v5300_v26 = vadd.f32 %v1369_v1, %v1212_v2  ;;  %v1371_v38 = vpop.f32.mrb[7].mxu1 }
 0x3c9   :  { %v5302_v40 = vadd.f32 %v1371_v38, %v1212_v2  ;;  %1378 = vadd.xlane.f32.xlu0 %v1377_v57  ;;  %v1414_v38 = vld [vmem:[%s6763_s7] sm:$0xff] }
 0x3cb   :  { %v1447_v10 = vadd.f32 %v5302_v40, %v5300_v26 }
 0x3cd   :  { %1445 = vadd.xlane.f32.xlu0 %v1444_v37  ;;  %1448 = vadd.xlane.f32.xlu1 %v1447_v10  ;;  %v1415_v37 = vld [vmem:[%s6763_s7 + $0x8] sm:$0xff] }
 0x452   :  { %v1376_v0 = vpop.xlane.xlu1 %1375 }
 0x453   :  { %v1381_v4 = vmul.f32 0.00390625, %v1376_v0 }
 0x455   :  { %v1385_v56 = vmul.f32 %v1383_v53, %v1381_v4 }
 0x456   :  { %v1379_v52 = vpop.xlane.xlu0 %1378 }
 0x457   :  { %v1382_v35 = vmul.f32 0.00390625, %v1379_v52  ;;  %v1388_v54 = vsel %vm1387_vm9, %v1385_v56, 0.0 }
 0x459   :  { %v1386_v47 = vmul.f32 %v1384_v49, %v1382_v35 }
 0x45a   :  { %v1446_v58 = vpop.xlane.xlu0 %1445  ;;  %v1449_v51 = vpop.xlane.xlu1 %1448 }
 0x45b   :  { %v1389_v8 = vsel %vm1387_vm9, %v1386_v47, 0.0  ;;  %v1450_v24 = vmul.f32 0.00390625, %v1446_v58  ;;  %v1451_v21 = vmul.f32 0.00390625, %v1449_v51 }
 0x45c   :  { %v1390_v22 = vadd.f32 %v1389_v8, %v1388_v54 }
 0x45d   :  { %v1452_v19 = vmul.f32 %v1450_v24, %v1383_v53  ;;  %v1453_v20 = vmul.f32 %v1451_v21, %v1384_v49 }
 0x45e   :  { %v1391_v36 = vrot.slane %v1390_v22, 4 }
 0x45f   :  { %v1454_v14 = vsel %vm1387_vm9, %v1452_v19, 0.0  ;;  %v1455_v63 = vsel %vm1387_vm9, %v1453_v20, 0.0 }
 0x460   :  { %v1392_v34 = vadd.f32 %v1391_v36, %v1390_v22  ;;  %v1456_v6 = vadd.f32 %v1455_v63, %v1454_v14 }
 0x462   :  { %v1393_v39 = vrot.slane %v1392_v34, 2  ;;  %v1457_v15 = vrot.slane %v1456_v6, 4 }
 0x464   :  { %v1394_v7 = vadd.f32 %v1393_v39, %v1392_v34  ;;  %v1458_v17 = vadd.f32 %v1457_v15, %v1456_v6 }
 0x466   :  { %v1459_v18 = vrot.slane %v1458_v17, 2  ;;  %v1395_v13 = vrot.slane %v1394_v7, 1 }
 0x468   :  { %v1460_v44 = vadd.f32 %v1459_v18, %v1458_v17  ;;  %v1396_v12 = vadd.f32 %v1395_v13, %v1394_v7 }
 0x46a   :  { %v1398_v32 = vadd.f32 %v1397_v11, %v1396_v12  ;;  %v1461_v45 = vrot.slane %v1460_v44, 1 }
 0x46c   :  { %v1399_v42 = vmax.f32 %v1398_v32, 0.0  ;;  %v1462_v27 = vadd.f32 %v1461_v45, %v1460_v44  ;;  %v4087_v44 = vld [vmem:[%s6756_s0 + $0x10] sm:$0xff]  ;;  %v4089_v45 = vld [vmem:[%s6756_s0 + $0x18] sm:$0xff] }
 0x46e   :  { %v1405_v25 = vrot.slane %v1399_v42, %v5319_v43  ;;  %v1463_v5 = vadd.f32 %v1462_v27, %v1397_v11 }
 0x470   :  { %v1407_v46 = vmul.f32 %v1405_v25, %v1401_v41  ;;  %v1406_v55 = vmul.f32 %v1405_v25, %v1400_v3  ;;  %v1464_v2 = vmax.f32 %v1463_v5, 0.0 }
 0x472   :  { %v1411_v28 = vsel %vm1387_vm9, %v1407_v46, 0.0  ;;  %v1408_v30 = vsel %vm1387_vm9, %v1406_v55, 0.0  ;;  %v1468_v29 = vrot.slane %v1464_v2, %v5319_v43 }
 0x473   :  { %1412 = vadd.xlane.f32.xlu1 %v1411_v28  ;;  %1409 = vadd.xlane.f32.xlu0 %v1408_v30  ;;  %v3644_v30 = vld [vmem:[%s6758_s2 + $0x48] sm:$0xff] }
 0x474   :  { %v1470_v62 = vmul.f32 %v1468_v29, %v1401_v41  ;;  %v1469_v59 = vmul.f32 %v1468_v29, %v1400_v3  ;;  %3649 = vmatprep.mubr.msk.f32.mxu0 %vm563_vm0, %v3644_v30  ;;  %v5511_v29 = vld [vmem:[#allocation3 + $0x8] sm:$0xff]  ;;  %3651 = vmatprep.mubr.msk.f32.mxu1 %vm563_vm0, %v3644_v30  ;;  %v5584_v30 = vld [vmem:[#allocation3 + $0x40] sm:$0xff] }
 0x476   :  { %v1474_v57 = vsel %vm1387_vm9, %v1470_v62, 0.0  ;;  %v1471_v1 = vsel %vm1387_vm9, %v1469_v59, 0.0  ;;  %v5514_v62 = vld [vmem:[#allocation3 + $0x28] sm:$0xff] }
 0x477   :  { %1475 = vadd.xlane.f32.xlu1 %v1474_v57  ;;  %1472 = vadd.xlane.f32.xlu0 %v1471_v1 }
 0x500   :  { %v1410_v10 = vpop.xlane.xlu0 %1409  ;;  %v1413_v0 = vpop.xlane.xlu1 %1412 }
 0x501   :  { %v1416_v4 = vadd.f32 %v1414_v38, %v1410_v10  ;;  %v1417_v53 = vadd.f32 %v1415_v37, %v1413_v0 }
 0x503   :  { %v3639_v49 = vmul.f32 -1.442695, %v1416_v4  ;;  %v3640_v52 = vmul.f32 -1.442695, %v1417_v53 }
 0x504   :  { %v1473_v56 = vpop.xlane.xlu0 %1472  ;;  %v1476_v35 = vpop.xlane.xlu1 %1475 }
 0x505   :  { %4054 = vpow2.f32 %v3639_v49  ;;  %v1477_v47 = vadd.f32 %v1473_v56, %v1414_v38  ;;  %v1478_v58 = vadd.f32 %v1476_v35, %v1415_v37  ;;  %v5526_v49 = vld [vmem:[#allocation3 + $0x30] sm:$0xff] }
 0x506   :  { %4056 = vpow2.f32 %v3640_v52  ;;  %v5530_v56 = vld [vmem:[#allocation3 + $0x10] sm:$0xff] }
 0x507   :  { %v3641_v51 = vmul.f32 -1.442695, %v1477_v47  ;;  %v3642_v54 = vmul.f32 -1.442695, %v1478_v58  ;;  %v5538_v47 = vld [vmem:[#allocation3] sm:$0xff]  ;;  %v5540_v58 = vld [vmem:[#allocation3 + $0x18] sm:$0xff] }
 0x509   :  { %4058 = vpow2.f32 %v3641_v51  ;;  %v3647_v51 = vld [vmem:[%s6759_s3 + $0x20] sm:$0xff] }
 0x50a   :  { %4060 = vpow2.f32 %v3642_v54  ;;  %v5545_v54 = vld [vmem:[#allocation3 + $0x20] sm:$0xff] }
 0x50f   :  { %v4055_v8 = vpop.eup %4054 }
 0x510   :  { %v4057_v24 = vpop.eup %4056  ;;  %v1424_v21 = vadd.f32 1.0, %v4055_v8  ;;  %v5547_v8 = vld [vmem:[#allocation3 + $0x38] sm:$0xff] }
 0x511   :  { %v1425_v22 = vadd.f32 1.0, %v4057_v24 }
 0x512   :  { %4062 = vrcp.f32 %v1424_v21  ;;  %v3648_v21 = vld [vmem:[%s6759_s3 + $0x28] sm:$0xff] }
 0x513   :  { %v4059_v19 = vpop.eup %4058  ;;  %4064 = vrcp.f32 %v1425_v22 }
 0x514   :  { %v4061_v20 = vpop.eup %4060  ;;  %v1485_v36 = vadd.f32 1.0, %v4059_v19 }
 0x515   :  { %v1486_v14 = vadd.f32 1.0, %v4061_v20 }
 0x516   :  { %4066 = vrcp.f32 %v1485_v36 }
 0x517   :  { %4068 = vrcp.f32 %v1486_v14 }
 0x51c   :  { %v4063_v63 = vpop.eup %4062 }
 0x51d   :  { %v4065_v34 = vpop.eup %4064  ;;  %1432 = vperm.xlu0 %4052, %v4063_v63  }
 0x51e   :  { %1437 = vperm.xlu1 %4053, %v4065_v34  }
 0x520   :  { %v4067_v6 = vpop.eup %4066 }
 0x521   :  { %v4069_v39 = vpop.eup %4068 }
 0x522   :  { %1493 = vperm.xlu1 %4053, %v4067_v6   ;;  %1498 = vperm.xlu0 %4052, %v4069_v39  }
 0x59c   :  { %v1433_v15 = vpop.permute.xlu0 %1432 }
 0x59d   :  { %v1440_v7 = vmul.f32 %v1433_v15, %v5284_v33  ;;  %v1438_v17 = vpop.permute.xlu1 %1437  ;;  %v1441_v13 = vmul.f32 %v1433_v15, %v5286_v50  ;;  %v4088_v50 = vld [vmem:[%s6756_s0 + $0x8] sm:$0xff] }
 0x59e   :  { %v1442_v18 = vmul.f32 %v1438_v17, %v5290_v61  ;;  %v1443_v11 = vmul.f32 %v1438_v17, %v5292_v60 }
 0x59f   :  { %v5345_v48 = vadd.f32 %v4086_v16, %v1440_v7  ;;  %v5360_v61 = vadd.f32 %v4088_v50, %v1441_v13 }
 0x5a0   :  { %v5351_v12 = vadd.f32 %v4087_v44, %v1442_v18  ;;  %v5366_v42 = vadd.f32 %v4089_v45, %v1443_v11  ;;  %v5566_v44 = vld [vmem:[#allocation3 + $0x48] sm:$0xff] }
 0x5a1   :  { %7006 = vst [vmem:[#allocation55_spill] sm:$0xff] %v5345_v48  ;;  %v1499_v33 = vpop.permute.xlu0 %1498  ;;  %v1494_v32 = vpop.permute.xlu1 %1493  ;;  %1521 = vrot.lane.b32.xlu1 %v5345_v48, %s4180_s24  ;;  %7008 = vst [vmem:[#allocation49_spill] sm:$0xff] %v5360_v61 }
 0x5a2   :  { %7007 = vst [vmem:[#allocation54_spill] sm:$0xff] %v5351_v12  ;;  %1523 = vrot.lane.b32.xlu0 %v5351_v12, %s4180_s24  ;;  %v1501_v60 = vmul.f32 %v1494_v32, %v5294_v23  ;;  %7009 = vst [vmem:[#allocation50_spill] sm:$0xff] %v5366_v42  ;;  %v1503_v27 = vmul.f32 %v1499_v33, %v5300_v26  ;;  %v1502_v41 = vmul.f32 %v1494_v32, %v5298_v31  ;;  %v4090_v23 = vld [vmem:[%s6756_s0 + $0x20] sm:$0xff]  ;;  %v4091_v26 = vld [vmem:[%s6756_s0 + $0x30] sm:$0xff] }
 0x5a3   :  { %v1504_v25 = vmul.f32 %v1499_v33, %v5302_v40  ;;  %v4092_v31 = vld [vmem:[%s6756_s0 + $0x28] sm:$0xff]  ;;  %v4093_v40 = vld [vmem:[%s6756_s0 + $0x38] sm:$0xff] }
 0x5a4   :  { %v5377_v3 = vadd.f32 %v4090_v23, %v1501_v60  ;;  %v5383_v5 = vadd.f32 %v4091_v26, %v1503_v27  ;;  %v5392_v46 = vadd.f32 %v4092_v31, %v1502_v41  ;;  %v5568_v33 = vld [vmem:[#allocation3 + $0x68] sm:$0xff]  ;;  %v5576_v31 = vld [vmem:[#allocation3 + $0x70] sm:$0xff] }
 0x5a5   :  { %1525 = vrot.lane.b32.xlu1 %v5360_v61, %s4180_s24  ;;  %v5397_v55 = vadd.f32 %v4093_v40, %v1504_v25 }
 0x5a6   :  { %1527 = vrot.lane.b32.xlu0 %v5366_v42, %s4180_s24  ;;  %7010 = vst [vmem:[#allocation53_spill] sm:$0xff] %v5377_v3  ;;  %7011 = vst [vmem:[#allocation16_spill] sm:$0xff] %v5383_v5 }
 0x5a7   :  { %7012 = vst [vmem:[#allocation15_spill] sm:$0xff] %v5392_v46  ;;  %7013 = vst [vmem:[#allocation51_spill] sm:$0xff] %v5397_v55 }
 0x5a9   :  { %1529 = vrot.lane.b32.xlu1 %v5377_v3, %s4180_s24 }
 0x5aa   :  { %1531 = vrot.lane.b32.xlu0 %v5383_v5, %s4180_s24 }
 0x5ad   :  { %1533 = vrot.lane.b32.xlu1 %v5392_v46, %s4180_s24 }
 0x5ae   :  { %1535 = vrot.lane.b32.xlu0 %v5397_v55, %s4180_s24 }
 0x5b1   :  { %1569 = vrot.lane.b32.xlu1 %v5345_v48, %s4178_s1 }
 0x5b2   :  { %1571 = vrot.lane.b32.xlu0 %v5351_v12, %s4178_s1 }
 0x5b5   :  { %1573 = vrot.lane.b32.xlu1 %v5360_v61, %s4178_s1 }
 0x5b6   :  { %1575 = vrot.lane.b32.xlu0 %v5366_v42, %s4178_s1 }
 0x5b9   :  { %1577 = vrot.lane.b32.xlu1 %v5377_v3, %s4178_s1 }
 0x5ba   :  { %1579 = vrot.lane.b32.xlu0 %v5383_v5, %s4178_s1 }
 0x5bd   :  { %1581 = vrot.lane.b32.xlu1 %v5392_v46, %s4178_s1 }
 0x5be   :  { %1583 = vrot.lane.b32.xlu0 %v5397_v55, %s4178_s1 }
 0x5c1   :  { %1617 = vrot.lane.b32.xlu1 %v5345_v48, %s4181_s17 }
 0x5c2   :  { %1619 = vrot.lane.b32.xlu0 %v5351_v12, %s4181_s17 }
 0x5c5   :  { %1621 = vrot.lane.b32.xlu1 %v5360_v61, %s4181_s17 }
 0x5c6   :  { %1623 = vrot.lane.b32.xlu0 %v5366_v42, %s4181_s17 }
 0x5c9   :  { %1625 = vrot.lane.b32.xlu1 %v5377_v3, %s4181_s17 }
 0x5ca   :  { %1627 = vrot.lane.b32.xlu0 %v5383_v5, %s4181_s17 }
 0x5cd   :  { %1629 = vrot.lane.b32.xlu1 %v5392_v46, %s4181_s17 }
 0x5ce   :  { %1631 = vrot.lane.b32.xlu0 %v5397_v55, %s4181_s17 }
 0x5d1   :  { %1665 = vrot.lane.b32.xlu1 %v5345_v48, %s4179_s14 }
 0x5d2   :  { %1667 = vrot.lane.b32.xlu0 %v5351_v12, %s4179_s14 }
 0x5d5   :  { %1669 = vrot.lane.b32.xlu1 %v5360_v61, %s4179_s14 }
 0x5d6   :  { %1671 = vrot.lane.b32.xlu0 %v5366_v42, %s4179_s14 }
 0x5d9   :  { %1673 = vrot.lane.b32.xlu1 %v5377_v3, %s4179_s14 }
 0x5da   :  { %1675 = vrot.lane.b32.xlu0 %v5383_v5, %s4179_s14 }
 0x5dd   :  { %1677 = vrot.lane.b32.xlu1 %v5392_v46, %s4179_s14 }
 0x5de   :  { %1679 = vrot.lane.b32.xlu0 %v5397_v55, %s4179_s14 }
 0x5e1   :  { %1721 = vrot.lane.b32.xlu1 %v5345_v48, %s4182_s18 }
 0x5e2   :  { %1723 = vrot.lane.b32.xlu0 %v5351_v12, %s4182_s18 }
 0x5e5   :  { %1725 = vrot.lane.b32.xlu1 %v5360_v61, %s4182_s18 }
 0x5e6   :  { %1727 = vrot.lane.b32.xlu0 %v5366_v42, %s4182_s18 }
 0x5e9   :  { %1729 = vrot.lane.b32.xlu1 %v5377_v3, %s4182_s18 }
 0x5ea   :  { %1731 = vrot.lane.b32.xlu0 %v5383_v5, %s4182_s18 }
 0x5ed   :  { %1733 = vrot.lane.b32.xlu1 %v5392_v46, %s4182_s18 }
 0x5ee   :  { %1735 = vrot.lane.b32.xlu0 %v5397_v55, %s4182_s18 }
 0x5f1   :  { %1769 = vrot.lane.b32.xlu1 %v5345_v48, %s4183_s19 }
 0x5f2   :  { %1771 = vrot.lane.b32.xlu0 %v5351_v12, %s4183_s19 }
 0x5f5   :  { %1773 = vrot.lane.b32.xlu1 %v5360_v61, %s4183_s19 }
 0x5f6   :  { %1775 = vrot.lane.b32.xlu0 %v5366_v42, %s4183_s19 }
 0x5f9   :  { %1777 = vrot.lane.b32.xlu1 %v5377_v3, %s4183_s19 }
 0x5fa   :  { %1779 = vrot.lane.b32.xlu0 %v5383_v5, %s4183_s19 }
 0x5fd   :  { %1781 = vrot.lane.b32.xlu1 %v5392_v46, %s4183_s19 }
 0x5fe   :  { %1783 = vrot.lane.b32.xlu0 %v5397_v55, %s4183_s19 }
 0x601   :  { %1817 = vrot.lane.b32.xlu1 %v5345_v48, %s4184_s20 }
 0x602   :  { %1819 = vrot.lane.b32.xlu0 %v5351_v12, %s4184_s20 }
 0x605   :  { %1821 = vrot.lane.b32.xlu1 %v5360_v61, %s4184_s20 }
 0x606   :  { %1823 = vrot.lane.b32.xlu0 %v5366_v42, %s4184_s20 }
 0x609   :  { %1825 = vrot.lane.b32.xlu1 %v5377_v3, %s4184_s20 }
 0x60a   :  { %1827 = vrot.lane.b32.xlu0 %v5383_v5, %s4184_s20 }
 0x60d   :  { %1829 = vrot.lane.b32.xlu1 %v5392_v46, %s4184_s20 }
 0x60e   :  { %1831 = vrot.lane.b32.xlu0 %v5397_v55, %s4184_s20 }
 0x611   :  { %1865 = vrot.lane.b32.xlu1 %v5345_v48, %s4185_s21 }
 0x612   :  { %1867 = vrot.lane.b32.xlu0 %v5351_v12, %s4185_s21 }
 0x613   :  { %v1522_v2 = vpop.permute.xlu1 %1521 }
 0x614   :  { %v1524_v28 = vpop.permute.xlu0 %1523 }
 0x615   :  { %1869 = vrot.lane.b32.xlu1 %v5360_v61, %s4185_s21 }
 0x616   :  { %1871 = vrot.lane.b32.xlu0 %v5366_v42, %s4185_s21 }
 0x617   :  { %v1526_v59 = vpop.permute.xlu1 %1525 }
 0x618   :  { %v1528_v57 = vpop.permute.xlu0 %1527  ;;  %v1541_v1 = vsel %vm97_vm1, %v1522_v2, %v1526_v59 }
 0x619   :  { %v1542_v38 = vsel %vm97_vm1, %v1524_v28, %v1528_v57  ;;  %v1554_v37 = vmul.f32 %v5511_v29, %v1541_v1  ;;  %1873 = vrot.lane.b32.xlu1 %v5377_v3, %s4185_s21  ;;  %v5590_v1 = vld [vmem:[#allocation3 + $0x78] sm:$0xff] }
 0x61a   :  { %v1558_v10 = vmul.f32 %v5514_v62, %v1542_v38  ;;  %1875 = vrot.lane.b32.xlu0 %v5383_v5, %s4185_s21 }
 0x61b   :  { %v1530_v0 = vpop.permute.xlu1 %1529 }
 0x61c   :  { %v1532_v4 = vpop.permute.xlu0 %1531  ;;  %v3821_v53 = vpack.c.bf16 %v1558_v10, %v1554_v37  ;;  %v1539_v35 = vsel %vm97_vm1, %v1526_v59, %v1530_v0  ;;  %v5586_v59 = vld [vmem:[#allocation3 + $0x58] sm:$0xff] }
 0x61d   :  { %v1540_v52 = vsel %vm97_vm1, %v1528_v57, %v1532_v4  ;;  %1877 = vrot.lane.b32.xlu1 %v5392_v46, %s4185_s21  ;;  %v1555_v19 = vmul.f32 %v5530_v56, %v1539_v35  ;;  %v5588_v57 = vld [vmem:[#allocation3 + $0x60] sm:$0xff] }
 0x61e   :  { %1879 = vrot.lane.b32.xlu0 %v5397_v55, %s4185_s21  ;;  %3822 = vmatprep.subr.bf16.mxu0 %v3821_v53  ;;  %v1559_v22 = vmul.f32 %v5526_v49, %v1540_v52 }
 0x61f   :  { %v1534_v24 = vpop.permute.xlu1 %1533 }
 0x620   :  { %v1536_v20 = vpop.permute.xlu0 %1535  ;;  %v1537_v36 = vsel %vm97_vm1, %v1530_v0, %v1534_v24  ;;  %v1543_v14 = vsel %vm97_vm1, %v1534_v24, %v1522_v2  ;;  %v3859_v11 = vpack.c.bf16 %v1559_v22, %v1555_v19  ;;  %v5580_v2 = vld [vmem:[#allocation3 + $0x50] sm:$0xff] }
 0x621   :  { %v1538_v63 = vsel %vm97_vm1, %v1532_v4, %v1536_v20  ;;  %v1544_v34 = vsel %vm97_vm1, %v1536_v20, %v1524_v28  ;;  %v1553_v6 = vmul.f32 %v5538_v47, %v1543_v14  ;;  %v1556_v39 = vmul.f32 %v5540_v58, %v1537_v36  ;;  %1987 = vperm.xlu1 %4053, %v3647_v51  }
 0x622   :  { %v1557_v15 = vmul.f32 %v5545_v54, %v1544_v34  ;;  %v1560_v7 = vmul.f32 %v5547_v8, %v1538_v63  ;;  %1992 = vperm.xlu0 %4052, %v3648_v21   ;;  %v5606_v34 = vld [vmem:[#allocation3 + $0x88] sm:$0xff] }
 0x623   :  { %v1570_v17 = vpop.permute.xlu1 %1569 }
 0x624   :  { %v3823_v18 = vpack.c.bf16 %v1557_v15, %v1553_v6  ;;  %v1572_v13 = vpop.permute.xlu0 %1571  ;;  %v3857_v16 = vpack.c.bf16 %v1560_v7, %v1556_v39  ;;  %v5608_v6 = vld [vmem:[#allocation3 + $0xa8] sm:$0xff] }
 0x626   :  { %3824 = vmatpush1.bf16.msra.mxu0 %v3823_v18  ;;  %3858 = vmatprep.subr.bf16.mxu1 %v3857_v16 }
 0x627   :  { %3860 = vmatpush1.bf16.msra.mxu1 %v3859_v11  ;;  %v1574_v32 = vpop.permute.xlu1 %1573 }
 0x628   :  { %v1576_v50 = vpop.permute.xlu0 %1575  ;;  %v1589_v60 = vsel %vm146_vm2, %v1570_v17, %v1574_v32 }
 0x629   :  { %v1590_v45 = vsel %vm146_vm2, %v1572_v13, %v1576_v50  ;;  %v1602_v27 = vmul.f32 %v5566_v44, %v1589_v60 }
 0x62a   :  { %v1606_v41 = vmul.f32 %v5568_v33, %v1590_v45  ;;  %v5620_v45 = vld [vmem:[#allocation3 + $0x90] sm:$0xff] }
 0x62b   :  { %v1578_v23 = vpop.permute.xlu1 %1577 }
 0x62c   :  { %v1580_v25 = vpop.permute.xlu0 %1579  ;;  %v3825_v26 = vpack.c.bf16 %v1606_v41, %v1602_v27  ;;  %v1587_v28 = vsel %vm146_vm2, %v1574_v32, %v1578_v23  ;;  %v5624_v41 = vld [vmem:[#allocation3 + $0x80] sm:$0xff] }
 0x62d   :  { %v1588_v40 = vsel %vm146_vm2, %v1576_v50, %v1580_v25  ;;  %v1603_v10 = vmul.f32 %v5580_v2, %v1587_v28  ;;  %v5616_v50 = vld [vmem:[#allocation3 + $0xb0] sm:$0xff] }
 0x62e   :  { %3826 = vmatprep.subr.bf16.mxu0 %v3825_v26  ;;  %v1607_v37 = vmul.f32 %v5576_v31, %v1588_v40  ;;  %v5630_v26 = vld [vmem:[#allocation3 + $0xb8] sm:$0xff] }
 0x62f   :  { %v1582_v38 = vpop.permute.xlu1 %1581 }
 0x630   :  { %v1584_v0 = vpop.permute.xlu0 %1583  ;;  %v1585_v4 = vsel %vm146_vm2, %v1578_v23, %v1582_v38  ;;  %v1591_v53 = vsel %vm146_vm2, %v1582_v38, %v1570_v17  ;;  %v3863_v63 = vpack.c.bf16 %v1607_v37, %v1603_v10  ;;  %v5626_v23 = vld [vmem:[#allocation3 + $0x98] sm:$0xff] }
 0x631   :  { %v1586_v52 = vsel %vm146_vm2, %v1580_v25, %v1584_v0  ;;  %v1592_v35 = vsel %vm146_vm2, %v1584_v0, %v1572_v13  ;;  %v1601_v51 = vmul.f32 %v5584_v30, %v1591_v53  ;;  %v1604_v24 = vmul.f32 %v5586_v59, %v1585_v4  ;;  %v5628_v25 = vld [vmem:[#allocation3 + $0xa0] sm:$0xff] }
 0x632   :  { %v1605_v21 = vmul.f32 %v5588_v57, %v1592_v35  ;;  %v1608_v22 = vmul.f32 %v5590_v1, %v1586_v52 }
 0x633   :  { %v1618_v19 = vpop.permute.xlu1 %1617 }
 0x634   :  { %v3827_v20 = vpack.c.bf16 %v1605_v21, %v1601_v51  ;;  %v1620_v36 = vpop.permute.xlu0 %1619  ;;  %v3861_v14 = vpack.c.bf16 %v1608_v22, %v1604_v24 }
 0x636   :  { %3828 = vmatpush1.bf16.msra.mxu0 %v3827_v20  ;;  %3862 = vmatprep.subr.bf16.mxu1 %v3861_v14 }
 0x637   :  { %3864 = vmatpush1.bf16.msra.mxu1 %v3863_v63  ;;  %v1622_v39 = vpop.permute.xlu1 %1621 }
 0x638   :  { %v1624_v15 = vpop.permute.xlu0 %1623  ;;  %v1637_v7 = vsel %vm195_vm3, %v1618_v19, %v1622_v39 }
 0x639   :  { %v1638_v17 = vsel %vm195_vm3, %v1620_v36, %v1624_v15  ;;  %v1650_v18 = vmul.f32 %v5606_v34, %v1637_v7 }
 0x63a   :  { %v1654_v13 = vmul.f32 %v5608_v6, %v1638_v17 }
 0x63b   :  { %v1626_v16 = vpop.permute.xlu1 %1625 }
 0x63c   :  { %v1628_v11 = vpop.permute.xlu0 %1627  ;;  %v3829_v32 = vpack.c.bf16 %v1654_v13, %v1650_v18  ;;  %v1635_v27 = vsel %vm195_vm3, %v1622_v39, %v1626_v16  ;;  %v5648_v39 = vld [vmem:[#allocation3 + $0xe8] sm:$0xff] }
 0x63d   :  { %v1636_v60 = vsel %vm195_vm3, %v1624_v15, %v1628_v11  ;;  %v1651_v38 = vmul.f32 %v5620_v45, %v1635_v27 }
 0x63e   :  { %3830 = vmatprep.subr.bf16.mxu0 %v3829_v32  ;;  %v1655_v28 = vmul.f32 %v5616_v50, %v1636_v60  ;;  %v5656_v60 = vld [vmem:[#allocation3 + $0xf0] sm:$0xff] }
 0x63f   :  { %v1630_v40 = vpop.permute.xlu1 %1629 }
 0x640   :  { %v1632_v37 = vpop.permute.xlu0 %1631  ;;  %v1633_v10 = vsel %vm195_vm3, %v1626_v16, %v1630_v40  ;;  %v1639_v0 = vsel %vm195_vm3, %v1630_v40, %v1618_v19  ;;  %v3867_v63 = vpack.c.bf16 %v1655_v28, %v1651_v38  ;;  %v5646_v19 = vld [vmem:[#allocation3 + $0xc8] sm:$0xff]  ;;  %v5660_v40 = vld [vmem:[#allocation3 + $0xd0] sm:$0xff]  ;;  %v5664_v38 = vld [vmem:[#allocation3 + $0xc0] sm:$0xff] }
 0x641   :  { %v1634_v4 = vsel %vm195_vm3, %v1628_v11, %v1632_v37  ;;  %v1640_v53 = vsel %vm195_vm3, %v1632_v37, %v1620_v36  ;;  %v1649_v52 = vmul.f32 %v5624_v41, %v1639_v0  ;;  %v1652_v35 = vmul.f32 %v5626_v23, %v1633_v10  ;;  %7014 = vst [vmem:[#allocation52_spill] sm:$0xff] %v5660_v40  ;;  %v5666_v37 = vld [vmem:[#allocation3 + $0xd8] sm:$0xff]  ;;  %v5668_v10 = vld [vmem:[#allocation3 + $0xe0] sm:$0xff] }
 0x642   :  { %v1653_v51 = vmul.f32 %v5628_v25, %v1640_v53  ;;  %v1656_v24 = vmul.f32 %v5630_v26, %v1634_v4  ;;  %v5670_v0 = vld [vmem:[#allocation3 + $0xf8] sm:$0xff] }
 0x643   :  { %v1666_v21 = vpop.permute.xlu1 %1665 }
 0x644   :  { %v3831_v22 = vpack.c.bf16 %v1653_v51, %v1649_v52  ;;  %v1668_v20 = vpop.permute.xlu0 %1667  ;;  %v3865_v14 = vpack.c.bf16 %v1656_v24, %v1652_v35 }
 0x646   :  { %3832 = vmatpush1.bf16.msra.mxu0 %v3831_v22  ;;  %3866 = vmatprep.subr.bf16.mxu1 %v3865_v14 }
 0x647   :  { %3868 = vmatpush1.bf16.msra.mxu1 %v3867_v63  ;;  %v1670_v36 = vpop.permute.xlu1 %1669 }
 0x648   :  { %v1672_v15 = vpop.permute.xlu0 %1671  ;;  %v1685_v7 = vsel %vm244_vm4, %v1666_v21, %v1670_v36 }
 0x649   :  { %v1686_v17 = vsel %vm244_vm4, %v1668_v20, %v1672_v15  ;;  %v1698_v18 = vmul.f32 %v5646_v19, %v1685_v7 }
 0x64a   :  { %v1702_v13 = vmul.f32 %v5648_v39, %v1686_v17 }
 0x64b   :  { %v1674_v16 = vpop.permute.xlu1 %1673 }
 0x64c   :  { %v1676_v11 = vpop.permute.xlu0 %1675  ;;  %v3833_v32 = vpack.c.bf16 %v1702_v13, %v1698_v18  ;;  %v1683_v28 = vsel %vm244_vm4, %v1670_v36, %v1674_v16 }
 0x64d   :  { %v1684_v27 = vsel %vm244_vm4, %v1672_v15, %v1676_v11  ;;  %v1699_v52 = vmul.f32 %v5660_v40, %v1683_v28  ;;  %v3839_v28 = vpack.c.bf16 %v5351_v12, %v5345_v48  ;;  %v5758_v12 = vld [vmem:[#allocation3 + $0x1b0] sm:$0xff] }
 0x64e   :  { %3834 = vmatprep.subr.bf16.mxu0 %v3833_v32  ;;  %v1703_v53 = vmul.f32 %v5656_v60, %v1684_v27  ;;  %7029 = vst [vmem:[#allocation22_spill] sm:$0xff] %v5758_v12 }
 0x64f   :  { %v1678_v4 = vpop.permute.xlu1 %1677 }
 0x650   :  { %v1680_v35 = vpop.permute.xlu0 %1679  ;;  %v1681_v51 = vsel %vm244_vm4, %v1674_v16, %v1678_v4  ;;  %v1687_v24 = vsel %vm244_vm4, %v1678_v4, %v1666_v21  ;;  %v3871_v32 = vpack.c.bf16 %v1703_v53, %v1699_v52  ;;  %v3837_v21 = vpack.c.bf16 %v5366_v42, %v5360_v61  ;;  %v5692_v4 = vld [vmem:[#allocation3 + $0x160] sm:$0xff]  ;;  %v5756_v61 = vld [vmem:[#allocation3 + $0x198] sm:$0xff] }
 0x651   :  { %v1682_v22 = vsel %vm244_vm4, %v1676_v11, %v1680_v35  ;;  %v1688_v14 = vsel %vm244_vm4, %v1680_v35, %v1668_v20  ;;  %v1697_v63 = vmul.f32 %v5664_v38, %v1687_v24  ;;  %v1700_v36 = vmul.f32 %v5666_v37, %v1681_v51  ;;  %7015 = vst [vmem:[#allocation13_spill] sm:$0xff] %v5692_v4  ;;  %v5696_v52 = vld [vmem:[#allocation3 + $0x140] sm:$0xff]  ;;  %v5702_v24 = vld [vmem:[#allocation3 + $0x148] sm:$0xff] }
 0x652   :  { %v1701_v15 = vmul.f32 %v5668_v10, %v1688_v14  ;;  %v1704_v7 = vmul.f32 %v5670_v0, %v1682_v22  ;;  %v3873_v20 = vpack.c.bf16 %v5397_v55, %v5392_v46  ;;  %7016 = vst [vmem:[#allocation14_spill] sm:$0xff] %v5696_v52  ;;  %v3875_v51 = vpack.c.bf16 %v5383_v5, %v5377_v3  ;;  %v5704_v22 = vld [vmem:[#allocation3 + $0x168] sm:$0xff] }
 0x653   :  { %v1722_v17 = vpop.permute.xlu1 %1721  ;;  %7017 = vst [vmem:[#allocation19_spill] sm:$0xff] %v5702_v24  ;;  %7018 = vst [vmem:[#allocation20_spill] sm:$0xff] %v5704_v22 }
 0x654   :  { %v3835_v18 = vpack.c.bf16 %v1701_v15, %v1697_v63  ;;  %v1724_v13 = vpop.permute.xlu0 %1723  ;;  %v3869_v16 = vpack.c.bf16 %v1704_v7, %v1700_v36  ;;  %7028 = vst [vmem:[#allocation57_spill] sm:$0xff] %v5756_v61 }
 0x656   :  { %3836 = vmatpush1.bf16.msra.mxu0 %v3835_v18  ;;  %3870 = vmatprep.subr.bf16.mxu1 %v3869_v16 }
 0x657   :  { %3838 = vmatprep.subr.bf16.mxu0 %v3837_v21  ;;  %3872 = vmatpush1.bf16.msra.mxu1 %v3871_v32  ;;  %v1726_v11 = vpop.permute.xlu1 %1725  ;;  %v5714_v21 = vld [vmem:[#allocation3 + $0x150] sm:$0xff] }
 0x658   :  { %v1728_v27 = vpop.permute.xlu0 %1727  ;;  %3874 = vmatprep.subr.bf16.mxu1 %v3873_v20  ;;  %v1741_v35 = vsel %vm301_vm5, %v1722_v17, %v1726_v11  ;;  %7019 = vst [vmem:[#allocation17_spill] sm:$0xff] %v5714_v21  ;;  %v5716_v20 = vld [vmem:[#allocation3 + $0x158] sm:$0xff] }
 0x659   :  { %v1742_v53 = vsel %vm301_vm5, %v1724_v13, %v1728_v27  ;;  %v1753_v36 = vmul.f32 %v5696_v52, %v1741_v35  ;;  %7020 = vst [vmem:[#allocation18_spill] sm:$0xff] %v5716_v20 }
 0x65a   :  { %3840 = vmatpush1.bf16.msra.mxu0 %v3839_v28  ;;  %v1757_v63 = vmul.f32 %v5692_v4, %v1742_v53  ;;  %v5718_v28 = vld [vmem:[#allocation3 + $0x170] sm:$0xff]  ;;  %v5720_v53 = vld [vmem:[#allocation3 + $0x178] sm:$0xff] }
 0x65b   :  { %3876 = vmatpush1.bf16.msra.mxu1 %v3875_v51  ;;  %v1730_v14 = vpop.permute.xlu1 %1729  ;;  %7021 = vst [vmem:[#allocation46_spill] sm:$0xff] %v5718_v28  ;;  %7022 = vst [vmem:[#allocation45_spill] sm:$0xff] %v5720_v53 }
 0x65c   :  { %v1732_v15 = vpop.permute.xlu0 %1731  ;;  %v1739_v7 = vsel %vm301_vm5, %v1726_v11, %v1730_v14  ;;  %v3843_v51 = vpack.c.bf16 %v1757_v63, %v1753_v36 }
 0x65d   :  { %v1740_v18 = vsel %vm301_vm5, %v1728_v27, %v1732_v15  ;;  %v1754_v16 = vmul.f32 %v5702_v24, %v1739_v7 }
 0x65e   :  { %v1758_v32 = vmul.f32 %v5704_v22, %v1740_v18 }
 0x65f   :  { %v1734_v35 = vpop.permute.xlu1 %1733 }
 0x660   :  { %v1736_v55 = vpop.permute.xlu0 %1735  ;;  %v1737_v11 = vsel %vm301_vm5, %v1730_v14, %v1734_v35  ;;  %v1743_v27 = vsel %vm301_vm5, %v1734_v35, %v1722_v17  ;;  %v3841_v7 = vpack.c.bf16 %v1758_v32, %v1754_v16  ;;  %v5734_v35 = vld [vmem:[#allocation3 + $0x1a0] sm:$0xff] }
 0x661   :  { %v1738_v18 = vsel %vm301_vm5, %v1732_v15, %v1736_v55  ;;  %v1744_v46 = vsel %vm301_vm5, %v1736_v55, %v1724_v13  ;;  %v1755_v5 = vmul.f32 %v5714_v21, %v1737_v11  ;;  %v1756_v3 = vmul.f32 %v5716_v20, %v1743_v27  ;;  %7023 = vst [vmem:[#allocation58_spill] sm:$0xff] %v5734_v35  ;;  %v5738_v13 = vld [vmem:[#allocation3 + $0x180] sm:$0xff]  ;;  %v5742_v11 = vld [vmem:[#allocation3 + $0x188] sm:$0xff] }
 0x662   :  { %v1759_v63 = vmul.f32 %v5718_v28, %v1738_v18  ;;  %v1760_v36 = vmul.f32 %v5720_v53, %v1744_v46  ;;  %3842 = vmatprep.subr.bf16.mxu0 %v3841_v7  ;;  %7024 = vst [vmem:[#allocation56_spill] sm:$0xff] %v5738_v13  ;;  %7025 = vst [vmem:[#allocation48_spill] sm:$0xff] %v5742_v11 }
 0x663   :  { %3844 = vmatpush1.bf16.msra.mxu0 %v3843_v51  ;;  %v1770_v14 = vpop.permute.xlu1 %1769  ;;  %v5744_v51 = vld [vmem:[#allocation3 + $0x1a8] sm:$0xff] }
 0x664   :  { %v3879_v42 = vpack.c.bf16 %v1759_v63, %v1755_v5  ;;  %v1772_v17 = vpop.permute.xlu0 %1771  ;;  %v3877_v16 = vpack.c.bf16 %v1760_v36, %v1756_v3  ;;  %7026 = vst [vmem:[#allocation47_spill] sm:$0xff] %v5744_v51 }
 0x666   :  { %3878 = vmatprep.subr.bf16.mxu1 %v3877_v16  ;;  %v5754_v16 = vld [vmem:[#allocation3 + $0x190] sm:$0xff] }
 0x667   :  { %3880 = vmatpush1.bf16.msra.mxu1 %v3879_v42  ;;  %v1774_v15 = vpop.permute.xlu1 %1773  ;;  %7027 = vst [vmem:[#allocation59_spill] sm:$0xff] %v5754_v16 }
 0x668   :  { %v1776_v32 = vpop.permute.xlu0 %1775  ;;  %v1789_v46 = vsel %vm350_vm6, %v1770_v14, %v1774_v15 }
 0x669   :  { %v1790_v55 = vsel %vm350_vm6, %v1772_v17, %v1776_v32  ;;  %v1801_v42 = vmul.f32 %v5738_v13, %v1789_v46 }
 0x66a   :  { %v1805_v3 = vmul.f32 %v5734_v35, %v1790_v55  ;;  %v5760_v55 = vld [vmem:[#allocation3 + $0x1b8] sm:$0xff] }
 0x66b   :  { %v1778_v5 = vpop.permute.xlu1 %1777  ;;  %7030 = vst [vmem:[#allocation24_spill] sm:$0xff] %v5760_v55 }
 0x66c   :  { %v1780_v27 = vpop.permute.xlu0 %1779  ;;  %v1787_v7 = vsel %vm350_vm6, %v1774_v15, %v1778_v5  ;;  %v3847_v48 = vpack.c.bf16 %v1805_v3, %v1801_v42 }
 0x66d   :  { %v1788_v18 = vsel %vm350_vm6, %v1776_v32, %v1780_v27  ;;  %v1802_v63 = vmul.f32 %v5742_v11, %v1787_v7 }
 0x66e   :  { %v1806_v36 = vmul.f32 %v5744_v51, %v1788_v18 }
 0x66f   :  { %v1782_v46 = vpop.permute.xlu1 %1781 }
 0x670   :  { %v1784_v43 = vpop.permute.xlu0 %1783  ;;  %v1785_v15 = vsel %vm350_vm6, %v1778_v5, %v1782_v46  ;;  %v1791_v32 = vsel %vm350_vm6, %v1782_v46, %v1770_v14  ;;  %v3845_v7 = vpack.c.bf16 %v1806_v36, %v1802_v63  ;;  %v5774_v46 = vld [vmem:[#allocation3 + $0x1e0] sm:$0xff] }
 0x671   :  { %v1786_v18 = vsel %vm350_vm6, %v1780_v27, %v1784_v43  ;;  %v1792_v51 = vsel %vm350_vm6, %v1784_v43, %v1772_v17  ;;  %v1803_v35 = vmul.f32 %v5754_v16, %v1785_v15  ;;  %v1804_v11 = vmul.f32 %v5756_v61, %v1791_v32  ;;  %7031 = vst [vmem:[#allocation21_spill] sm:$0xff] %v5774_v46  ;;  %v5778_v17 = vld [vmem:[#allocation3 + $0x1c0] sm:$0xff]  ;;  %v5782_v15 = vld [vmem:[#allocation3 + $0x1c8] sm:$0xff] }
 0x672   :  { %v1807_v3 = vmul.f32 %v5758_v12, %v1786_v18  ;;  %v1808_v42 = vmul.f32 %v5760_v55, %v1792_v51  ;;  %3846 = vmatprep.subr.bf16.mxu0 %v3845_v7  ;;  %7032 = vst [vmem:[#allocation23_spill] sm:$0xff] %v5778_v17  ;;  %7033 = vst [vmem:[#allocation27_spill] sm:$0xff] %v5782_v15  ;;  %v5796_v55 = vld [vmem:[#allocation3 + $0x1d8] sm:$0xff]  ;;  %v5798_v12 = vld [vmem:[#allocation3 + $0x1f0] sm:$0xff] }
 0x673   :  { %3848 = vmatpush1.bf16.msra.mxu0 %v3847_v48  ;;  %v1818_v5 = vpop.permute.xlu1 %1817  ;;  %v5784_v48 = vld [vmem:[#allocation3 + $0x1e8] sm:$0xff]  ;;  %7036 = vst [vmem:[#allocation26_spill] sm:$0xff] %v5796_v55  ;;  %7037 = vst [vmem:[#allocation62_spill] sm:$0xff] %v5798_v12 }
 0x674   :  { %v3883_v13 = vpack.c.bf16 %v1807_v3, %v1803_v35  ;;  %v1820_v14 = vpop.permute.xlu0 %1819  ;;  %v3881_v63 = vpack.c.bf16 %v1808_v42, %v1804_v11  ;;  %7034 = vst [vmem:[#allocation28_spill] sm:$0xff] %v5784_v48 }
 0x676   :  { %3882 = vmatprep.subr.bf16.mxu1 %v3881_v63  ;;  %v5794_v63 = vld [vmem:[#allocation3 + $0x1d0] sm:$0xff] }
 0x677   :  { %3884 = vmatpush1.bf16.msra.mxu1 %v3883_v13  ;;  %v1822_v27 = vpop.permute.xlu1 %1821  ;;  %7035 = vst [vmem:[#allocation25_spill] sm:$0xff] %v5794_v63 }
 0x678   :  { %v1824_v36 = vpop.permute.xlu0 %1823  ;;  %v1837_v51 = vsel %vm399_vm7, %v1818_v5, %v1822_v27 }
 0x679   :  { %v1838_v43 = vsel %vm399_vm7, %v1820_v14, %v1824_v36  ;;  %v1849_v13 = vmul.f32 %v5778_v17, %v1837_v51 }
 0x67a   :  { %v1853_v11 = vmul.f32 %v5774_v46, %v1838_v43  ;;  %v5800_v43 = vld [vmem:[#allocation3 + $0x1f8] sm:$0xff] }
 0x67b   :  { %v1826_v35 = vpop.permute.xlu1 %1825  ;;  %7038 = vst [vmem:[#allocation60_spill] sm:$0xff] %v5800_v43 }
 0x67c   :  { %v1828_v32 = vpop.permute.xlu0 %1827  ;;  %v1835_v7 = vsel %vm399_vm7, %v1822_v27, %v1826_v35  ;;  %v3851_v46 = vpack.c.bf16 %v1853_v11, %v1849_v13 }
 0x67d   :  { %v1836_v18 = vsel %vm399_vm7, %v1824_v36, %v1828_v32  ;;  %v1850_v3 = vmul.f32 %v5782_v15, %v1835_v7 }
 0x67e   :  { %v1854_v42 = vmul.f32 %v5784_v48, %v1836_v18 }
 0x67f   :  { %v1830_v51 = vpop.permute.xlu1 %1829 }
 0x680   :  { %v1832_v17 = vpop.permute.xlu0 %1831  ;;  %v1833_v27 = vsel %vm399_vm7, %v1826_v35, %v1830_v51  ;;  %v1839_v36 = vsel %vm399_vm7, %v1830_v51, %v1818_v5  ;;  %v3849_v7 = vpack.c.bf16 %v1854_v42, %v1850_v3  ;;  %v5814_v51 = vld [vmem:[#allocation3 + $0x220] sm:$0xff] }
 0x681   :  { %v1834_v18 = vsel %vm399_vm7, %v1828_v32, %v1832_v17  ;;  %v1840_v48 = vsel %vm399_vm7, %v1832_v17, %v1820_v14  ;;  %v1851_v15 = vmul.f32 %v5794_v63, %v1833_v27  ;;  %v1852_v61 = vmul.f32 %v5796_v55, %v1839_v36  ;;  %7039 = vst [vmem:[#allocation63_spill] sm:$0xff] %v5814_v51  ;;  %v5818_v17 = vld [vmem:[#allocation3 + $0x200] sm:$0xff]  ;;  %v5822_v27 = vld [vmem:[#allocation3 + $0x208] sm:$0xff] }
 0x682   :  { %v1855_v11 = vmul.f32 %v5798_v12, %v1834_v18  ;;  %v1856_v13 = vmul.f32 %v5800_v43, %v1840_v48  ;;  %3850 = vmatprep.subr.bf16.mxu0 %v3849_v7  ;;  %7040 = vst [vmem:[#allocation61_spill] sm:$0xff] %v5818_v17  ;;  %7041 = vst [vmem:[#allocation30_spill] sm:$0xff] %v5822_v27  ;;  %v5836_v43 = vld [vmem:[#allocation3 + $0x218] sm:$0xff]  ;;  %v5838_v12 = vld [vmem:[#allocation3 + $0x230] sm:$0xff] }
 0x683   :  { %3852 = vmatpush1.bf16.msra.mxu0 %v3851_v46  ;;  %v1866_v35 = vpop.permute.xlu1 %1865  ;;  %v5824_v46 = vld [vmem:[#allocation3 + $0x228] sm:$0xff]  ;;  %7044 = vst [vmem:[#allocation31_spill] sm:$0xff] %v5836_v43  ;;  %7045 = vst [vmem:[#allocation35_spill] sm:$0xff] %v5838_v12 }
 0x684   :  { %v3887_v16 = vpack.c.bf16 %v1855_v11, %v1851_v15  ;;  %v1868_v5 = vpop.permute.xlu0 %1867  ;;  %v3885_v3 = vpack.c.bf16 %v1856_v13, %v1852_v61  ;;  %7042 = vst [vmem:[#allocation32_spill] sm:$0xff] %v5824_v46 }
 0x686   :  { %3886 = vmatprep.subr.bf16.mxu1 %v3885_v3  ;;  %v5834_v3 = vld [vmem:[#allocation3 + $0x210] sm:$0xff] }
 0x687   :  { %3888 = vmatpush1.bf16.msra.mxu1 %v3887_v16  ;;  %v1870_v32 = vpop.permute.xlu1 %1869  ;;  %7043 = vst [vmem:[#allocation29_spill] sm:$0xff] %v5834_v3 }
 0x688   :  { %v1872_v42 = vpop.permute.xlu0 %1871  ;;  %v1885_v48 = vsel %vm448_vm8, %v1866_v35, %v1870_v32 }
 0x689   :  { %v1886_v14 = vsel %vm448_vm8, %v1868_v5, %v1872_v42  ;;  %v1897_v16 = vmul.f32 %v5818_v17, %v1885_v48 }
 0x68a   :  { %v1901_v61 = vmul.f32 %v5814_v51, %v1886_v14  ;;  %v5840_v14 = vld [vmem:[#allocation3 + $0x238] sm:$0xff] }
 0x68b   :  { %v1874_v15 = vpop.permute.xlu1 %1873  ;;  %7046 = vst [vmem:[#allocation36_spill] sm:$0xff] %v5840_v14 }
 0x68c   :  { %v1876_v36 = vpop.permute.xlu0 %1875  ;;  %v1883_v7 = vsel %vm448_vm8, %v1870_v32, %v1874_v15  ;;  %v3855_v51 = vpack.c.bf16 %v1901_v61, %v1897_v16 }
 0x68d   :  { %v1884_v18 = vsel %vm448_vm8, %v1872_v42, %v1876_v36  ;;  %v1898_v11 = vmul.f32 %v5822_v27, %v1883_v7 }
 0x68e   :  { %v1902_v13 = vmul.f32 %v5824_v46, %v1884_v18 }
 0x68f   :  { %v1878_v48 = vpop.permute.xlu1 %1877 }
 0x690   :  { %v1880_v17 = vpop.permute.xlu0 %1879  ;;  %v1881_v32 = vsel %vm448_vm8, %v1874_v15, %v1878_v48  ;;  %v1887_v42 = vsel %vm448_vm8, %v1878_v48, %v1866_v35  ;;  %v3853_v7 = vpack.c.bf16 %v1902_v13, %v1898_v11  ;;  %v3643_v35 = vld [vmem:[%s6758_s2 + $0x40] sm:$0xff] }
 0x691   :  { %v1882_v18 = vsel %vm448_vm8, %v1876_v36, %v1880_v17  ;;  %v1888_v46 = vsel %vm448_vm8, %v1880_v17, %v1868_v5  ;;  %v1899_v27 = vmul.f32 %v5834_v3, %v1881_v32  ;;  %v1900_v55 = vmul.f32 %v5836_v43, %v1887_v42  ;;  %v3646_v5 = vld [vmem:[%s6758_s2 + $0x58] sm:$0xff]  ;;  %v3645_v17 = vld [vmem:[%s6758_s2 + $0x50] sm:$0xff] }
 0x692   :  { %v1903_v61 = vmul.f32 %v5838_v12, %v1882_v18  ;;  %v1904_v16 = vmul.f32 %v5840_v14, %v1888_v46  ;;  %3854 = vmatprep.subr.bf16.mxu0 %v3853_v7 }
 0x693   :  { %3856 = vmatpush1.bf16.msra.mxu0 %v3855_v51 }
 0x694   :  { %v3891_v15 = vpack.c.bf16 %v1903_v61, %v1899_v27  ;;  %v3889_v11 = vpack.c.bf16 %v1904_v16, %v1900_v55 }
 0x696   :  { %2066 = vmatmul.mubr.f32.vlgmr.msra.gmra.mrb[8].mxu0 %v3643_v35  ;;  %3890 = vmatprep.subr.bf16.mxu1 %v3889_v11 }
 0x697   :  { %3892 = vmatpush1.bf16.msra.mxu1 %v3891_v15  ;;  %3650 = vmatprep.mubr.msk.f32.mxu0 %vm563_vm0, %v3646_v5 }
 0x69a   :  { %2072 = vmatmul.mubr.f32.gmra.mrb[10].mxu0 %v3645_v17  ;;  %2143 = vmatmul.mubr.f32.vlgmr.msra.gmra.mrb[8].mxu1 %v3643_v35 }
 0x69b   :  { %3652 = vmatprep.mubr.msk.f32.mxu1 %vm563_vm0, %v3646_v5 }
 0x69e   :  { %2149 = vmatmul.mubr.f32.gmra.mrb[10].mxu1 %v3645_v17 }
 0x6a0   :  { %v1988_v51 = vpop.permute.xlu1 %1987 }
 0x6a1   :  { %v1993_v36 = vpop.permute.xlu0 %1992 }
 0x769   :  { %v2067_v55 = vpop.f32.mrb[8].mxu0 }
 0x76a   :  { %v2068_v27 = vadd.f32 %v2067_v55, %v1988_v51  ;;  %v2069_v46 = vpop.f32.mrb[9].mxu0 }
 0x76c   :  { %v5865_v13 = vmax.f32 %v2068_v27, 0.0  ;;  %v3658_v27 = vld [vmem:[%s6759_s3 + $0x38] sm:$0xff] }
 0x76d   :  { %v2073_v48 = vpop.f32.mrb[10].mxu0  ;;  %v2144_v32 = vpop.f32.mrb[8].mxu1 }
 0x76e   :  { %7047 = vst [vmem:[#allocation33_spill] sm:$0xff] %v5865_v13  ;;  %v2074_v42 = vadd.f32 %v2073_v48, %v1993_v36  ;;  %v2145_v7 = vadd.f32 %v2144_v32, %v1988_v51  ;;  %v2075_v18 = vpop.f32.mrb[11].mxu0  ;;  %v2146_v61 = vpop.f32.mrb[9].mxu1  ;;  %2171 = vrot.lane.b32.xlu1 %v5865_v13, %s4180_s24  ;;  %v2070_v48 = vadd.f32 %v2069_v46, %v1988_v51 }
 0x770   :  { %v5869_v16 = vmax.f32 %v2074_v42, 0.0  ;;  %v5871_v35 = vmax.f32 %v2145_v7, 0.0  ;;  %v5939_v32 = vmax.f32 %v2070_v48, 0.0  ;;  %v2076_v42 = vadd.f32 %v2075_v18, %v1993_v36 }
 0x771   :  { %v2150_v15 = vpop.f32.mrb[10].mxu1  ;;  %v2147_v7 = vadd.f32 %v2146_v61, %v1988_v51  ;;  %v3654_v61 = vld [vmem:[%s6758_s2 + $0x68] sm:$0xff] }
 0x772   :  { %7048 = vst [vmem:[#allocation34_spill] sm:$0xff] %v5869_v16  ;;  %7049 = vst [vmem:[#allocation66_spill] sm:$0xff] %v5871_v35  ;;  %v2151_v11 = vadd.f32 %v2150_v15, %v1993_v36  ;;  %2173 = vrot.lane.b32.xlu0 %v5869_v16, %s4180_s24  ;;  %v2152_v5 = vpop.f32.mrb[11].mxu1  ;;  %2179 = vrot.lane.b32.xlu1 %v5871_v35, %s4180_s24  ;;  %v5945_v15 = vmax.f32 %v2076_v42, 0.0 }
 0x773   :  { %7051 = vst [vmem:[#allocation67_spill] sm:$0xff] %v5939_v32  ;;  %v2153_v46 = vadd.f32 %v2152_v5, %v1993_v36  ;;  %3659 = vmatprep.mubr.msk.f32.mxu0 %vm563_vm0, %v3654_v61  ;;  %3661 = vmatprep.mubr.msk.f32.mxu1 %vm563_vm0, %v3654_v61 }
 0x774   :  { %v5879_v55 = vmax.f32 %v2151_v11, 0.0  ;;  %7052 = vst [vmem:[#allocation65_spill] sm:$0xff] %v5945_v15  ;;  %v5947_v11 = vmax.f32 %v2147_v7, 0.0  ;;  %v3657_v7 = vld [vmem:[%s6759_s3 + $0x30] sm:$0xff] }
 0x775   :  { %v5953_v48 = vmax.f32 %v2153_v46, 0.0 }
 0x776   :  { %7050 = vst [vmem:[#allocation64_spill] sm:$0xff] %v5879_v55  ;;  %2181 = vrot.lane.b32.xlu0 %v5879_v55, %s4180_s24  ;;  %2219 = vrot.lane.b32.xlu1 %v5865_v13, %s4178_s1  ;;  %7053 = vst [vmem:[#allocation38_spill] sm:$0xff] %v5947_v11 }
 0x777   :  { %7054 = vst [vmem:[#allocation40_spill] sm:$0xff] %v5953_v48 }
 0x77a   :  { %2221 = vrot.lane.b32.xlu0 %v5869_v16, %s4178_s1  ;;  %2227 = vrot.lane.b32.xlu1 %v5871_v35, %s4178_s1 }
 0x77e   :  { %2229 = vrot.lane.b32.xlu0 %v5879_v55, %s4178_s1  ;;  %2267 = vrot.lane.b32.xlu1 %v5865_v13, %s4181_s17 }
 0x782   :  { %2269 = vrot.lane.b32.xlu0 %v5869_v16, %s4181_s17  ;;  %2275 = vrot.lane.b32.xlu1 %v5871_v35, %s4181_s17 }
 0x786   :  { %2277 = vrot.lane.b32.xlu0 %v5879_v55, %s4181_s17  ;;  %2315 = vrot.lane.b32.xlu1 %v5865_v13, %s4179_s14 }
 0x78a   :  { %2317 = vrot.lane.b32.xlu0 %v5869_v16, %s4179_s14  ;;  %2323 = vrot.lane.b32.xlu1 %v5871_v35, %s4179_s14 }
 0x78e   :  { %2325 = vrot.lane.b32.xlu0 %v5879_v55, %s4179_s14  ;;  %2371 = vrot.lane.b32.xlu1 %v5865_v13, %s4182_s18 }
 0x792   :  { %2373 = vrot.lane.b32.xlu0 %v5869_v16, %s4182_s18  ;;  %2379 = vrot.lane.b32.xlu1 %v5871_v35, %s4182_s18 }
 0x796   :  { %2381 = vrot.lane.b32.xlu0 %v5879_v55, %s4182_s18  ;;  %2419 = vrot.lane.b32.xlu1 %v5865_v13, %s4183_s19 }
 0x79a   :  { %2421 = vrot.lane.b32.xlu0 %v5869_v16, %s4183_s19  ;;  %2427 = vrot.lane.b32.xlu1 %v5871_v35, %s4183_s19 }
 0x79e   :  { %2429 = vrot.lane.b32.xlu0 %v5879_v55, %s4183_s19  ;;  %2467 = vrot.lane.b32.xlu1 %v5865_v13, %s4184_s20 }
 0x7a2   :  { %2469 = vrot.lane.b32.xlu0 %v5869_v16, %s4184_s20  ;;  %2475 = vrot.lane.b32.xlu1 %v5871_v35, %s4184_s20 }
 0x7a6   :  { %2477 = vrot.lane.b32.xlu0 %v5879_v55, %s4184_s20  ;;  %2515 = vrot.lane.b32.xlu1 %v5865_v13, %s4185_s21 }
 0x7aa   :  { %2517 = vrot.lane.b32.xlu0 %v5869_v16, %s4185_s21  ;;  %2523 = vrot.lane.b32.xlu1 %v5871_v35, %s4185_s21 }
 0x7ae   :  { %2525 = vrot.lane.b32.xlu0 %v5879_v55, %s4185_s21  ;;  %2175 = vrot.lane.b32.xlu1 %v5939_v32, %s4180_s24 }
 0x7b2   :  { %2177 = vrot.lane.b32.xlu0 %v5945_v15, %s4180_s24  ;;  %2183 = vrot.lane.b32.xlu1 %v5947_v11, %s4180_s24 }
 0x7b6   :  { %2185 = vrot.lane.b32.xlu0 %v5953_v48, %s4180_s24  ;;  %2223 = vrot.lane.b32.xlu1 %v5939_v32, %s4178_s1 }
 0x7ba   :  { %2225 = vrot.lane.b32.xlu0 %v5945_v15, %s4178_s1  ;;  %2231 = vrot.lane.b32.xlu1 %v5947_v11, %s4178_s1 }
 0x7be   :  { %2233 = vrot.lane.b32.xlu0 %v5953_v48, %s4178_s1  ;;  %2271 = vrot.lane.b32.xlu1 %v5939_v32, %s4181_s17 }
 0x7c2   :  { %2273 = vrot.lane.b32.xlu0 %v5945_v15, %s4181_s17  ;;  %2279 = vrot.lane.b32.xlu1 %v5947_v11, %s4181_s17 }
 0x7c6   :  { %2281 = vrot.lane.b32.xlu0 %v5953_v48, %s4181_s17  ;;  %2319 = vrot.lane.b32.xlu1 %v5939_v32, %s4179_s14 }
 0x7ca   :  { %2321 = vrot.lane.b32.xlu0 %v5945_v15, %s4179_s14  ;;  %2327 = vrot.lane.b32.xlu1 %v5947_v11, %s4179_s14 }
 0x7ce   :  { %2329 = vrot.lane.b32.xlu0 %v5953_v48, %s4179_s14  ;;  %2375 = vrot.lane.b32.xlu1 %v5939_v32, %s4182_s18 }
 0x7d2   :  { %2377 = vrot.lane.b32.xlu0 %v5945_v15, %s4182_s18  ;;  %2383 = vrot.lane.b32.xlu1 %v5947_v11, %s4182_s18 }
 0x7d6   :  { %2385 = vrot.lane.b32.xlu0 %v5953_v48, %s4182_s18  ;;  %2423 = vrot.lane.b32.xlu1 %v5939_v32, %s4183_s19 }
 0x7da   :  { %2425 = vrot.lane.b32.xlu0 %v5945_v15, %s4183_s19  ;;  %2431 = vrot.lane.b32.xlu1 %v5947_v11, %s4183_s19 }
 0x7de   :  { %2433 = vrot.lane.b32.xlu0 %v5953_v48, %s4183_s19  ;;  %2471 = vrot.lane.b32.xlu1 %v5939_v32, %s4184_s20 }
 0x7e0   :  { %v2172_v51 = vpop.permute.xlu1 %2171 }
 0x7e2   :  { %2473 = vrot.lane.b32.xlu0 %v5945_v15, %s4184_s20  ;;  %2479 = vrot.lane.b32.xlu1 %v5947_v11, %s4184_s20 }
 0x7e4   :  { %v2174_v36 = vpop.permute.xlu0 %2173  ;;  %v2180_v18 = vpop.permute.xlu1 %2179 }
 0x7e6   :  { %2481 = vrot.lane.b32.xlu0 %v5953_v48, %s4184_s20  ;;  %2519 = vrot.lane.b32.xlu1 %v5939_v32, %s4185_s21 }
 0x7e8   :  { %v2182_v5 = vpop.permute.xlu0 %2181  ;;  %v6012_v42 = vpop.permute.xlu1 %2219 }
 0x7ea   :  { %2521 = vrot.lane.b32.xlu0 %v5945_v15, %s4185_s21  ;;  %2527 = vrot.lane.b32.xlu1 %v5947_v11, %s4185_s21 }
 0x7ec   :  { %v6021_v46 = vpop.permute.xlu0 %2221  ;;  %v6023_v61 = vpop.permute.xlu1 %2227 }
 0x7ee   :  { %2529 = vrot.lane.b32.xlu0 %v5953_v48, %s4185_s21  ;;  %2637 = vperm.xlu1 %4053, %v3657_v7  }
 0x7f0   :  { %v6030_v17 = vpop.permute.xlu0 %2229  ;;  %v6032_v14 = vpop.permute.xlu1 %2267 }
 0x7f2   :  { %2642 = vperm.xlu0 %4052, %v3658_v27  }
 0x7f4   :  { %v6034_v12 = vpop.permute.xlu0 %2269  ;;  %v6036_v43 = vpop.permute.xlu1 %2275 }
 0x7f8   :  { %v6038_v3 = vpop.permute.xlu0 %2277  ;;  %v6040_v63 = vpop.permute.xlu1 %2315 }
 0x7fc   :  { %v6042_v35 = vpop.permute.xlu0 %2317  ;;  %v6044_v7 = vpop.permute.xlu1 %2323 }
 0x800   :  { %v6046_v55 = vpop.permute.xlu0 %2325  ;;  %v6048_v13 = vpop.permute.xlu1 %2371 }
 0x801   :  { %7055 = vst [vmem:[#allocation37_spill] sm:$0xff] %v6048_v13 }
 0x804   :  { %v6050_v16 = vpop.permute.xlu0 %2373  ;;  %v6052_v53 = vpop.permute.xlu1 %2379 }
 0x805   :  { %7056 = vst [vmem:[#allocation39_spill] sm:$0xff] %v6050_v16 }
 0x808   :  { %v6054_v27 = vpop.permute.xlu0 %2381  ;;  %v6056_v28 = vpop.permute.xlu1 %2419 }
 0x809   :  { %7057 = vst [vmem:[#allocation43_spill] sm:$0xff] %v6054_v27  ;;  %7058 = vst [vmem:[#allocation44_spill] sm:$0xff] %v6056_v28 }
 0x80c   :  { %v6058_v20 = vpop.permute.xlu0 %2421  ;;  %v6060_v21 = vpop.permute.xlu1 %2427 }
 0x80d   :  { %7059 = vst [vmem:[#allocation41_spill] sm:$0xff] %v6058_v20  ;;  %7060 = vst [vmem:[#allocation42_spill] sm:$0xff] %v6060_v21 }
 0x810   :  { %v6062_v52 = vpop.permute.xlu0 %2429  ;;  %v6064_v4 = vpop.permute.xlu1 %2467 }
 0x811   :  { %7061 = vst [vmem:[#allocation68_spill] sm:$0xff] %v6062_v52  ;;  %7062 = vst [vmem:[#allocation69_spill] sm:$0xff] %v6064_v4 }
 0x814   :  { %v6066_v48 = vpop.permute.xlu0 %2469  ;;  %v6068_v11 = vpop.permute.xlu1 %2475 }
 0x815   :  { %7063 = vst [vmem:[#allocation70_spill] sm:$0xff] %v6066_v48  ;;  %7064 = vst [vmem:[#allocation71_spill] sm:$0xff] %v6068_v11 }
 0x818   :  { %v6070_v22 = vpop.permute.xlu0 %2477  ;;  %v6072_v24 = vpop.permute.xlu1 %2515 }
 0x819   :  { %7065 = vst [vmem:[#allocation72_spill] sm:$0xff] %v6070_v22  ;;  %7066 = vst [vmem:[#allocation73_spill] sm:$0xff] %v6072_v24 }
 0x81c   :  { %v6074_v13 = vpop.permute.xlu0 %2517  ;;  %v6076_v15 = vpop.permute.xlu1 %2523 }
 0x81d   :  { %7067 = vst [vmem:[#allocation74_spill] sm:$0xff] %v6074_v13  ;;  %7068 = vst [vmem:[#allocation75_spill] sm:$0xff] %v6076_v15 }
 0x820   :  { %v6078_v28 = vpop.permute.xlu0 %2525  ;;  %v2176_v20 = vpop.permute.xlu1 %2175 }
 0x821   :  { %7069 = vst [vmem:[#allocation76_spill] sm:$0xff] %v6078_v28  ;;  %v2191_v52 = vsel %vm97_vm1, %v2172_v51, %v2176_v20  ;;  %v2189_v27 = vsel %vm97_vm1, %v2176_v20, %v2180_v18 }
 0x822   :  { %v2204_v11 = vmul.f32 %v2191_v52, %v5511_v29 }
 0x824   :  { %v2178_v21 = vpop.permute.xlu0 %2177  ;;  %v2184_v4 = vpop.permute.xlu1 %2183 }
 0x825   :  { %v2192_v48 = vsel %vm97_vm1, %v2174_v36, %v2178_v21  ;;  %v2190_v24 = vsel %vm97_vm1, %v2178_v21, %v2182_v5  ;;  %v2187_v15 = vsel %vm97_vm1, %v2180_v18, %v2184_v4  ;;  %v2193_v28 = vsel %vm97_vm1, %v2184_v4, %v2172_v51 }
 0x826   :  { %v2208_v13 = vmul.f32 %v2192_v48, %v5514_v62  ;;  %v2209_v40 = vmul.f32 %v2190_v24, %v5526_v49  ;;  %v2203_v52 = vmul.f32 %v2193_v28, %v5538_v47  ;;  %v2206_v21 = vmul.f32 %v2187_v15, %v5540_v58 }
 0x827   :  { %v2205_v49 = vmul.f32 %v2189_v27, %v5530_v56 }
 0x828   :  { %v2186_v22 = vpop.permute.xlu0 %2185  ;;  %v2224_v32 = vpop.permute.xlu1 %2223  ;;  %v3893_v16 = vpack.c.bf16 %v2208_v13, %v2204_v11 }
 0x829   :  { %v2188_v29 = vsel %vm97_vm1, %v2182_v5, %v2186_v22  ;;  %v2194_v62 = vsel %vm97_vm1, %v2186_v22, %v2174_v36  ;;  %v2239_v20 = vsel %vm146_vm2, %v6012_v42, %v2224_v32  ;;  %v3931_v58 = vpack.c.bf16 %v2209_v40, %v2205_v49 }
 0x82a   :  { %v2207_v4 = vmul.f32 %v2194_v62, %v5545_v54  ;;  %v2210_v48 = vmul.f32 %v2188_v29, %v5547_v8  ;;  %3894 = vmatprep.subr.bf16.mxu0 %v3893_v16  ;;  %v2252_v54 = vmul.f32 %v2239_v20, %v5566_v44  ;;  %v2237_v15 = vsel %vm146_vm2, %v2224_v32, %v6023_v61 }
 0x82b   :  { %v2253_v32 = vmul.f32 %v2237_v15, %v5580_v2 }
 0x82c   :  { %v3895_v24 = vpack.c.bf16 %v2207_v4, %v2203_v52  ;;  %v2226_v13 = vpop.permute.xlu0 %2225  ;;  %v2232_v11 = vpop.permute.xlu1 %2231  ;;  %v3929_v51 = vpack.c.bf16 %v2210_v48, %v2206_v21 }
 0x82d   :  { %v2240_v47 = vsel %vm146_vm2, %v6021_v46, %v2226_v13  ;;  %v2238_v8 = vsel %vm146_vm2, %v2226_v13, %v6030_v17  ;;  %v2235_v56 = vsel %vm146_vm2, %v6023_v61, %v2232_v11  ;;  %v2241_v28 = vsel %vm146_vm2, %v2232_v11, %v6012_v42 }
 0x82e   :  { %v2256_v22 = vmul.f32 %v2240_v47, %v5568_v33  ;;  %3896 = vmatpush1.bf16.msra.mxu0 %v3895_v24  ;;  %3930 = vmatprep.subr.bf16.mxu1 %v3929_v51  ;;  %v2257_v33 = vmul.f32 %v2238_v8, %v5576_v31  ;;  %v2251_v5 = vmul.f32 %v2241_v28, %v5584_v30 }
 0x82f   :  { %3932 = vmatpush1.bf16.msra.mxu1 %v3931_v58  ;;  %v2254_v42 = vmul.f32 %v2235_v56, %v5586_v59 }
 0x830   :  { %v2234_v40 = vpop.permute.xlu0 %2233  ;;  %v2272_v16 = vpop.permute.xlu1 %2271  ;;  %v3897_v44 = vpack.c.bf16 %v2256_v22, %v2252_v54  ;;  %v3935_v59 = vpack.c.bf16 %v2257_v33, %v2253_v32  ;;  %v7075_v32 = vld [vmem:[#allocation37_spill] sm:$0xff] }
 0x831   :  { %v2236_v36 = vsel %vm146_vm2, %v6030_v17, %v2234_v40  ;;  %v2242_v18 = vsel %vm146_vm2, %v2234_v40, %v6021_v46  ;;  %v2287_v31 = vsel %vm195_vm3, %v6032_v14, %v2272_v16  ;;  %v2285_v20 = vsel %vm195_vm3, %v2272_v16, %v6036_v43 }
 0x832   :  { %v2255_v27 = vmul.f32 %v2242_v18, %v5588_v57  ;;  %v2258_v29 = vmul.f32 %v2236_v36, %v5590_v1  ;;  %3898 = vmatprep.subr.bf16.mxu0 %v3897_v44  ;;  %v2300_v57 = vmul.f32 %v2287_v31, %v5606_v34 }
 0x834   :  { %v3899_v17 = vpack.c.bf16 %v2255_v27, %v2251_v5  ;;  %v2274_v61 = vpop.permute.xlu0 %2273  ;;  %v2280_v62 = vpop.permute.xlu1 %2279  ;;  %v3933_v52 = vpack.c.bf16 %v2258_v29, %v2254_v42  ;;  %v7074_v27 = vld [vmem:[#allocation65_spill] sm:$0xff] }
 0x835   :  { %v2288_v30 = vsel %vm195_vm3, %v6034_v12, %v2274_v61  ;;  %v2286_v1 = vsel %vm195_vm3, %v2274_v61, %v6038_v3  ;;  %v2283_v2 = vsel %vm195_vm3, %v6036_v43, %v2280_v62  ;;  %v2289_v21 = vsel %vm195_vm3, %v2280_v62, %v6032_v14  ;;  %v7076_v61 = vld [vmem:[#allocation19_spill] sm:$0xff] }
 0x836   :  { %v2304_v46 = vmul.f32 %v2288_v30, %v5608_v6  ;;  %3900 = vmatpush1.bf16.msra.mxu0 %v3899_v17  ;;  %3934 = vmatprep.subr.bf16.mxu1 %v3933_v52  ;;  %v2305_v6 = vmul.f32 %v2286_v1, %v5616_v50  ;;  %v2299_v14 = vmul.f32 %v2289_v21, %v5624_v41  ;;  %v7077_v52 = vld [vmem:[#allocation20_spill] sm:$0xff]  ;;  %v7078_v1 = vld [vmem:[#allocation38_spill] sm:$0xff]  ;;  %v7080_v21 = vld [vmem:[#allocation13_spill] sm:$0xff] }
 0x837   :  { %3936 = vmatpush1.bf16.msra.mxu1 %v3935_v59  ;;  %v2302_v13 = vmul.f32 %v2283_v2, %v5626_v23  ;;  %v2301_v43 = vmul.f32 %v2285_v20, %v5620_v45 }
 0x838   :  { %v2282_v4 = vpop.permute.xlu0 %2281  ;;  %v2320_v48 = vpop.permute.xlu1 %2319  ;;  %v3901_v34 = vpack.c.bf16 %v2304_v46, %v2300_v57  ;;  %v7079_v46 = vld [vmem:[#allocation40_spill] sm:$0xff] }
 0x839   :  { %v2284_v49 = vsel %vm195_vm3, %v6038_v3, %v2282_v4  ;;  %v2290_v24 = vsel %vm195_vm3, %v2282_v4, %v6034_v12  ;;  %v2335_v50 = vsel %vm244_vm4, %v6040_v63, %v2320_v48  ;;  %v3939_v41 = vpack.c.bf16 %v2305_v6, %v2301_v43  ;;  %v7081_v6 = vld [vmem:[#allocation14_spill] sm:$0xff] }
 0x83a   :  { %v2303_v11 = vmul.f32 %v2290_v24, %v5628_v25  ;;  %v2306_v51 = vmul.f32 %v2284_v49, %v5630_v26  ;;  %3902 = vmatprep.subr.bf16.mxu0 %v3901_v34  ;;  %v2348_v23 = vmul.f32 %v2335_v50, %v5646_v19  ;;  %v2333_v28 = vsel %vm244_vm4, %v2320_v48, %v6044_v7  ;;  %v7084_v50 = vld [vmem:[#allocation46_spill] sm:$0xff] }
 0x83b   :  { %v3945_v2 = vpack.c.bf16 %v7079_v46, %v7078_v1  ;;  %v7104_v1 = vld [vmem:[#allocation71_spill] sm:$0xff] }
 0x83c   :  { %v3903_v3 = vpack.c.bf16 %v2303_v11, %v2299_v14  ;;  %v2322_v47 = vpop.permute.xlu0 %2321  ;;  %v2328_v58 = vpop.permute.xlu1 %2327  ;;  %v3937_v54 = vpack.c.bf16 %v2306_v51, %v2302_v13  ;;  %v7082_v14 = vld [vmem:[#allocation17_spill] sm:$0xff]  ;;  %v7083_v11 = vld [vmem:[#allocation18_spill] sm:$0xff] }
 0x83d   :  { %v2336_v12 = vsel %vm244_vm4, %v6042_v35, %v2322_v47  ;;  %v2334_v25 = vsel %vm244_vm4, %v2322_v47, %v6046_v55  ;;  %v2331_v45 = vsel %vm244_vm4, %v6044_v7, %v2328_v58  ;;  %v2337_v8 = vsel %vm244_vm4, %v2328_v58, %v6040_v63  ;;  %v7070_v7 = vld [vmem:[#allocation52_spill] sm:$0xff]  ;;  %v7086_v58 = vld [vmem:[#allocation34_spill] sm:$0xff] }
 0x83e   :  { %v2352_v26 = vmul.f32 %v2336_v12, %v5648_v39  ;;  %3904 = vmatpush1.bf16.msra.mxu0 %v3903_v3  ;;  %3938 = vmatprep.subr.bf16.mxu1 %v3937_v54  ;;  %v2353_v39 = vmul.f32 %v2334_v25, %v5656_v60  ;;  %v2347_v63 = vmul.f32 %v2337_v8, %v5664_v38  ;;  %v7085_v3 = vld [vmem:[#allocation45_spill] sm:$0xff]  ;;  %v7090_v25 = vld [vmem:[#allocation44_spill] sm:$0xff] }
 0x83f   :  { %3940 = vmatpush1.bf16.msra.mxu1 %v3939_v41  ;;  %v2350_v44 = vmul.f32 %v2331_v45, %v5666_v37  ;;  %v2349_v36 = vmul.f32 %v2333_v28, %v7070_v7  ;;  %v7072_v37 = vld [vmem:[#allocation39_spill] sm:$0xff]  ;;  %v7087_v54 = vld [vmem:[#allocation33_spill] sm:$0xff]  ;;  %v7089_v41 = vld [vmem:[#allocation42_spill] sm:$0xff] }
 0x840   :  { %v2330_v22 = vpop.permute.xlu0 %2329  ;;  %v2376_v56 = vpop.permute.xlu1 %2375  ;;  %v3905_v19 = vpack.c.bf16 %v2352_v26, %v2348_v23  ;;  %v7088_v12 = vpack.c.bf16 %v7086_v58, %v7087_v54  ;;  %v7097_v7 = vld [vmem:[#allocation48_spill] sm:$0xff] }
 0x841   :  { %v2332_v40 = vsel %vm244_vm4, %v6046_v55, %v2330_v22  ;;  %v2338_v16 = vsel %vm244_vm4, %v2330_v22, %v6042_v35  ;;  %v2389_v60 = vsel %vm301_vm5, %v2376_v56, %v6052_v53  ;;  %v7071_v35 = vld [vmem:[#allocation43_spill] sm:$0xff]  ;;  %v3943_v31 = vpack.c.bf16 %v2353_v39, %v2349_v36  ;;  %v7091_v22 = vld [vmem:[#allocation64_spill] sm:$0xff] }
 0x842   :  { %v2351_v15 = vmul.f32 %v2338_v16, %v5668_v10  ;;  %v2354_v33 = vmul.f32 %v2332_v40, %v5670_v0  ;;  %3906 = vmatprep.subr.bf16.mxu0 %v3905_v19  ;;  %v7073_v0 = vld [vmem:[#allocation67_spill] sm:$0xff]  ;;  %v2391_v17 = vsel %vm301_vm5, %v7075_v32, %v2376_v56  ;;  %v2404_v62 = vmul.f32 %v2389_v60, %v7076_v61  ;;  %v7092_v56 = vld [vmem:[#allocation66_spill] sm:$0xff]  ;;  %v7094_v16 = vld [vmem:[#allocation68_spill] sm:$0xff] }
 0x843   :  { %v3909_v29 = vpack.c.bf16 %v7074_v27, %v7073_v0  ;;  %v2403_v49 = vmul.f32 %v2391_v17, %v7081_v6  ;;  %v7093_v19 = vpack.c.bf16 %v7091_v22, %v7092_v56  ;;  %v7101_v61 = vld [vmem:[#allocation57_spill] sm:$0xff]  ;;  %v7106_v6 = vld [vmem:[#allocation72_spill] sm:$0xff]  ;;  %v7113_v56 = vld [vmem:[#allocation26_spill] sm:$0xff] }
 0x844   :  { %v3907_v55 = vpack.c.bf16 %v2351_v15, %v2347_v63  ;;  %v2378_v18 = vpop.permute.xlu0 %2377  ;;  %v2384_v5 = vpop.permute.xlu1 %2383  ;;  %v3941_v42 = vpack.c.bf16 %v2354_v33, %v2350_v44  ;;  %v7095_v44 = vld [vmem:[#allocation41_spill] sm:$0xff]  ;;  %v7096_v33 = vld [vmem:[#allocation56_spill] sm:$0xff] }
 0x845   :  { %v2390_v38 = vsel %vm301_vm5, %v2378_v18, %v7071_v35  ;;  %v2392_v10 = vsel %vm301_vm5, %v7072_v37, %v2378_v18  ;;  %v2387_v59 = vsel %vm301_vm5, %v6052_v53, %v2384_v5  ;;  %v2393_v57 = vsel %vm301_vm5, %v2384_v5, %v7075_v32  ;;  %v7099_v5 = vld [vmem:[#allocation47_spill] sm:$0xff] }
 0x846   :  { %v2408_v30 = vmul.f32 %v2390_v38, %v7077_v52  ;;  %3908 = vmatpush1.bf16.msra.mxu0 %v3907_v55  ;;  %3942 = vmatprep.subr.bf16.mxu1 %v3941_v42  ;;  %v2407_v4 = vmul.f32 %v2392_v10, %v7080_v21  ;;  %v2405_v13 = vmul.f32 %v2387_v59, %v7082_v14  ;;  %v7098_v55 = vld [vmem:[#allocation58_spill] sm:$0xff]  ;;  %v7100_v32 = vld [vmem:[#allocation59_spill] sm:$0xff]  ;;  %v7103_v59 = vld [vmem:[#allocation24_spill] sm:$0xff] }
 0x847   :  { %3910 = vmatprep.subr.bf16.mxu0 %v3909_v29  ;;  %3944 = vmatpush1.bf16.msra.mxu1 %v3943_v31  ;;  %v2406_v51 = vmul.f32 %v2393_v57, %v7083_v11  ;;  %v7102_v52 = vld [vmem:[#allocation22_spill] sm:$0xff]  ;;  %v7108_v14 = vld [vmem:[#allocation23_spill] sm:$0xff] }
 0x848   :  { %v2386_v48 = vpop.permute.xlu0 %2385  ;;  %v2424_v34 = vpop.permute.xlu1 %2423  ;;  %v3913_v20 = vpack.c.bf16 %v2408_v30, %v2404_v62  ;;  %3946 = vmatprep.subr.bf16.mxu1 %v3945_v2  ;;  %v3915_v45 = vpack.c.bf16 %v2407_v4, %v2403_v49  ;;  %v7105_v2 = vld [vmem:[#allocation69_spill] sm:$0xff]  ;;  %v7109_v11 = vld [vmem:[#allocation27_spill] sm:$0xff] }
 0x849   :  { %v2388_v53 = vsel %vm301_vm5, %v7071_v35, %v2386_v48  ;;  %v2394_v24 = vsel %vm301_vm5, %v2386_v48, %v7072_v37  ;;  %v2437_v23 = vsel %vm350_vm6, %v2424_v34, %v7089_v41  ;;  %v2439_v26 = vsel %vm350_vm6, %v7090_v25, %v2424_v34 }
 0x84a   :  { %v2409_v43 = vmul.f32 %v2388_v53, %v7084_v50  ;;  %v2410_v47 = vmul.f32 %v2394_v24, %v7085_v3  ;;  %3912 = vmatpush1.bf16.msra.mxu0 %v7088_v12  ;;  %v2451_v60 = vmul.f32 %v2439_v26, %v7096_v33  ;;  %v2452_v36 = vmul.f32 %v2437_v23, %v7097_v7  ;;  %v7107_v53 = vld [vmem:[#allocation70_spill] sm:$0xff]  ;;  %v7110_v50 = vld [vmem:[#allocation21_spill] sm:$0xff]  ;;  %v7111_v3 = vld [vmem:[#allocation28_spill] sm:$0xff] }
 0x84b   :  { %3914 = vmatprep.subr.bf16.mxu0 %v3913_v20  ;;  %3948 = vmatpush1.bf16.msra.mxu1 %v7093_v19 }
 0x84c   :  { %v3951_v8 = vpack.c.bf16 %v2409_v43, %v2405_v13  ;;  %v2426_v28 = vpop.permute.xlu0 %2425  ;;  %v2432_v39 = vpop.permute.xlu1 %2431  ;;  %v3949_v40 = vpack.c.bf16 %v2410_v47, %v2406_v51 }
 0x84d   :  { %v2438_v63 = vsel %vm350_vm6, %v2426_v28, %v7094_v16  ;;  %v2440_v15 = vsel %vm350_vm6, %v7095_v44, %v2426_v28  ;;  %v2435_v35 = vsel %vm350_vm6, %v7089_v41, %v2432_v39  ;;  %v2441_v38 = vsel %vm350_vm6, %v2432_v39, %v7090_v25  ;;  %v7114_v28 = vld [vmem:[#allocation62_spill] sm:$0xff] }
 0x84e   :  { %v2455_v18 = vmul.f32 %v2440_v15, %v7098_v55  ;;  %v2456_v42 = vmul.f32 %v2438_v63, %v7099_v5  ;;  %3916 = vmatpush1.bf16.msra.mxu0 %v3915_v45  ;;  %3950 = vmatprep.subr.bf16.mxu1 %v3949_v40  ;;  %v2453_v17 = vmul.f32 %v2435_v35, %v7100_v32  ;;  %v7115_v40 = vld [vmem:[#allocation60_spill] sm:$0xff]  ;;  %v7116_v63 = vld [vmem:[#allocation75_spill] sm:$0xff]  ;;  %v7117_v15 = vld [vmem:[#allocation73_spill] sm:$0xff] }
 0x84f   :  { %3952 = vmatpush1.bf16.msra.mxu1 %v3951_v8  ;;  %v2454_v62 = vmul.f32 %v2441_v38, %v7101_v61  ;;  %v7112_v8 = vld [vmem:[#allocation25_spill] sm:$0xff] }
 0x850   :  { %v3919_v37 = vpack.c.bf16 %v2455_v18, %v2451_v60  ;;  %v2434_v10 = vpop.permute.xlu0 %2433  ;;  %v2472_v0 = vpop.permute.xlu1 %2471  ;;  %v3917_v27 = vpack.c.bf16 %v2456_v42, %v2452_v36  ;;  %v7118_v18 = vld [vmem:[#allocation76_spill] sm:$0xff]  ;;  %v7119_v42 = vld [vmem:[#allocation74_spill] sm:$0xff]  ;;  %v7120_v38 = vld [vmem:[#allocation61_spill] sm:$0xff] }
 0x851   :  { %v2436_v29 = vsel %vm350_vm6, %v7094_v16, %v2434_v10  ;;  %v2442_v31 = vsel %vm350_vm6, %v2434_v10, %v7095_v44  ;;  %v2485_v46 = vsel %vm399_vm7, %v2472_v0, %v7104_v1  ;;  %v2487_v21 = vsel %vm399_vm7, %v7105_v2, %v2472_v0  ;;  %v7121_v10 = vld [vmem:[#allocation30_spill] sm:$0xff] }
 0x852   :  { %v2457_v30 = vmul.f32 %v2436_v29, %v7102_v52  ;;  %v2458_v57 = vmul.f32 %v2442_v31, %v7103_v59  ;;  %3918 = vmatprep.subr.bf16.mxu0 %v3917_v27  ;;  %v2499_v13 = vmul.f32 %v2487_v21, %v7108_v14  ;;  %v2500_v51 = vmul.f32 %v2485_v46, %v7109_v11  ;;  %v7122_v27 = vld [vmem:[#allocation63_spill] sm:$0xff]  ;;  %v7123_v31 = vld [vmem:[#allocation32_spill] sm:$0xff]  ;;  %v3655_v14 = vld [vmem:[%s6758_s2 + $0x70] sm:$0xff] }
 0x853   :  { %3920 = vmatpush1.bf16.msra.mxu0 %v3919_v37 }
 0x854   :  { %v3955_v4 = vpack.c.bf16 %v2457_v30, %v2453_v17  ;;  %v2474_v48 = vpop.permute.xlu0 %2473  ;;  %v2480_v34 = vpop.permute.xlu1 %2479  ;;  %v3953_v20 = vpack.c.bf16 %v2458_v57, %v2454_v62 }
 0x855   :  { %v2486_v49 = vsel %vm399_vm7, %v2474_v48, %v7106_v6  ;;  %v2488_v24 = vsel %vm399_vm7, %v7107_v53, %v2474_v48  ;;  %v2483_v58 = vsel %vm399_vm7, %v7104_v1, %v2480_v34  ;;  %v2489_v54 = vsel %vm399_vm7, %v2480_v34, %v7105_v2  ;;  %v7124_v1 = vld [vmem:[#allocation29_spill] sm:$0xff]  ;;  %v7125_v2 = vld [vmem:[#allocation31_spill] sm:$0xff]  ;;  %v7127_v34 = vld [vmem:[#allocation36_spill] sm:$0xff] }
 0x856   :  { %v2503_v43 = vmul.f32 %v2488_v24, %v7110_v50  ;;  %v2504_v47 = vmul.f32 %v2486_v49, %v7111_v3  ;;  %3954 = vmatprep.subr.bf16.mxu1 %v3953_v20  ;;  %v2501_v22 = vmul.f32 %v2483_v58, %v7112_v8  ;;  %v2502_v19 = vmul.f32 %v2489_v54, %v7113_v56  ;;  %v3656_v24 = vld [vmem:[%s6758_s2 + $0x78] sm:$0xff] }
 0x857   :  { %3956 = vmatpush1.bf16.msra.mxu1 %v3955_v4  ;;  %v7126_v4 = vld [vmem:[#allocation35_spill] sm:$0xff] }
 0x858   :  { %v3923_v12 = vpack.c.bf16 %v2503_v43, %v2499_v13  ;;  %v2482_v41 = vpop.permute.xlu0 %2481  ;;  %v2520_v23 = vpop.permute.xlu1 %2519  ;;  %v3921_v25 = vpack.c.bf16 %v2504_v47, %v2500_v51 }
 0x859   :  { %v2484_v26 = vsel %vm399_vm7, %v7106_v6, %v2482_v41  ;;  %v2490_v45 = vsel %vm399_vm7, %v2482_v41, %v7107_v53  ;;  %v2533_v44 = vsel %vm448_vm8, %v2520_v23, %v7116_v63  ;;  %v2535_v33 = vsel %vm448_vm8, %v7117_v15, %v2520_v23  ;;  %v3653_v6 = vld [vmem:[%s6758_s2 + $0x60] sm:$0xff] }
 0x85a   :  { %v2505_v39 = vmul.f32 %v2484_v26, %v7114_v28  ;;  %v2506_v16 = vmul.f32 %v2490_v45, %v7115_v40  ;;  %3922 = vmatprep.subr.bf16.mxu0 %v3921_v25  ;;  %v2547_v37 = vmul.f32 %v2535_v33, %v7120_v38  ;;  %v2548_v0 = vmul.f32 %v2533_v44, %v7121_v10  ;;  %v3663_v44 = vld [vmem:[%s6760_s4 + $0x10] sm:$0xff] }
 0x85b   :  { %3924 = vmatpush1.bf16.msra.mxu0 %v3923_v12 }
 0x85c   :  { %v3959_v60 = vpack.c.bf16 %v2505_v39, %v2501_v22  ;;  %v2522_v7 = vpop.permute.xlu0 %2521  ;;  %v2528_v36 = vpop.permute.xlu1 %2527  ;;  %v3957_v55 = vpack.c.bf16 %v2506_v16, %v2502_v19 }
 0x85d   :  { %v2534_v5 = vsel %vm448_vm8, %v2522_v7, %v7118_v18  ;;  %v2536_v35 = vsel %vm448_vm8, %v7119_v42, %v2522_v7  ;;  %v2531_v17 = vsel %vm448_vm8, %v7116_v63, %v2528_v36  ;;  %v2537_v61 = vsel %vm448_vm8, %v2528_v36, %v7117_v15  ;;  %v3664_v15 = vld [vmem:[%s6760_s4 + $0x18] sm:$0xff] }
 0x85e   :  { %v2551_v29 = vmul.f32 %v2536_v35, %v7122_v27  ;;  %v2552_v32 = vmul.f32 %v2534_v5, %v7123_v31  ;;  %3958 = vmatprep.subr.bf16.mxu1 %v3957_v55  ;;  %v2549_v46 = vmul.f32 %v2531_v17, %v7124_v1  ;;  %v2550_v21 = vmul.f32 %v2537_v61, %v7125_v2  ;;  %v2828_v1 = vld [vmem:[#allocation6 + $0x1] sm:$0x1] }
 0x85f   :  { %3960 = vmatpush1.bf16.msra.mxu1 %v3959_v60 }
 0x860   :  { %v3927_v62 = vpack.c.bf16 %v2551_v29, %v2547_v37  ;;  %v2530_v52 = vpop.permute.xlu0 %2529  ;;  %v3925_v30 = vpack.c.bf16 %v2552_v32, %v2548_v0 }
 0x861   :  { %v2532_v59 = vsel %vm448_vm8, %v7118_v18, %v2530_v52  ;;  %v2538_v57 = vsel %vm448_vm8, %v2530_v52, %v7119_v42 }
 0x862   :  { %v2553_v48 = vmul.f32 %v2532_v59, %v7126_v4  ;;  %v2554_v20 = vmul.f32 %v2538_v57, %v7127_v34  ;;  %3926 = vmatprep.subr.bf16.mxu0 %v3925_v30 }
 0x863   :  { %3928 = vmatpush1.bf16.msra.mxu0 %v3927_v62 }
 0x864   :  { %v3963_v49 = vpack.c.bf16 %v2553_v48, %v2549_v46  ;;  %v3961_v53 = vpack.c.bf16 %v2554_v20, %v2550_v21  ;;  %v3666_v20 = vld [vmem:[%s6762_s6 + $0x18] sm:$0xff] }
 0x866   :  { %2716 = vmatmul.mubr.f32.vlgmr.msra.gmra.mrb[12].mxu0 %v3653_v6  ;;  %3962 = vmatprep.subr.bf16.mxu1 %v3961_v53 }
 0x867   :  { %3964 = vmatpush1.bf16.msra.mxu1 %v3963_v49  ;;  %3660 = vmatprep.mubr.msk.f32.mxu0 %vm563_vm0, %v3656_v24  ;;  %v7128_v49 = vld [vmem:[#allocation12_spill] sm:$0xff] }
 0x86a   :  { %2722 = vmatmul.mubr.f32.gmra.mrb[14].mxu0 %v3655_v14  ;;  %2793 = vmatmul.mubr.f32.vlgmr.msra.gmra.mrb[12].mxu1 %v3653_v6  ;;  %v3665_v6 = vld [vmem:[%s6762_s6 + $0x10] sm:$0xff]  ;;  %s4187_s6 = smov [#allocation8]  }
 0x86b   :  { %3662 = vmatprep.mubr.msk.f32.mxu1 %vm563_vm0, %v3656_v24  ;;  %s3608_s13 = sshll.u32 %s4187_s6, 4  ;;  %s3609_s13 = int_to_ptr.vmem [resolvable:$true] %s3608_s13 }
 0x86c   :  { %p4151_p3 = scmp.lt.s32.totalorder %s3609_s13, %s3609_s13 }
 0x86d   :  { %v2638_v13 = vpop.permute.xlu1 %2637 }
 0x86e   :  { %2799 = vmatmul.mubr.f32.gmra.mrb[14].mxu1 %v3655_v14 }
 0x871   :  { %v2643_v3 = vpop.permute.xlu0 %2642 }
 0x939   :  { %v2717_v11 = vpop.f32.mrb[12].mxu0 }
 0x93a   :  { %v6349_v51 = vadd.f32 %v2717_v11, %v2638_v13  ;;  %v2719_v50 = vpop.f32.mrb[13].mxu0 }
 0x93b   :  { %v6351_v43 = vadd.f32 %v2719_v50, %v2638_v13 }
 0x93d   :  { %v2805_v47 = vadd.f32 %v6351_v43, %v6349_v51  ;;  %v2723_v58 = vpop.f32.mrb[14].mxu0  ;;  %v2794_v54 = vpop.f32.mrb[12].mxu1 }
 0x93e   :  { %v6355_v12 = vadd.f32 %v2723_v58, %v2643_v3  ;;  %v2725_v41 = vpop.f32.mrb[15].mxu0  ;;  %v2796_v23 = vpop.f32.mrb[13].mxu1  ;;  %v6359_v26 = vadd.f32 %v2794_v54, %v2638_v13 }
 0x93f   :  { %v6357_v25 = vadd.f32 %v2725_v41, %v2643_v3  ;;  %2806 = vadd.xlane.f32.xlu1 %v2805_v47  ;;  %v6363_v8 = vadd.f32 %v2796_v23, %v2638_v13 }
 0x941   :  { %v2808_v45 = vadd.f32 %v6357_v25, %v6355_v12  ;;  %v2800_v22 = vpop.f32.mrb[14].mxu1  ;;  %v2877_v39 = vadd.f32 %v6363_v8, %v6359_v26 }
 0x942   :  { %v6365_v56 = vadd.f32 %v2800_v22, %v2643_v3  ;;  %v2802_v19 = vpop.f32.mrb[15].mxu1  ;;  %v3668_v22 = vld [vmem:[%s6763_s7 + $0x18] sm:$0xff] }
 0x943   :  { %v6367_v28 = vadd.f32 %v2802_v19, %v2643_v3  ;;  %2809 = vadd.xlane.f32.xlu0 %v2808_v45  ;;  %v3667_v45 = vld [vmem:[%s6763_s7 + $0x10] sm:$0xff] }
 0x945   :  { %v2880_v40 = vadd.f32 %v6367_v28, %v6365_v56 }
 0x947   :  { %2878 = vadd.xlane.f32.xlu0 %v2877_v39  ;;  %2881 = vadd.xlane.f32.xlu1 %v2880_v40 }
 0x9cc   :  { %v2807_v16 = vpop.xlane.xlu1 %2806 }
 0x9cd   :  { %v2811_v63 = vmul.f32 0.00390625, %v2807_v16 }
 0x9cf   :  { %v2816_v60 = vmul.f32 %v3663_v44, %v2811_v63 }
 0x9d0   :  { %v2810_v33 = vpop.xlane.xlu0 %2809 }
 0x9d1   :  { %v2812_v7 = vmul.f32 0.00390625, %v2810_v33  ;;  %v2818_v5 = vsel %vm1387_vm9, %v2816_v60, 0.0 }
 0x9d3   :  { %v2817_v36 = vmul.f32 %v3664_v15, %v2812_v7 }
 0x9d4   :  { %v2879_v55 = vpop.xlane.xlu0 %2878  ;;  %v2882_v18 = vpop.xlane.xlu1 %2881 }
 0x9d5   :  { %v2819_v42 = vsel %vm1387_vm9, %v2817_v36, 0.0  ;;  %v2883_v35 = vmul.f32 0.00390625, %v2879_v55  ;;  %v2884_v38 = vmul.f32 0.00390625, %v2882_v18 }
 0x9d6   :  { %v2820_v37 = vadd.f32 %v2819_v42, %v2818_v5 }
 0x9d7   :  { %v2885_v10 = vmul.f32 %v3663_v44, %v2883_v35  ;;  %v2886_v0 = vmul.f32 %v3664_v15, %v2884_v38 }
 0x9d8   :  { %v2821_v27 = vrot.slane %v2820_v37, 4 }
 0x9d9   :  { %v2887_v29 = vsel %vm1387_vm9, %v2885_v10, 0.0  ;;  %v2888_v31 = vsel %vm1387_vm9, %v2886_v0, 0.0 }
 0x9da   :  { %v2822_v32 = vadd.f32 %v2821_v27, %v2820_v37  ;;  %v2889_v17 = vadd.f32 %v2888_v31, %v2887_v29 }
 0x9dc   :  { %v2823_v61 = vrot.slane %v2822_v32, 2  ;;  %v2890_v62 = vrot.slane %v2889_v17, 4 }
 0x9de   :  { %v2824_v52 = vadd.f32 %v2823_v61, %v2822_v32  ;;  %v2891_v30 = vadd.f32 %v2890_v62, %v2889_v17 }
 0x9e0   :  { %v2825_v59 = vrot.slane %v2824_v52, 1  ;;  %v2892_v57 = vrot.slane %v2891_v30, 2 }
 0x9e2   :  { %v2893_v46 = vadd.f32 %v2892_v57, %v2891_v30  ;;  %v2826_v2 = vadd.f32 %v2825_v59, %v2824_v52  ;;  %v7129_v59 = vld [vmem:[#allocation55_spill] sm:$0xff] }
 0x9e4   :  { %v2894_v21 = vrot.slane %v2893_v46, 1  ;;  %v2829_v4 = vadd.f32 %v2828_v1, %v2826_v2 }
 0x9e6   :  { %v2830_v48 = vmax.f32 %v2829_v4, 0.0  ;;  %v2895_v34 = vadd.f32 %v2894_v21, %v2893_v46  ;;  %v7130_v46 = vld [vmem:[#allocation54_spill] sm:$0xff] }
 0x9e8   :  { %v2837_v53 = vrot.slane %v2830_v48, %v7128_v49  ;;  %v2896_v24 = vadd.f32 %v2895_v34, %v2828_v1  ;;  %v7132_v48 = vld [vmem:[#allocation50_spill] sm:$0xff] }
 0x9ea   :  { %v2839_v14 = vmul.f32 %v3666_v20, %v2837_v53  ;;  %v2838_v13 = vmul.f32 %v3665_v6, %v2837_v53  ;;  %v2897_v11 = vmax.f32 %v2896_v24, 0.0  ;;  %v7134_v24 = vld [vmem:[#allocation16_spill] sm:$0xff] }
 0x9ec   :  { %v2843_v50 = vsel %vm1387_vm9, %v2839_v14, 0.0  ;;  %v2840_v3 = vsel %vm1387_vm9, %v2838_v13, 0.0  ;;  %v2901_v47 = vrot.slane %v2897_v11, %v7128_v49  ;;  %v7136_v13 = vld [vmem:[#allocation51_spill] sm:$0xff] }
 0x9ed   :  { %2844 = vadd.xlane.f32.xlu1 %v2843_v50  ;;  %2841 = vadd.xlane.f32.xlu0 %v2840_v3  ;;  %v2947_v50 = vld [vmem:[%s6764_s8 + $0x8] sm:$0xff] }
 0x9ee   :  { %v2903_v58 = vmul.f32 %v3666_v20, %v2901_v47  ;;  %v2902_v54 = vmul.f32 %v3665_v6, %v2901_v47  ;;  %v7133_v6 = vld [vmem:[#allocation53_spill] sm:$0xff]  ;;  %3673 = vmatprep.mubr.msk.f32.mxu0 %vm563_vm0, %v2947_v50  ;;  %3675 = vmatprep.mubr.msk.f32.mxu1 %vm563_vm0, %v2947_v50  ;;  %v3027_v50 = vld [vmem:[#allocation3 + $0x58] sm:$0xff] }
 0x9ef   :  { %v2977_v3 = vld [vmem:[#allocation3 + $0x8] sm:$0xff] }
 0x9f0   :  { %v2907_v41 = vsel %vm1387_vm9, %v2903_v58, 0.0  ;;  %v2904_v23 = vsel %vm1387_vm9, %v2902_v54, 0.0  ;;  %v2981_v47 = vld [vmem:[#allocation3 + $0x28] sm:$0xff] }
 0x9f1   :  { %2908 = vadd.xlane.f32.xlu1 %v2907_v41  ;;  %2905 = vadd.xlane.f32.xlu0 %v2904_v23 }
 0xa7a   :  { %v2842_v19 = vpop.xlane.xlu0 %2841  ;;  %v2845_v39 = vpop.xlane.xlu1 %2844 }
 0xa7b   :  { %v2849_v40 = vadd.f32 %v3667_v45, %v2842_v19  ;;  %v2850_v16 = vadd.f32 %v3668_v22, %v2845_v39 }
 0xa7d   :  { %v3669_v63 = vmul.f32 -1.442695, %v2849_v40  ;;  %v3670_v44 = vmul.f32 -1.442695, %v2850_v16  ;;  %v2982_v16 = vld [vmem:[#allocation3 + $0x30] sm:$0xff] }
 0xa7e   :  { %v2906_v15 = vpop.xlane.xlu0 %2905  ;;  %v2909_v33 = vpop.xlane.xlu1 %2908 }
 0xa7f   :  { %4070 = vpow2.f32 %v3669_v63  ;;  %v2910_v60 = vadd.f32 %v3667_v45, %v2906_v15  ;;  %v2911_v7 = vadd.f32 %v3668_v22, %v2909_v33  ;;  %v2976_v33 = vld [vmem:[#allocation3] sm:$0xff] }
 0xa80   :  { %4072 = vpow2.f32 %v3670_v44  ;;  %v2978_v44 = vld [vmem:[#allocation3 + $0x10] sm:$0xff] }
 0xa81   :  { %v3671_v36 = vmul.f32 -1.442695, %v2910_v60  ;;  %v3672_v55 = vmul.f32 -1.442695, %v2911_v7  ;;  %v2979_v60 = vld [vmem:[#allocation3 + $0x18] sm:$0xff]  ;;  %v2950_v7 = vld [vmem:[%s6765_s9] sm:$0xff] }
 0xa83   :  { %4074 = vpow2.f32 %v3671_v36  ;;  %v2980_v36 = vld [vmem:[#allocation3 + $0x20] sm:$0xff] }
 0xa84   :  { %4076 = vpow2.f32 %v3672_v55  ;;  %v2983_v55 = vld [vmem:[#allocation3 + $0x38] sm:$0xff] }
 0xa89   :  { %v4071_v18 = vpop.eup %4070 }
 0xa8a   :  { %v4073_v5 = vpop.eup %4072  ;;  %v2857_v42 = vadd.f32 1.0, %v4071_v18 }
 0xa8b   :  { %v2858_v35 = vadd.f32 1.0, %v4073_v5  ;;  %v2951_v5 = vld [vmem:[%s6765_s9 + $0x8] sm:$0xff] }
 0xa8c   :  { %4078 = vrcp.f32 %v2857_v42 }
 0xa8d   :  { %v4075_v38 = vpop.eup %4074  ;;  %4080 = vrcp.f32 %v2858_v35 }
 0xa8e   :  { %v4077_v37 = vpop.eup %4076  ;;  %v2918_v10 = vadd.f32 1.0, %v4075_v38 }
 0xa8f   :  { %v2919_v0 = vadd.f32 1.0, %v4077_v37 }
 0xa90   :  { %4082 = vrcp.f32 %v2918_v10 }
 0xa91   :  { %4084 = vrcp.f32 %v2919_v0 }
 0xa96   :  { %v4079_v27 = vpop.eup %4078 }
 0xa97   :  { %v4081_v29 = vpop.eup %4080  ;;  %2865 = vperm.xlu0 %4052, %v4079_v27  }
 0xa98   :  { %2870 = vperm.xlu1 %4053, %v4081_v29  }
 0xa9a   :  { %v4083_v31 = vpop.eup %4082 }
 0xa9b   :  { %v4085_v32 = vpop.eup %4084 }
 0xa9c   :  { %2926 = vperm.xlu1 %4053, %v4083_v31   ;;  %2931 = vperm.xlu0 %4052, %v4085_v32  }
 0xb16   :  { %v2866_v17 = vpop.permute.xlu0 %2865 }
 0xb17   :  { %v2873_v61 = vmul.f32 %v2866_v17, %v6349_v51  ;;  %v2871_v62 = vpop.permute.xlu1 %2870  ;;  %v2874_v30 = vmul.f32 %v2866_v17, %v6351_v43  ;;  %v7131_v51 = vld [vmem:[#allocation49_spill] sm:$0xff] }
 0xb18   :  { %v2875_v52 = vmul.f32 %v2871_v62, %v6355_v12  ;;  %v2876_v1 = vmul.f32 %v2871_v62, %v6357_v25 }
 0xb19   :  { %v6405_v57 = vadd.f32 %v2873_v61, %v7129_v59  ;;  %v6416_v12 = vadd.f32 %v2874_v30, %v7131_v51 }
 0xb1a   :  { %v6409_v2 = vadd.f32 %v2875_v52, %v7130_v46  ;;  %v6420_v34 = vadd.f32 %v2876_v1, %v7132_v48  ;;  %v3025_v1 = vld [vmem:[#allocation3 + $0x48] sm:$0xff] }
 0xb1b   :  { %v2932_v21 = vpop.permute.xlu0 %2931  ;;  %v2927_v4 = vpop.permute.xlu1 %2926  ;;  %2952 = vrot.lane.b32.xlu1 %v6405_v57, %s4180_s24  ;;  %v3029_v46 = vld [vmem:[#allocation3 + $0x68] sm:$0xff] }
 0xb1c   :  { %2954 = vrot.lane.b32.xlu0 %v6409_v2, %s4180_s24  ;;  %v2934_v43 = vmul.f32 %v2927_v4, %v6359_v26  ;;  %v2936_v25 = vmul.f32 %v2932_v21, %v6365_v56  ;;  %v2935_v20 = vmul.f32 %v2927_v4, %v6363_v8  ;;  %v2937_v53 = vmul.f32 %v2932_v21, %v6367_v28  ;;  %v7135_v56 = vld [vmem:[#allocation15_spill] sm:$0xff] }
 0xb1e   :  { %v6429_v49 = vadd.f32 %v2934_v43, %v7133_v6  ;;  %v6433_v26 = vadd.f32 %v2936_v25, %v7134_v24  ;;  %v6440_v14 = vadd.f32 %v2935_v20, %v7135_v56  ;;  %v6443_v11 = vadd.f32 %v2937_v53, %v7136_v13  ;;  %v3030_v24 = vld [vmem:[#allocation3 + $0x70] sm:$0xff] }
 0xb1f   :  { %2956 = vrot.lane.b32.xlu1 %v6416_v12, %s4180_s24  ;;  %v3026_v13 = vld [vmem:[#allocation3 + $0x50] sm:$0xff] }
 0xb20   :  { %2958 = vrot.lane.b32.xlu0 %v6420_v34, %s4180_s24 }
 0xb23   :  { %2960 = vrot.lane.b32.xlu1 %v6429_v49, %s4180_s24 }
 0xb24   :  { %2962 = vrot.lane.b32.xlu0 %v6433_v26, %s4180_s24 }
 0xb27   :  { %2964 = vrot.lane.b32.xlu1 %v6440_v14, %s4180_s24 }
 0xb28   :  { %2966 = vrot.lane.b32.xlu0 %v6443_v11, %s4180_s24  ;;  %s4146_s24 = scalar_lea.vmem %s3609_s13, 1024 }
 0xb29   :  { %p4147_p2 = scmp.ne.s32.totalorder %s3609_s13, %s4146_s24  ;;  %p4152_p4 = scmp.lt.s32.totalorder %s4146_s24, %s4146_s24 }
 0xb2b   :  { %3000 = vrot.lane.b32.xlu1 %v6405_v57, %s4178_s1  ;;  %p4153_p5 = por %p4152_p4, %p4151_p3 }
 0xb2c   :  { %3002 = vrot.lane.b32.xlu0 %v6409_v2, %s4178_s1 }
 0xb2d   :  { %p4154_p6 = pnand %p4153_p5, %p4147_p2 }
 0xb2f   :  { %3004 = vrot.lane.b32.xlu1 %v6416_v12, %s4178_s1 }
 0xb30   :  { %3006 = vrot.lane.b32.xlu0 %v6420_v34, %s4178_s1 }
 0xb33   :  { %3008 = vrot.lane.b32.xlu1 %v6429_v49, %s4178_s1 }
 0xb34   :  { %3010 = vrot.lane.b32.xlu0 %v6433_v26, %s4178_s1 }
 0xb37   :  { %3012 = vrot.lane.b32.xlu1 %v6440_v14, %s4178_s1 }
 0xb38   :  { %3014 = vrot.lane.b32.xlu0 %v6443_v11, %s4178_s1 }
 0xb3b   :  { %3048 = vrot.lane.b32.xlu1 %v6405_v57, %s4181_s17 }
 0xb3c   :  { %3050 = vrot.lane.b32.xlu0 %v6409_v2, %s4181_s17 }
 0xb3f   :  { %3052 = vrot.lane.b32.xlu1 %v6416_v12, %s4181_s17 }
 0xb40   :  { %3054 = vrot.lane.b32.xlu0 %v6420_v34, %s4181_s17 }
 0xb43   :  { %3056 = vrot.lane.b32.xlu1 %v6429_v49, %s4181_s17 }
 0xb44   :  { %3058 = vrot.lane.b32.xlu0 %v6433_v26, %s4181_s17 }
 0xb47   :  { %3060 = vrot.lane.b32.xlu1 %v6440_v14, %s4181_s17 }
 0xb48   :  { %3062 = vrot.lane.b32.xlu0 %v6443_v11, %s4181_s17 }
 0xb4b   :  { %3096 = vrot.lane.b32.xlu1 %v6405_v57, %s4179_s14 }
 0xb4c   :  { %3098 = vrot.lane.b32.xlu0 %v6409_v2, %s4179_s14 }
 0xb4f   :  { %3100 = vrot.lane.b32.xlu1 %v6416_v12, %s4179_s14 }
 0xb50   :  { %3102 = vrot.lane.b32.xlu0 %v6420_v34, %s4179_s14 }
 0xb53   :  { %3104 = vrot.lane.b32.xlu1 %v6429_v49, %s4179_s14 }
 0xb54   :  { %3106 = vrot.lane.b32.xlu0 %v6433_v26, %s4179_s14 }
 0xb57   :  { %3108 = vrot.lane.b32.xlu1 %v6440_v14, %s4179_s14 }
 0xb58   :  { %3110 = vrot.lane.b32.xlu0 %v6443_v11, %s4179_s14 }
 0xb5b   :  { %3152 = vrot.lane.b32.xlu1 %v6405_v57, %s4182_s18 }
 0xb5c   :  { %3154 = vrot.lane.b32.xlu0 %v6409_v2, %s4182_s18 }
 0xb5f   :  { %3156 = vrot.lane.b32.xlu1 %v6416_v12, %s4182_s18 }
 0xb60   :  { %3158 = vrot.lane.b32.xlu0 %v6420_v34, %s4182_s18 }
 0xb63   :  { %3160 = vrot.lane.b32.xlu1 %v6429_v49, %s4182_s18 }
 0xb64   :  { %3162 = vrot.lane.b32.xlu0 %v6433_v26, %s4182_s18 }
 0xb67   :  { %3164 = vrot.lane.b32.xlu1 %v6440_v14, %s4182_s18 }
 0xb68   :  { %3166 = vrot.lane.b32.xlu0 %v6443_v11, %s4182_s18 }
 0xb6b   :  { %3200 = vrot.lane.b32.xlu1 %v6405_v57, %s4183_s19 }
 0xb6c   :  { %3202 = vrot.lane.b32.xlu0 %v6409_v2, %s4183_s19 }
 0xb6f   :  { %3204 = vrot.lane.b32.xlu1 %v6416_v12, %s4183_s19 }
 0xb70   :  { %3206 = vrot.lane.b32.xlu0 %v6420_v34, %s4183_s19 }
 0xb73   :  { %3208 = vrot.lane.b32.xlu1 %v6429_v49, %s4183_s19 }
 0xb74   :  { %3210 = vrot.lane.b32.xlu0 %v6433_v26, %s4183_s19 }
 0xb77   :  { %3212 = vrot.lane.b32.xlu1 %v6440_v14, %s4183_s19 }
 0xb78   :  { %3214 = vrot.lane.b32.xlu0 %v6443_v11, %s4183_s19 }
 0xb7b   :  { %3248 = vrot.lane.b32.xlu1 %v6405_v57, %s4184_s20 }
 0xb7c   :  { %3250 = vrot.lane.b32.xlu0 %v6409_v2, %s4184_s20 }
 0xb7f   :  { %3252 = vrot.lane.b32.xlu1 %v6416_v12, %s4184_s20 }
 0xb80   :  { %3254 = vrot.lane.b32.xlu0 %v6420_v34, %s4184_s20 }
 0xb83   :  { %3256 = vrot.lane.b32.xlu1 %v6429_v49, %s4184_s20 }
 0xb84   :  { %3258 = vrot.lane.b32.xlu0 %v6433_v26, %s4184_s20 }
 0xb87   :  { %3260 = vrot.lane.b32.xlu1 %v6440_v14, %s4184_s20 }
 0xb88   :  { %3262 = vrot.lane.b32.xlu0 %v6443_v11, %s4184_s20 }
 0xb8b   :  { %3296 = vrot.lane.b32.xlu1 %v6405_v57, %s4185_s21 }
 0xb8c   :  { %3298 = vrot.lane.b32.xlu0 %v6409_v2, %s4185_s21 }
 0xb8d   :  { %v2953_v8 = vpop.permute.xlu1 %2952 }
 0xb8e   :  { %v2955_v28 = vpop.permute.xlu0 %2954 }
 0xb8f   :  { %3300 = vrot.lane.b32.xlu1 %v6416_v12, %s4185_s21 }
 0xb90   :  { %3302 = vrot.lane.b32.xlu0 %v6420_v34, %s4185_s21 }
 0xb91   :  { %v2957_v58 = vpop.permute.xlu1 %2956 }
 0xb92   :  { %v2959_v54 = vpop.permute.xlu0 %2958  ;;  %v2972_v41 = vsel %vm97_vm1, %v2953_v8, %v2957_v58 }
 0xb93   :  { %v2973_v23 = vsel %vm97_vm1, %v2955_v28, %v2959_v54  ;;  %v2985_v45 = vmul.f32 %v2977_v3, %v2972_v41  ;;  %3304 = vrot.lane.b32.xlu1 %v6429_v49, %s4185_s21  ;;  %v3028_v3 = vld [vmem:[#allocation3 + $0x60] sm:$0xff] }
 0xb94   :  { %v2989_v22 = vmul.f32 %v2981_v47, %v2973_v23  ;;  %3306 = vrot.lane.b32.xlu0 %v6433_v26, %s4185_s21  ;;  %v3031_v47 = vld [vmem:[#allocation3 + $0x78] sm:$0xff] }
 0xb95   :  { %v2961_v19 = vpop.permute.xlu1 %2960 }
 0xb96   :  { %v2963_v39 = vpop.permute.xlu0 %2962  ;;  %v3965_v40 = vpack.c.bf16 %v2989_v22, %v2985_v45  ;;  %v2970_v15 = vsel %vm97_vm1, %v2957_v58, %v2961_v19 }
 0xb97   :  { %v2971_v63 = vsel %vm97_vm1, %v2959_v54, %v2963_v39  ;;  %3308 = vrot.lane.b32.xlu1 %v6440_v14, %s4185_s21  ;;  %v2986_v35 = vmul.f32 %v2978_v44, %v2970_v15 }
 0xb98   :  { %3310 = vrot.lane.b32.xlu0 %v6443_v11, %s4185_s21  ;;  %3966 = vmatprep.subr.bf16.mxu0 %v3965_v40  ;;  %v2990_v42 = vmul.f32 %v2982_v16, %v2971_v63 }
 0xb99   :  { %v2965_v18 = vpop.permute.xlu1 %2964 }
 0xb9a   :  { %v2967_v38 = vpop.permute.xlu0 %2966  ;;  %v2968_v37 = vsel %vm97_vm1, %v2961_v19, %v2965_v18  ;;  %v2974_v10 = vsel %vm97_vm1, %v2965_v18, %v2953_v8  ;;  %v4003_v59 = vpack.c.bf16 %v2990_v42, %v2986_v35  ;;  %v3077_v18 = vld [vmem:[#allocation3 + $0xa8] sm:$0xff] }
 0xb9b   :  { %v2969_v0 = vsel %vm97_vm1, %v2963_v39, %v2967_v38  ;;  %v2975_v27 = vsel %vm97_vm1, %v2967_v38, %v2955_v28  ;;  %v2984_v29 = vmul.f32 %v2976_v33, %v2974_v10  ;;  %v2987_v31 = vmul.f32 %v2979_v60, %v2968_v37  ;;  %3418 = vperm.xlu1 %4053, %v2950_v7   ;;  %v3024_v28 = vld [vmem:[#allocation3 + $0x40] sm:$0xff] }
 0xb9c   :  { %v2988_v32 = vmul.f32 %v2980_v36, %v2975_v27  ;;  %v2991_v17 = vmul.f32 %v2983_v55, %v2969_v0  ;;  %3423 = vperm.xlu0 %4052, %v2951_v5   ;;  %v3073_v55 = vld [vmem:[#allocation3 + $0x88] sm:$0xff] }
 0xb9d   :  { %v3001_v61 = vpop.permute.xlu1 %3000 }
 0xb9e   :  { %v3967_v62 = vpack.c.bf16 %v2988_v32, %v2984_v29  ;;  %v3003_v52 = vpop.permute.xlu0 %3002  ;;  %v4001_v30 = vpack.c.bf16 %v2991_v17, %v2987_v31  ;;  %v3078_v31 = vld [vmem:[#allocation3 + $0xb0] sm:$0xff] }
 0xb9f   :  { %v3074_v17 = vld [vmem:[#allocation3 + $0x90] sm:$0xff] }
 0xba0   :  { %3968 = vmatpush1.bf16.msra.mxu0 %v3967_v62  ;;  %4002 = vmatprep.subr.bf16.mxu1 %v4001_v30  ;;  %v3072_v62 = vld [vmem:[#allocation3 + $0x80] sm:$0xff] }
 0xba1   :  { %4004 = vmatpush1.bf16.msra.mxu1 %v4003_v59  ;;  %v3005_v21 = vpop.permute.xlu1 %3004  ;;  %v3076_v30 = vld [vmem:[#allocation3 + $0xa0] sm:$0xff]  ;;  %v3079_v59 = vld [vmem:[#allocation3 + $0xb8] sm:$0xff] }
 0xba2   :  { %v3007_v4 = vpop.permute.xlu0 %3006  ;;  %v3020_v51 = vsel %vm146_vm2, %v3001_v61, %v3005_v21 }
 0xba3   :  { %v3021_v43 = vsel %vm146_vm2, %v3003_v52, %v3007_v4  ;;  %v3033_v48 = vmul.f32 %v3025_v1, %v3020_v51 }
 0xba4   :  { %v3037_v25 = vmul.f32 %v3029_v46, %v3021_v43 }
 0xba5   :  { %v3009_v20 = vpop.permute.xlu1 %3008 }
 0xba6   :  { %v3011_v6 = vpop.permute.xlu0 %3010  ;;  %v3969_v53 = vpack.c.bf16 %v3037_v25, %v3033_v48  ;;  %v3018_v8 = vsel %vm146_vm2, %v3005_v21, %v3009_v20 }
 0xba7   :  { %v3019_v56 = vsel %vm146_vm2, %v3007_v4, %v3011_v6  ;;  %v3034_v41 = vmul.f32 %v3026_v13, %v3018_v8 }
 0xba8   :  { %3970 = vmatprep.subr.bf16.mxu0 %v3969_v53  ;;  %v3038_v54 = vmul.f32 %v3030_v24, %v3019_v56 }
 0xba9   :  { %v3013_v58 = vpop.permute.xlu1 %3012 }
 0xbaa   :  { %v3015_v23 = vpop.permute.xlu0 %3014  ;;  %v3016_v45 = vsel %vm146_vm2, %v3009_v20, %v3013_v58  ;;  %v3022_v22 = vsel %vm146_vm2, %v3013_v58, %v3001_v61  ;;  %v4007_v36 = vpack.c.bf16 %v3038_v54, %v3034_v41 }
 0xbab   :  { %v3017_v19 = vsel %vm146_vm2, %v3011_v6, %v3015_v23  ;;  %v3023_v39 = vsel %vm146_vm2, %v3015_v23, %v3003_v52  ;;  %v3032_v40 = vmul.f32 %v3024_v28, %v3022_v22  ;;  %v3035_v16 = vmul.f32 %v3027_v50, %v3016_v45  ;;  %v3075_v52 = vld [vmem:[#allocation3 + $0x98] sm:$0xff] }
 0xbac   :  { %v3036_v63 = vmul.f32 %v3028_v3, %v3023_v39  ;;  %v3039_v44 = vmul.f32 %v3031_v47, %v3017_v19  ;;  %v3121_v3 = vld [vmem:[#allocation3 + $0xc8] sm:$0xff] }
 0xbad   :  { %v3049_v15 = vpop.permute.xlu1 %3048  ;;  %v3125_v47 = vld [vmem:[#allocation3 + $0xe8] sm:$0xff] }
 0xbae   :  { %v3971_v33 = vpack.c.bf16 %v3036_v63, %v3032_v40  ;;  %v3051_v60 = vpop.permute.xlu0 %3050  ;;  %v4005_v7 = vpack.c.bf16 %v3039_v44, %v3035_v16  ;;  %v3126_v16 = vld [vmem:[#allocation3 + $0xf0] sm:$0xff] }
 0xbaf   :  { %v3122_v44 = vld [vmem:[#allocation3 + $0xd0] sm:$0xff] }
 0xbb0   :  { %3972 = vmatpush1.bf16.msra.mxu0 %v3971_v33  ;;  %4006 = vmatprep.subr.bf16.mxu1 %v4005_v7  ;;  %v3120_v33 = vld [vmem:[#allocation3 + $0xc0] sm:$0xff] }
 0xbb1   :  { %4008 = vmatpush1.bf16.msra.mxu1 %v4007_v36  ;;  %v3053_v5 = vpop.permute.xlu1 %3052  ;;  %v3124_v7 = vld [vmem:[#allocation3 + $0xe0] sm:$0xff]  ;;  %v3127_v36 = vld [vmem:[#allocation3 + $0xf8] sm:$0xff] }
 0xbb2   :  { %v3055_v42 = vpop.permute.xlu0 %3054  ;;  %v3068_v35 = vsel %vm195_vm3, %v3049_v15, %v3053_v5 }
 0xbb3   :  { %v3069_v38 = vsel %vm195_vm3, %v3051_v60, %v3055_v42  ;;  %v3081_v37 = vmul.f32 %v3073_v55, %v3068_v35 }
 0xbb4   :  { %v3085_v10 = vmul.f32 %v3077_v18, %v3069_v38 }
 0xbb5   :  { %v3057_v0 = vpop.permute.xlu1 %3056 }
 0xbb6   :  { %v3059_v27 = vpop.permute.xlu0 %3058  ;;  %v3973_v29 = vpack.c.bf16 %v3085_v10, %v3081_v37  ;;  %v3066_v61 = vsel %vm195_vm3, %v3053_v5, %v3057_v0 }
 0xbb7   :  { %v3067_v32 = vsel %vm195_vm3, %v3055_v42, %v3059_v27  ;;  %v3082_v21 = vmul.f32 %v3074_v17, %v3066_v61 }
 0xbb8   :  { %3974 = vmatprep.subr.bf16.mxu0 %v3973_v29  ;;  %v3086_v46 = vmul.f32 %v3078_v31, %v3067_v32 }
 0xbb9   :  { %v3061_v1 = vpop.permute.xlu1 %3060 }
 0xbba   :  { %v3063_v4 = vpop.permute.xlu0 %3062  ;;  %v3064_v51 = vsel %vm195_vm3, %v3057_v0, %v3061_v1  ;;  %v3070_v43 = vsel %vm195_vm3, %v3061_v1, %v3049_v15  ;;  %v4011_v50 = vpack.c.bf16 %v3086_v46, %v3082_v21  ;;  %v3983_v21 = vpack.c.bf16 %v6409_v2, %v6405_v57 }
 0xbbb   :  { %v3065_v48 = vsel %vm195_vm3, %v3059_v27, %v3063_v4  ;;  %v3071_v25 = vsel %vm195_vm3, %v3063_v4, %v3051_v60  ;;  %v3080_v20 = vmul.f32 %v3072_v62, %v3070_v43  ;;  %v3083_v6 = vmul.f32 %v3075_v52, %v3064_v51  ;;  %v3123_v60 = vld [vmem:[#allocation3 + $0xd8] sm:$0xff]  ;;  %v3180_v4 = vld [vmem:[#allocation3 + $0x160] sm:$0xff] }
 0xbbc   :  { %v3084_v53 = vmul.f32 %v3076_v30, %v3071_v25  ;;  %v3087_v24 = vmul.f32 %v3079_v59, %v3065_v48  ;;  %v3981_v30 = vpack.c.bf16 %v6420_v34, %v6416_v12  ;;  %v4017_v59 = vpack.c.bf16 %v6443_v11, %v6440_v14  ;;  %v3176_v43 = vld [vmem:[#allocation3 + $0x140] sm:$0xff]  ;;  %v3177_v14 = vld [vmem:[#allocation3 + $0x148] sm:$0xff] }
 0xbbd   :  { %v3097_v56 = vpop.permute.xlu1 %3096  ;;  %v4019_v34 = vpack.c.bf16 %v6433_v26, %v6429_v49  ;;  %v3181_v11 = vld [vmem:[#allocation3 + $0x168] sm:$0xff]  ;;  %v3183_v49 = vld [vmem:[#allocation3 + $0x178] sm:$0xff] }
 0xbbe   :  { %v3975_v13 = vpack.c.bf16 %v3084_v53, %v3080_v20  ;;  %v3099_v8 = vpop.permute.xlu0 %3098  ;;  %v4009_v28 = vpack.c.bf16 %v3087_v24, %v3083_v6 }
 0xbc0   :  { %3976 = vmatpush1.bf16.msra.mxu0 %v3975_v13  ;;  %4010 = vmatprep.subr.bf16.mxu1 %v4009_v28  ;;  %v3179_v13 = vld [vmem:[#allocation3 + $0x158] sm:$0xff] }
 0xbc1   :  { %4012 = vmatpush1.bf16.msra.mxu1 %v4011_v50  ;;  %v3101_v58 = vpop.permute.xlu1 %3100 }
 0xbc2   :  { %v3103_v54 = vpop.permute.xlu0 %3102  ;;  %v3116_v41 = vsel %vm244_vm4, %v3097_v56, %v3101_v58 }
 0xbc3   :  { %v3117_v23 = vsel %vm244_vm4, %v3099_v8, %v3103_v54  ;;  %v3129_v45 = vmul.f32 %v3121_v3, %v3116_v41 }
 0xbc4   :  { %v3133_v22 = vmul.f32 %v3125_v47, %v3117_v23 }
 0xbc5   :  { %v3105_v19 = vpop.permute.xlu1 %3104 }
 0xbc6   :  { %v3107_v39 = vpop.permute.xlu0 %3106  ;;  %v3977_v40 = vpack.c.bf16 %v3133_v22, %v3129_v45  ;;  %v3114_v15 = vsel %vm244_vm4, %v3101_v58, %v3105_v19 }
 0xbc7   :  { %v3115_v63 = vsel %vm244_vm4, %v3103_v54, %v3107_v39  ;;  %v3130_v5 = vmul.f32 %v3122_v44, %v3114_v15 }
 0xbc8   :  { %3978 = vmatprep.subr.bf16.mxu0 %v3977_v40  ;;  %v3134_v18 = vmul.f32 %v3126_v16, %v3115_v63 }
 0xbc9   :  { %v3109_v55 = vpop.permute.xlu1 %3108 }
 0xbca   :  { %v3111_v42 = vpop.permute.xlu0 %3110  ;;  %v3112_v35 = vsel %vm244_vm4, %v3105_v19, %v3109_v55  ;;  %v3118_v38 = vsel %vm244_vm4, %v3109_v55, %v3097_v56  ;;  %v4015_v52 = vpack.c.bf16 %v3134_v18, %v3130_v5  ;;  %v3178_v56 = vld [vmem:[#allocation3 + $0x150] sm:$0xff]  ;;  %v3225_v55 = vld [vmem:[#allocation3 + $0x188] sm:$0xff] }
 0xbcb   :  { %v3113_v37 = vsel %vm244_vm4, %v3107_v39, %v3111_v42  ;;  %v3119_v10 = vsel %vm244_vm4, %v3111_v42, %v3099_v8  ;;  %v3128_v0 = vmul.f32 %v3120_v33, %v3118_v38  ;;  %v3131_v27 = vmul.f32 %v3123_v60, %v3112_v35  ;;  %v3182_v8 = vld [vmem:[#allocation3 + $0x170] sm:$0xff]  ;;  %v3228_v33 = vld [vmem:[#allocation3 + $0x1a0] sm:$0xff]  ;;  %v3229_v18 = vld [vmem:[#allocation3 + $0x1a8] sm:$0xff] }
 0xbcc   :  { %v3132_v29 = vmul.f32 %v3124_v7, %v3119_v10  ;;  %v3135_v31 = vmul.f32 %v3127_v36, %v3113_v37  ;;  %v3224_v7 = vld [vmem:[#allocation3 + $0x180] sm:$0xff] }
 0xbcd   :  { %v3153_v32 = vpop.permute.xlu1 %3152 }
 0xbce   :  { %v3979_v17 = vpack.c.bf16 %v3132_v29, %v3128_v0  ;;  %v3155_v61 = vpop.permute.xlu0 %3154  ;;  %v4013_v62 = vpack.c.bf16 %v3135_v31, %v3131_v27  ;;  %v3226_v29 = vld [vmem:[#allocation3 + $0x190] sm:$0xff]  ;;  %v3227_v31 = vld [vmem:[#allocation3 + $0x198] sm:$0xff] }
 0xbd0   :  { %3980 = vmatpush1.bf16.msra.mxu0 %v3979_v17  ;;  %4014 = vmatprep.subr.bf16.mxu1 %v4013_v62  ;;  %v3231_v17 = vld [vmem:[#allocation3 + $0x1b8] sm:$0xff] }
 0xbd1   :  { %3982 = vmatprep.subr.bf16.mxu0 %v3981_v30  ;;  %4016 = vmatpush1.bf16.msra.mxu1 %v4015_v52  ;;  %v3157_v1 = vpop.permute.xlu1 %3156 }
 0xbd2   :  { %v3159_v46 = vpop.permute.xlu0 %3158  ;;  %4018 = vmatprep.subr.bf16.mxu1 %v4017_v59  ;;  %v3172_v12 = vsel %vm301_vm5, %v3153_v32, %v3157_v1 }
 0xbd3   :  { %v3173_v51 = vsel %vm301_vm5, %v3155_v61, %v3159_v46  ;;  %v3184_v20 = vmul.f32 %v3176_v43, %v3172_v12 }
 0xbd4   :  { %3984 = vmatpush1.bf16.msra.mxu0 %v3983_v21  ;;  %v3188_v25 = vmul.f32 %v3180_v4, %v3173_v51 }
 0xbd5   :  { %4020 = vmatpush1.bf16.msra.mxu1 %v4019_v34  ;;  %v3161_v48 = vpop.permute.xlu1 %3160 }
 0xbd6   :  { %v3163_v6 = vpop.permute.xlu0 %3162  ;;  %v3170_v57 = vsel %vm301_vm5, %v3157_v1, %v3161_v48  ;;  %v3987_v28 = vpack.c.bf16 %v3188_v25, %v3184_v20 }
 0xbd7   :  { %v3171_v2 = vsel %vm301_vm5, %v3159_v46, %v3163_v6  ;;  %v3185_v53 = vmul.f32 %v3177_v14, %v3170_v57 }
 0xbd8   :  { %v3189_v24 = vmul.f32 %v3181_v11, %v3171_v2  ;;  %v3272_v2 = vld [vmem:[#allocation3 + $0x1c0] sm:$0xff] }
 0xbd9   :  { %v3165_v26 = vpop.permute.xlu1 %3164 }
 0xbda   :  { %v3167_v50 = vpop.permute.xlu0 %3166  ;;  %v3168_v3 = vsel %vm301_vm5, %v3161_v48, %v3165_v26  ;;  %v3174_v47 = vsel %vm301_vm5, %v3165_v26, %v3153_v32  ;;  %v3985_v58 = vpack.c.bf16 %v3189_v24, %v3185_v53  ;;  %v3230_v32 = vld [vmem:[#allocation3 + $0x1b0] sm:$0xff]  ;;  %v3273_v24 = vld [vmem:[#allocation3 + $0x1c8] sm:$0xff] }
 0xbdb   :  { %v3169_v54 = vsel %vm301_vm5, %v3163_v6, %v3167_v50  ;;  %v3175_v41 = vsel %vm301_vm5, %v3167_v50, %v3155_v61  ;;  %v3186_v23 = vmul.f32 %v3178_v56, %v3168_v3  ;;  %v3187_v45 = vmul.f32 %v3179_v13, %v3174_v47  ;;  %v3276_v6 = vld [vmem:[#allocation3 + $0x1e0] sm:$0xff]  ;;  %v3277_v56 = vld [vmem:[#allocation3 + $0x1e8] sm:$0xff] }
 0xbdc   :  { %v3190_v22 = vmul.f32 %v3182_v8, %v3169_v54  ;;  %v3191_v19 = vmul.f32 %v3183_v49, %v3175_v41  ;;  %3986 = vmatprep.subr.bf16.mxu0 %v3985_v58  ;;  %v3274_v58 = vld [vmem:[#allocation3 + $0x1d0] sm:$0xff]  ;;  %v3275_v54 = vld [vmem:[#allocation3 + $0x1d8] sm:$0xff] }
 0xbdd   :  { %3988 = vmatpush1.bf16.msra.mxu0 %v3987_v28  ;;  %v3201_v39 = vpop.permute.xlu1 %3200  ;;  %v3278_v41 = vld [vmem:[#allocation3 + $0x1f0] sm:$0xff] }
 0xbde   :  { %v4023_v40 = vpack.c.bf16 %v3190_v22, %v3186_v23  ;;  %v3203_v16 = vpop.permute.xlu0 %3202  ;;  %v4021_v63 = vpack.c.bf16 %v3191_v19, %v3187_v45  ;;  %v3279_v23 = vld [vmem:[#allocation3 + $0x1f8] sm:$0xff] }
 0xbe0   :  { %4022 = vmatprep.subr.bf16.mxu1 %v4021_v63 }
 0xbe1   :  { %4024 = vmatpush1.bf16.msra.mxu1 %v4023_v40  ;;  %v3205_v44 = vpop.permute.xlu1 %3204 }
 0xbe2   :  { %v3207_v15 = vpop.permute.xlu0 %3206  ;;  %v3220_v36 = vsel %vm350_vm6, %v3201_v39, %v3205_v44 }
 0xbe3   :  { %v3221_v60 = vsel %vm350_vm6, %v3203_v16, %v3207_v15  ;;  %v3232_v35 = vmul.f32 %v3224_v7, %v3220_v36 }
 0xbe4   :  { %v3236_v42 = vmul.f32 %v3228_v33, %v3221_v60 }
 0xbe5   :  { %v3209_v5 = vpop.permute.xlu1 %3208 }
 0xbe6   :  { %v3211_v38 = vpop.permute.xlu0 %3210  ;;  %v3218_v37 = vsel %vm350_vm6, %v3205_v44, %v3209_v5  ;;  %v3991_v62 = vpack.c.bf16 %v3236_v42, %v3232_v35 }
 0xbe7   :  { %v3219_v10 = vsel %vm350_vm6, %v3207_v15, %v3211_v38  ;;  %v3233_v0 = vmul.f32 %v3225_v55, %v3218_v37 }
 0xbe8   :  { %v3237_v27 = vmul.f32 %v3229_v18, %v3219_v10  ;;  %v3320_v10 = vld [vmem:[#allocation3 + $0x200] sm:$0xff] }
 0xbe9   :  { %v3213_v61 = vpop.permute.xlu1 %3212 }
 0xbea   :  { %v3215_v52 = vpop.permute.xlu0 %3214  ;;  %v3216_v30 = vsel %vm350_vm6, %v3209_v5, %v3213_v61  ;;  %v3222_v59 = vsel %vm350_vm6, %v3213_v61, %v3201_v39  ;;  %v3989_v1 = vpack.c.bf16 %v3237_v27, %v3233_v0  ;;  %v3321_v27 = vld [vmem:[#allocation3 + $0x208] sm:$0xff] }
 0xbeb   :  { %v3217_v46 = vsel %vm350_vm6, %v3211_v38, %v3215_v52  ;;  %v3223_v21 = vsel %vm350_vm6, %v3215_v52, %v3203_v16  ;;  %v3234_v4 = vmul.f32 %v3226_v29, %v3216_v30  ;;  %v3235_v51 = vmul.f32 %v3227_v31, %v3222_v59  ;;  %v3324_v38 = vld [vmem:[#allocation3 + $0x220] sm:$0xff]  ;;  %v3325_v29 = vld [vmem:[#allocation3 + $0x228] sm:$0xff] }
 0xbec   :  { %v3238_v43 = vmul.f32 %v3230_v32, %v3217_v46  ;;  %v3239_v12 = vmul.f32 %v3231_v17, %v3223_v21  ;;  %3990 = vmatprep.subr.bf16.mxu0 %v3989_v1  ;;  %v3322_v1 = vld [vmem:[#allocation3 + $0x210] sm:$0xff]  ;;  %v3323_v46 = vld [vmem:[#allocation3 + $0x218] sm:$0xff] }
 0xbed   :  { %3992 = vmatpush1.bf16.msra.mxu0 %v3991_v62  ;;  %v3249_v34 = vpop.permute.xlu1 %3248  ;;  %v3326_v21 = vld [vmem:[#allocation3 + $0x230] sm:$0xff] }
 0xbee   :  { %v4027_v14 = vpack.c.bf16 %v3238_v43, %v3234_v4  ;;  %v3251_v11 = vpop.permute.xlu0 %3250  ;;  %v4025_v48 = vpack.c.bf16 %v3239_v12, %v3235_v51  ;;  %v3327_v4 = vld [vmem:[#allocation3 + $0x238] sm:$0xff] }
 0xbf0   :  { %4026 = vmatprep.subr.bf16.mxu1 %v4025_v48 }
 0xbf1   :  { %4028 = vmatpush1.bf16.msra.mxu1 %v4027_v14  ;;  %v3253_v25 = vpop.permute.xlu1 %3252 }
 0xbf2   :  { %v3255_v20 = vpop.permute.xlu0 %3254  ;;  %v3268_v53 = vsel %vm399_vm7, %v3249_v34, %v3253_v25 }
 0xbf3   :  { %v3269_v57 = vsel %vm399_vm7, %v3251_v11, %v3255_v20  ;;  %v3280_v49 = vmul.f32 %v3272_v2, %v3268_v53  ;;  %v2946_v53 = vld [vmem:[%s6764_s8] sm:$0xff] }
 0xbf4   :  { %v3284_v8 = vmul.f32 %v3276_v6, %v3269_v57 }
 0xbf5   :  { %v3257_v13 = vpop.permute.xlu1 %3256 }
 0xbf6   :  { %v3259_v26 = vpop.permute.xlu0 %3258  ;;  %v3266_v28 = vsel %vm399_vm7, %v3253_v25, %v3257_v13  ;;  %v3995_v22 = vpack.c.bf16 %v3284_v8, %v3280_v49 }
 0xbf7   :  { %v3267_v50 = vsel %vm399_vm7, %v3255_v20, %v3259_v26  ;;  %v3281_v3 = vmul.f32 %v3273_v24, %v3266_v28 }
 0xbf8   :  { %v3285_v47 = vmul.f32 %v3277_v56, %v3267_v50 }
 0xbf9   :  { %v3261_v45 = vpop.permute.xlu1 %3260 }
 0xbfa   :  { %v3263_v19 = vpop.permute.xlu0 %3262  ;;  %v3264_v39 = vsel %vm399_vm7, %v3257_v13, %v3261_v45  ;;  %v3270_v40 = vsel %vm399_vm7, %v3261_v45, %v3249_v34  ;;  %v3993_v16 = vpack.c.bf16 %v3285_v47, %v3281_v3  ;;  %v2949_v13 = vld [vmem:[%s6764_s8 + $0x18] sm:$0xff]  ;;  %v4094_v47 = vld [vmem:[%s6756_s0] sm:$0xff] }
 0xbfb   :  { %v3265_v63 = vsel %vm399_vm7, %v3259_v26, %v3263_v19  ;;  %v3271_v44 = vsel %vm399_vm7, %v3263_v19, %v3251_v11  ;;  %v3282_v15 = vmul.f32 %v3274_v58, %v3264_v39  ;;  %v3283_v33 = vmul.f32 %v3275_v54, %v3270_v40  ;;  %v4095_v54 = vld [vmem:[%s6756_s0 + $0x8] sm:$0xff] }
 0xbfc   :  { %v3286_v60 = vmul.f32 %v3278_v41, %v3265_v63  ;;  %v3287_v7 = vmul.f32 %v3279_v23, %v3271_v44  ;;  %3994 = vmatprep.subr.bf16.mxu0 %v3993_v16  ;;  %v4096_v44 = vld [vmem:[%s6756_s0 + $0x10] sm:$0xff] }
 0xbfd   :  { %3996 = vmatpush1.bf16.msra.mxu0 %v3995_v22  ;;  %v3297_v36 = vpop.permute.xlu1 %3296 }
 0xbfe   :  { %v4031_v55 = vpack.c.bf16 %v3286_v60, %v3282_v15  ;;  %v3299_v18 = vpop.permute.xlu0 %3298  ;;  %v4029_v5 = vpack.c.bf16 %v3287_v7, %v3283_v33  ;;  %v4097_v33 = vld [vmem:[%s6756_s0 + $0x20] sm:$0xff]  ;;  %v4098_v7 = vld [vmem:[%s6756_s0 + $0x18] sm:$0xff] }
 0xc00   :  { %4030 = vmatprep.subr.bf16.mxu1 %v4029_v5 }
 0xc01   :  { %4032 = vmatpush1.bf16.msra.mxu1 %v4031_v55  ;;  %v3301_v42 = vpop.permute.xlu1 %3300  ;;  %v4099_v55 = vld [vmem:[%s6756_s0 + $0x28] sm:$0xff] }
 0xc02   :  { %v3303_v35 = vpop.permute.xlu0 %3302  ;;  %v3316_v0 = vsel %vm448_vm8, %v3297_v36, %v3301_v42 }
 0xc03   :  { %v3317_v37 = vsel %vm448_vm8, %v3299_v18, %v3303_v35  ;;  %v3328_v17 = vmul.f32 %v3320_v10, %v3316_v0  ;;  %v4101_v0 = vld [vmem:[%s6756_s0 + $0x38] sm:$0xff] }
 0xc04   :  { %v3332_v32 = vmul.f32 %v3324_v38, %v3317_v37  ;;  %v4100_v37 = vld [vmem:[%s6756_s0 + $0x30] sm:$0xff] }
 0xc05   :  { %v3305_v31 = vpop.permute.xlu1 %3304 }
 0xc06   :  { %v3307_v61 = vpop.permute.xlu0 %3306  ;;  %v3314_v62 = vsel %vm448_vm8, %v3301_v42, %v3305_v31  ;;  %v3999_v43 = vpack.c.bf16 %v3332_v32, %v3328_v17 }
 0xc07   :  { %v3315_v52 = vsel %vm448_vm8, %v3303_v35, %v3307_v61  ;;  %v3329_v30 = vmul.f32 %v3321_v27, %v3314_v62 }
 0xc08   :  { %v3333_v59 = vmul.f32 %v3325_v29, %v3315_v52 }
 0xc09   :  { %v3309_v51 = vpop.permute.xlu1 %3308 }
 0xc0a   :  { %v3311_v12 = vpop.permute.xlu0 %3310  ;;  %v3312_v34 = vsel %vm448_vm8, %v3305_v31, %v3309_v51  ;;  %v3318_v14 = vsel %vm448_vm8, %v3309_v51, %v3297_v36  ;;  %v3997_v11 = vpack.c.bf16 %v3333_v59, %v3329_v30 }
 0xc0b   :  { %v3313_v48 = vsel %vm448_vm8, %v3307_v61, %v3311_v12  ;;  %v3319_v25 = vsel %vm448_vm8, %v3311_v12, %v3299_v18  ;;  %v3330_v20 = vmul.f32 %v3322_v1, %v3312_v34  ;;  %v3331_v6 = vmul.f32 %v3323_v46, %v3318_v14 }
 0xc0c   :  { %v3334_v57 = vmul.f32 %v3326_v21, %v3313_v48  ;;  %v3335_v2 = vmul.f32 %v3327_v4, %v3319_v25  ;;  %3998 = vmatprep.subr.bf16.mxu0 %v3997_v11 }
 0xc0d   :  { %4000 = vmatpush1.bf16.msra.mxu0 %v3999_v43 }
 0xc0e   :  { %v4035_v24 = vpack.c.bf16 %v3334_v57, %v3330_v20  ;;  %v4033_v56 = vpack.c.bf16 %v3335_v2, %v3331_v6 }
 0xc10   :  { %3497 = vmatmul.mubr.f32.vlgmr.msra.gmra.mrb[16].mxu0 %v2946_v53  ;;  %4034 = vmatprep.subr.bf16.mxu1 %v4033_v56 }
 0xc11   :  { %4036 = vmatpush1.bf16.msra.mxu1 %v4035_v24  ;;  %3674 = vmatprep.mubr.msk.f32.mxu0 %vm563_vm0, %v2949_v13 }
 0xc14   :  { %3503 = vmatmul.mubr.f32.gmra.mrb[18].mxu0 %v2948_v9  ;;  %3574 = vmatmul.mubr.f32.vlgmr.msra.gmra.mrb[16].mxu1 %v2946_v53 }
 0xc15   :  { %3676 = vmatprep.mubr.msk.f32.mxu1 %vm563_vm0, %v2949_v13 }
 0xc18   :  { %3580 = vmatmul.mubr.f32.gmra.mrb[18].mxu1 %v2948_v9 }
 0xc1a   :  { %v3419_v8 = vpop.permute.xlu1 %3418 }
 0xc1b   :  { %v3424_v3 = vpop.permute.xlu0 %3423 }
 0xce3   :  { %v3498_v49 = vpop.f32.mrb[16].mxu0 }
 0xce4   :  { %v3499_v26 = vadd.f32 %v3498_v49, %v3419_v8  ;;  %v3500_v28 = vpop.f32.mrb[17].mxu0 }
 0xce5   :  { %v3501_v50 = vadd.f32 %v3500_v28, %v3419_v8 }
 0xce6   :  { %v3586_v58 = vadd.f32 %v4094_v47, %v3499_v26 }
 0xce7   :  { %v3587_v41 = vadd.f32 %v4095_v54, %v3501_v50  ;;  %v3504_v23 = vpop.f32.mrb[18].mxu0  ;;  %v3575_v45 = vpop.f32.mrb[16].mxu1 }
 0xce8   :  { %3594 = vst [vmem:[#allocation8] sm:$0xff] %v3586_v58  ;;  %v3505_v22 = vadd.f32 %v3504_v23, %v3424_v3  ;;  %v3576_v19 = vadd.f32 %v3575_v45, %v3419_v8  ;;  %v3506_v39 = vpop.f32.mrb[19].mxu0  ;;  %v3577_v40 = vpop.f32.mrb[17].mxu1 }
 0xce9   :  { %3595 = vst [vmem:[#allocation8 + $0x8] sm:$0xff] %v3587_v41  ;;  %v3507_v16 = vadd.f32 %v3506_v39, %v3424_v3  ;;  %v3578_v63 = vadd.f32 %v3577_v40, %v3419_v8 }
 0xcea   :  { %v3590_v15 = vadd.f32 %v4096_v44, %v3505_v22  ;;  %v3588_v60 = vadd.f32 %v4097_v33, %v3576_v19 }
 0xceb   :  { %v3591_v36 = vadd.f32 %v4098_v7, %v3507_v16  ;;  %v3589_v18 = vadd.f32 %v4099_v55, %v3578_v63  ;;  %v3581_v5 = vpop.f32.mrb[18].mxu1 }
 0xcec   :  { %3596 = vst [vmem:[#allocation8 + $0x10] sm:$0xff] %v3590_v15  ;;  %3599 = vst [vmem:[#allocation8 + $0x20] sm:$0xff] %v3588_v60  ;;  %v3582_v42 = vadd.f32 %v3581_v5, %v3424_v3  ;;  %v3583_v35 = vpop.f32.mrb[19].mxu1 }
 0xced   :  { %3597 = vst [vmem:[#allocation8 + $0x18] sm:$0xff] %v3591_v36  ;;  %3600 = vst [vmem:[#allocation8 + $0x28] sm:$0xff] %v3589_v18  ;;  %v3584_v38 = vadd.f32 %v3583_v35, %v3424_v3 }
 0xcee   :  { %v3592_v10 = vadd.f32 %v4100_v37, %v3582_v42 }
 0xcef   :  { %v3593_v27 = vadd.f32 %v4101_v0, %v3584_v38 }
 0xcf0   :  { %3601 = vst [vmem:[#allocation8 + $0x30] sm:$0xff] %v3592_v10 }
 0xcf1   :  { %3602 = vst [vmem:[#allocation8 + $0x38] sm:$0xff] %v3593_v27 }
 0xcf2   :  { %4157 = shalt.err (!%p4154_p6)
}
 0xcf3   :  { %s4158_s19 = scalar_lea.hbm %s6766_s10, 1024 }
 0xcf4   :  { %p4159_p7 = scmp.ne.s32.totalorder %s6766_s10, %s4158_s19  ;;  %p4162_p8 = scmp.lt.u32.totalorder %s4158_s19, %s6766_s10 }
 0xcf6   :  { %p4164_p9 = pnand %p4162_p8, %p4159_p7 }
 0xcf8   :  { %4167 = shalt.err (!%p4164_p9)
}
 0xcf9   :  { %s4188_s3 = smov 256  }
 0xcfa   :  { %3614 = dma.vmem_to_hbm [thread:$0]  %s3609_s13, 1024, %s6766_s10, [#allocation5], %s4188_s3, %s4188_s3, %s4178_s1  }
 0xcfb   :  { %4172 = dma.done.wait [#allocation5], 1024  }
 0xcfc   :  { %4173 = vsyncadd [#allocation5], 4294966272 }
 0xcfd   :  { %3618 = vsyncpa [#allocation4], 1 }
 0xcfe   :  { %3619 = vsyncpa [#allocation7], 1 }
 0xcff   :  { %3620 = vsyncpa [#allocation5], 1 }

</bundles_post_ra>
